<compile_context>
chip_gen: v6e
topology: v6e:2x2x1
jax: 0.10.0
libtpu: 0.0.40
codegen_flags: <defaults>
</compile_context>

<pallas_src>
import functools

import jax
import jax.numpy as jnp
from jax.experimental import pallas as pl
from jax.experimental.pallas import tpu as pltpu


def _film_kernel(x_ref, w_ref, b_ref, freq_ref, phase_ref, o_ref, *, activation):
    # x_ref:     (1, TN, D_in)  per-(batch, N-tile) slab of inputs
    # w_ref:     (D_in, H)      full transposed Linear weight (VMEM-resident)
    # b_ref:     (1, H)         bias
    # freq_ref:  (1, 1|TN, H)   FiLM frequency (broadcast over N, or full)
    # phase_ref: (1, 1|TN, H)   FiLM phase shift
    # o_ref:     (1, TN, H)     lane-dense output tile (H is multiple of 128)
    x = x_ref[0]                                                    # (TN, D_in)
    z = jnp.dot(x, w_ref[...], preferred_element_type=jnp.float32)  # MXU
    z = z + b_ref[...].astype(jnp.float32)                          # (1, H) bcast
    mod = freq_ref[0].astype(jnp.float32) * z + phase_ref[0].astype(jnp.float32)
    if activation == "sin":
        y = jnp.sin(mod)                                            # EUP
    else:
        y = jnp.where(mod >= 0, mod, 0.2 * mod)                     # leaky_relu(0.2)
    o_ref[0] = y.astype(o_ref.dtype)


def film_layer(x, weight, bias, freq, phase_shift=None, *,
               activation="sin", block_n=512):
    """FiLMLayer.forward as a Pallas TPU kernel.

    x:            (B, N, D_in)
    weight, bias: nn.Linear(D_in, H) params -> weight (H, D_in), bias (H,)
    freq:         (B, H) or (B, N, H)
    phase_shift:  None, (B, H) or (B, N, H)
    returns:      (B, N, H)
    """
    B, N, D_in = x.shape
    H = weight.shape[0]
    assert weight.shape == (H, D_in)

    # Lane-dense layout: transpose the weight outside the kernel so the MXU
    # output tile is (TN, H) with H (multiple of 128 in typical SIREN configs)
    # in the lane dimension -> unmasked vector stores.
    w_t = jnp.transpose(weight)          # (D_in, H)
    b2 = bias.reshape(1, H)

    if phase_shift is None:
        phase_shift = jnp.zeros((B, H), dtype=x.dtype)

    # N-tile: large enough to amortize per-grid-step overhead, multiple of 8
    # (sublane), and small enough (<~2 MiB) to stay far under VMEM limits on
    # v5e/v6e/v7x even with double buffering.
    tn = N if N <= block_n else (block_n // 8) * 8
    grid_n = pl.cdiv(N, tn)

    def _mod_spec(m):
        if m.ndim == 2:                   # (B, H): broadcast over N inside kernel
            return m[:, None, :], pl.BlockSpec((1, 1, H), lambda b, n: (b, 0, 0))
        return m, pl.BlockSpec((1, tn, H), lambda b, n: (b, n, 0))

    freq3, freq_spec = _mod_spec(freq)
    phase3, phase_spec = _mod_spec(phase_shift)

    itemsize = jnp.dtype(x.dtype).itemsize
    cost = pl.CostEstimate(
        flops=2 * B * N * D_in * H + 3 * B * N * H,
        transcendentals=B * N * H if activation == "sin" else 0,
        bytes_accessed=(x.size + 2 * B * N * H + w_t.size) * itemsize,
    )

    kernel = functools.partial(_film_kernel, activation=activation)

    return pl.pallas_call(
        kernel,
        out_shape=jax.ShapeDtypeStruct((B, N, H), x.dtype),
        grid=(B, grid_n),
        in_specs=[
            pl.BlockSpec((1, tn, D_in), lambda b, n: (b, n, 0)),  # x tile
            pl.BlockSpec((D_in, H), lambda b, n: (0, 0)),         # weight (resident)
            pl.BlockSpec((1, H), lambda b, n: (0, 0)),            # bias
            freq_spec,
            phase_spec,
        ],
        out_specs=pl.BlockSpec((1, tn, H), lambda b, n: (b, n, 0)),
        compiler_params=pltpu.CompilerParams(
            dimension_semantics=("parallel", "parallel"),
        ),
        cost_estimate=cost,
    )(x, w_t, b2, freq3, phase3)


# TODO(synk): random_phase=True (phase_shift * torch.randn(B, N, 1)) is a
# nondeterministic per-call RNG path; not implemented here.


def _reference(x, weight, bias, freq, phase_shift, activation):
    z = jnp.einsum("bnd,hd->bnh", x, weight) + bias
    f = freq[:, None, :] if freq.ndim == 2 else freq
    if phase_shift is None:
        p = 0.0
    else:
        p = phase_shift[:, None, :] if phase_shift.ndim == 2 else phase_shift
    mod = f * z + p
    if activation == "sin":
        return jnp.sin(mod)
    return jnp.where(mod >= 0, mod, 0.2 * mod)


if __name__ == "__main__":
    key = jax.random.PRNGKey(0)
    kx, kw, kb, kf, kp = jax.random.split(key, 5)

    B, N, D_in, H = 2, 256, 32, 128   # small: batch=2, 256 points, 32 -> 128

    # Round matmul operands through bf16 so the MXU product is exact and the
    # Pallas kernel / XLA reference comparison is not dominated by matmul
    # precision-pass differences.
    x = jax.random.normal(kx, (B, N, D_in), dtype=jnp.float32)
    x = x.astype(jnp.bfloat16).astype(jnp.float32)
    weight = (jax.random.normal(kw, (H, D_in), dtype=jnp.float32) / jnp.sqrt(D_in))
    weight = weight.astype(jnp.bfloat16).astype(jnp.float32)
    bias = jax.random.normal(kb, (H,), dtype=jnp.float32) * 0.1
    freq = jax.random.uniform(kf, (B, H), dtype=jnp.float32, minval=0.5, maxval=2.0)
    phase = jax.random.uniform(kp, (B, H), dtype=jnp.float32, minval=-1.0, maxval=1.0)

    # sin activation with phase shift
    out = jax.block_until_ready(film_layer(x, weight, bias, freq, phase,
                                           activation="sin"))
    ref = _reference(x, weight, bias, freq, phase, "sin")
    assert out.shape == (B, N, H) and out.dtype == x.dtype
    assert jnp.allclose(out, ref, rtol=1e-4, atol=1e-4)

    # sin activation, phase_shift=None
    out2 = jax.block_until_ready(film_layer(x, weight, bias, freq, None,
                                            activation="sin"))
    ref2 = _reference(x, weight, bias, freq, None, "sin")
    assert jnp.allclose(out2, ref2, rtol=1e-4, atol=1e-4)

    # leaky_relu branch
    out3 = jax.block_until_ready(film_layer(x, weight, bias, freq, phase,
                                            activation="lrelu"))
    ref3 = _reference(x, weight, bias, freq, phase, "lrelu")
    assert jnp.allclose(out3, ref3, rtol=1e-4, atol=1e-4)

    print("KERNEL_OK")
</pallas_src>

<mosaic_0001>
module attributes {stable_mosaic.version = 11 : i64} {
  func.func @_film_kernel(%arg0: i32, %arg1: i32, %arg2: memref<1x256x32xf32, #tpu.memory_space<vmem>>, %arg3: memref<32x128xf32, #tpu.memory_space<vmem>>, %arg4: memref<1x128xf32, #tpu.memory_space<vmem>>, %arg5: memref<1x1x128xf32, #tpu.memory_space<vmem>>, %arg6: memref<1x1x128xf32, #tpu.memory_space<vmem>>, %arg7: memref<1x256x128xf32, #tpu.memory_space<vmem>>) attributes {dimension_semantics = [#tpu.dimension_semantics<parallel>, #tpu.dimension_semantics<parallel>], iteration_bounds = array<i64: 2, 1>, scalar_prefetch = 0 : i64, scratch_operands = 0 : i64, tpu.core_type = #tpu.core_type<tc>, window_params = [{transform_indices = @transform_0, window_bounds = array<i64: 1, 256, 32>}, {pipeline_mode = #tpu.pipeline_mode<synchronous>, transform_indices = @transform_1, window_bounds = array<i64: 32, 128>}, {pipeline_mode = #tpu.pipeline_mode<synchronous>, transform_indices = @transform_2, window_bounds = array<i64: 1, 128>}, {transform_indices = @transform_3, window_bounds = array<i64: 1, 1, 128>}, {transform_indices = @transform_4, window_bounds = array<i64: 1, 1, 128>}, {transform_indices = @transform_5, window_bounds = array<i64: 1, 256, 128>}]} {
    %c0 = arith.constant 0 : index
    %c0_0 = arith.constant 0 : index
    %c0_1 = arith.constant 0 : index
    %0 = vector.load %arg2[%c0, %c0_0, %c0_1] : memref<1x256x32xf32, #tpu.memory_space<vmem>>, vector<1x256x32xf32>
    %1 = vector.shape_cast %0 : vector<1x256x32xf32> to vector<256x32xf32>
    %c0_2 = arith.constant 0 : index
    %c0_3 = arith.constant 0 : index
    %2 = vector.load %arg3[%c0_2, %c0_3] : memref<32x128xf32, #tpu.memory_space<vmem>>, vector<32x128xf32>
    %cst = arith.constant dense<0.000000e+00> : vector<256x128xf32>
    %3 = tpu.matmul %1, %2, %cst {dimension_numbers = #tpu.dot_dimension_numbers<[1], [0], [0], [1], [0, 0, 1, 1], [], []>} : vector<256x32xf32>, vector<32x128xf32>, vector<256x128xf32> -> vector<256x128xf32>
    %c0_4 = arith.constant 0 : index
    %c0_5 = arith.constant 0 : index
    %4 = vector.load %arg4[%c0_4, %c0_5] : memref<1x128xf32, #tpu.memory_space<vmem>>, vector<1x128xf32>
    %5 = vector.broadcast %4 : vector<1x128xf32> to vector<256x128xf32>
    %6 = arith.addf %3, %5 : vector<256x128xf32>
    %c0_6 = arith.constant 0 : index
    %c0_7 = arith.constant 0 : index
    %c0_8 = arith.constant 0 : index
    %7 = vector.load %arg5[%c0_6, %c0_7, %c0_8] : memref<1x1x128xf32, #tpu.memory_space<vmem>>, vector<1x1x128xf32>
    %8 = vector.shape_cast %7 : vector<1x1x128xf32> to vector<1x128xf32>
    %9 = vector.broadcast %8 : vector<1x128xf32> to vector<256x128xf32>
    %10 = arith.mulf %9, %6 : vector<256x128xf32>
    %c0_9 = arith.constant 0 : index
    %c0_10 = arith.constant 0 : index
    %c0_11 = arith.constant 0 : index
    %11 = vector.load %arg6[%c0_9, %c0_10, %c0_11] : memref<1x1x128xf32, #tpu.memory_space<vmem>>, vector<1x1x128xf32>
    %12 = vector.shape_cast %11 : vector<1x1x128xf32> to vector<1x128xf32>
    %13 = vector.broadcast %12 : vector<1x128xf32> to vector<256x128xf32>
    %14 = arith.addf %10, %13 : vector<256x128xf32>
    %15 = math.sin %14 : vector<256x128xf32>
    %c0_12 = arith.constant 0 : index
    %c0_13 = arith.constant 0 : index
    %c0_14 = arith.constant 0 : index
    %16 = vector.load %arg7[%c0_12, %c0_13, %c0_14] : memref<1x256x128xf32, #tpu.memory_space<vmem>>, vector<1x256x128xf32>
    %17 = vector.shape_cast %16 : vector<1x256x128xf32> to vector<256x128xf32>
    %18 = vector.shape_cast %15 : vector<256x128xf32> to vector<1x256x128xf32>
    tpu.vector_store %arg7[%c0_12, %c0_13, %c0_14], %18 {strides = array<i32>} : memref<1x256x128xf32, #tpu.memory_space<vmem>>, vector<1x256x128xf32>,
    return
  }
  func.func @transform_0(%arg0: i32, %arg1: i32) -> (i32, i32, i32) {
    %c0_i32 = arith.constant 0 : i32
    %c0_i32_0 = arith.constant 0 : i32
    return %arg0, %arg1, %c0_i32 : i32, i32, i32
  }
  func.func @transform_1(%arg0: i32, %arg1: i32) -> (i32, i32) {
    %c0_i32 = arith.constant 0 : i32
    %c0_i32_0 = arith.constant 0 : i32
    %c0_i32_1 = arith.constant 0 : i32
    return %c0_i32, %c0_i32_0 : i32, i32
  }
  func.func @transform_2(%arg0: i32, %arg1: i32) -> (i32, i32) {
    %c0_i32 = arith.constant 0 : i32
    %c0_i32_0 = arith.constant 0 : i32
    %c0_i32_1 = arith.constant 0 : i32
    return %c0_i32, %c0_i32_0 : i32, i32
  }
  func.func @transform_3(%arg0: i32, %arg1: i32) -> (i32, i32, i32) {
    %c0_i32 = arith.constant 0 : i32
    %c0_i32_0 = arith.constant 0 : i32
    %c0_i32_1 = arith.constant 0 : i32
    return %arg0, %c0_i32, %c0_i32_0 : i32, i32, i32
  }
  func.func @transform_4(%arg0: i32, %arg1: i32) -> (i32, i32, i32) {
    %c0_i32 = arith.constant 0 : i32
    %c0_i32_0 = arith.constant 0 : i32
    %c0_i32_1 = arith.constant 0 : i32
    return %arg0, %c0_i32, %c0_i32_0 : i32, i32, i32
  }
  func.func @transform_5(%arg0: i32, %arg1: i32) -> (i32, i32, i32) {
    %c0_i32 = arith.constant 0 : i32
    %c0_i32_0 = arith.constant 0 : i32
    return %arg0, %arg1, %c0_i32 : i32, i32, i32
  }
}

</mosaic_0001>

<bundles_post_ra>
// kernel: tpu_custom_call.1
= control target key start
LH: loop header
LB: loop body
LE: loop exit
PB: predicated region body
PF: predicated region fallthrough
CT: control target
= control target key end

     0   :  { %10 = vsyncpa [#allocation3], 0  ;;  %s7790_s0 = inlined_call_operand.vmem [shape: f32[2,256,32], index: 0, kind: input, shape index: {}]   ;;  %s7791_s1 = inlined_call_operand.vmem [shape: f32[32,128], index: 1, kind: input, shape index: {}]   ;;  %s7792_s2 = inlined_call_operand.vmem [shape: f32[1,128], index: 2, kind: input, shape index: {}]   ;;  %s7793_s3 = inlined_call_operand.vmem [shape: f32[2,1,128], index: 3, kind: input, shape index: {}]   ;;  %s7794_s4 = inlined_call_operand.vmem [shape: f32[2,1,128], index: 4, kind: input, shape index: {}]   ;;  %s7795_s5 = inlined_call_operand.hbm [shape: f32[2,256,128], index: 5, kind: output, shape index: {}]  }
   0x1   :  { %12 = vsyncpa [#allocation3 + $0x1], 0  ;;  %s4927_s18 = smov 0   ;;  %s4929_s19 = smov 0  }
   0x2   :  { %s4931_s20 = smov 0   ;;  %s4933_s21 = smov 0  }
   0x3   :  { %s4935_s22 = smov 0   ;;  %s4937_s23 = smov 0  }
   0x4 LB: > { %s4198_s24 = sadd.s32 4294967295, %s4886_s23   ;;  %s4199_s25 = sadd.s32 4294967294, %s4886_s23   ;;  %s4886_s23 = sphi %s4937_s23, %s18_s23   ;;  %s4882_s22 = sphi %s4935_s22, %s7862_s22   ;;  %s4878_s21 = sphi %s4933_s21, %s7861_s21   ;;  %s4874_s20 = sphi %s4931_s20, %s7860_s20   ;;  %s4870_s19 = sphi %s4929_s19, %s7859_s19   ;;  %s4866_s18 = sphi %s4927_s18, %s7858_s18  }
   0x5   : > { %s30_s26 = sadd.s32 1, %s4882_s22  ;;  %s161_s27 = sadd.s32 1, %s4874_s20 }
   0x6   : > { %p32_p0 = scmp.ge.s32.totalorder %s30_s26, 2  ;;  %p171_p1 = scmp.ne.s32.totalorder %s4874_s20, %s4870_s19 }
   0x7   : > { %p172_p2 = scmp.eq.s32.totalorder %s4198_s24, 1  ;;  %p177_p3 = scmp.ne.s32.totalorder %s4870_s19, %s4866_s18 }
   0x8   : > { %s7864_s26 = smov (%p32_p0, %s30_s26), 0  ;;  %p178_p5 = scmp.eq.s32.totalorder %s4199_s25, 1 }
   0x9   : > { %p4967_p4 = por %p172_p2, %p171_p1  ;;  %s156_s29 = ssub.s32 %s4882_s22, %s7864_s26 }
   0xa   : > { %p4202_p6 = scmp.ge.s32.totalorder %s4886_s23, 1  ;;  %p159_p7 = scmp.eq.s32.totalorder %s156_s29, 0 }
   0xb   : > { %p4974_p8 = por %p178_p5, %p177_p3  ;;  %p227_p9 = scmp.lt.s32.totalorder %s4886_s23, 3 }
   0xc   : > { %s4980_s6 = scalar_select %p159_p7, %s4874_s20, %s161_s27  }
   0xd   : > { %p228_p10 = pnand %p4202_p6, %p227_p9 }
   0xe   : > { %p266_p11 = scmp.lt.s32.totalorder (!%p228_p10), %s4878_s21, 1  ;;  %s4375_s11 = sshll.u32 (!%p228_p10), %s4878_s21, 12 }
   0xf   : > { %231 = sbr.rel (%p228_p10) target bundleno = 1087 (0x43f), region = 40  ;;  %s7737_s17 = scalar_lea.hbm (!%p228_p10), %s7795_s5, %s4375_s11 }
  0x14   : > { %v317_v0 = vld [vmem:[%s7791_s1 + $0x18] sm:$0xff]  ;;  %v316_v1 = vld [vmem:[%s7791_s1 + $0x10] sm:$0xff]  ;;  %v315_v2 = vld [vmem:[%s7791_s1 + $0x8] sm:$0xff]  ;;  %s4993_s13 = scalar_select %p266_p11, %s4878_s21, 1  ;;  %vm325_vm0 = vcmask 261120  }
  0x15   : > { %4412 = vmatprep.subr.mxu0 %v317_v0  ;;  %4468 = vmatprep.subr.mxu1 %v317_v0  ;;  %v314_v3 = vld [vmem:[%s7791_s1] sm:$0xff] }
  0x16   : > { %4413 = vmatpush3.msra.mxu0 %v317_v0  ;;  %4472 = vmatpush3.msra.mxu1 %v317_v0  ;;  %s4374_s16 = sshll.u32 %s4993_s13, 8  ;;  %s5072_s7 = scalar_lea.vmem %s7793_s3, %s4993_s13  ;;  %v5077_v36 = vld [vmem:[%s7792_s2] ss:$0 sm:$0xff] }
  0x17   : > { %4414 = vmatprep.subr.mxu0 %v316_v1  ;;  %4469 = vmatprep.subr.mxu1 %v316_v1  ;;  %s5002_s25 = scalar_lea.vmem %s7790_s0, %s4374_s16  ;;  %s5083_s12 = scalar_lea.vmem %s7794_s4, %s4993_s13  ;;  %v5086_v38 = vld [vmem:[%s5072_s7] ss:$0 sm:$0xff] }
  0x18   : > { %4415 = vmatpush3.msra.mxu0 %v316_v1  ;;  %4473 = vmatpush3.msra.mxu1 %v316_v1  ;;  %v282_v4 = vld [vmem:[%s5002_s25] sm:$0xff]  ;;  %v283_v6 = vld [vmem:[%s5002_s25 + $0x8] sm:$0xff]  ;;  %v284_v8 = vld [vmem:[%s5002_s25 + $0x10] sm:$0xff]  ;;  %s262_s13 = sand.u32 1, %s4870_s19  }
  0x19   : > { %4416 = vmatprep.subr.mxu0 %v315_v2  ;;  %4470 = vmatprep.subr.mxu1 %v315_v2  ;;  %v298_v5 = vld [vmem:[%s5002_s25 + $0x80] sm:$0xff]  ;;  %v299_v7 = vld [vmem:[%s5002_s25 + $0x88] sm:$0xff]  ;;  %v300_v9 = vld [vmem:[%s5002_s25 + $0x90] sm:$0xff]  ;;  %s4203_s14 = sshll.u32 %s262_s13, 8  ;;  %s7745_s21 = scalar_lea.sflag [#allocation3], %s262_s13 }
  0x1a   : > { %4417 = vmatpush3.msra.mxu0 %v315_v2  ;;  %4474 = vmatpush3.msra.mxu1 %v315_v2  ;;  %v285_v10 = vld [vmem:[%s5002_s25 + $0x18] sm:$0xff]  ;;  %v286_v12 = vld [vmem:[%s5002_s25 + $0x20] sm:$0xff]  ;;  %v287_v14 = vld [vmem:[%s5002_s25 + $0x28] sm:$0xff]  ;;  %s5408_s15 = scalar_lea.vmem [#allocation2], %s4203_s14 }
  0x1b   : > { %4418 = vmatprep.subr.mxu0 %v314_v3  ;;  %4471 = vmatprep.subr.mxu1 %v314_v3  ;;  %v301_v11 = vld [vmem:[%s5002_s25 + $0x98] sm:$0xff]  ;;  %v302_v13 = vld [vmem:[%s5002_s25 + $0xa0] sm:$0xff]  ;;  %v303_v15 = vld [vmem:[%s5002_s25 + $0xa8] sm:$0xff] }
  0x1c   : > { %4419 = vmatpush3.msra.mxu0 %v314_v3  ;;  %4475 = vmatpush3.msra.mxu1 %v314_v3  ;;  %v288_v16 = vld [vmem:[%s5002_s25 + $0x30] sm:$0xff]  ;;  %v289_v18 = vld [vmem:[%s5002_s25 + $0x38] sm:$0xff]  ;;  %v290_v20 = vld [vmem:[%s5002_s25 + $0x40] sm:$0xff] }
  0x1d   : > { %4420 = vmatprep.mubr.msk.f32.mxu0 %vm325_vm0, %v282_v4  ;;  %4444 = vmatprep.mubr.msk.f32.mxu1 %vm325_vm0, %v298_v5  ;;  %v304_v17 = vld [vmem:[%s5002_s25 + $0xb0] sm:$0xff]  ;;  %v305_v19 = vld [vmem:[%s5002_s25 + $0xb8] sm:$0xff]  ;;  %v306_v21 = vld [vmem:[%s5002_s25 + $0xc0] sm:$0xff] }
  0x1e   : > { %4421 = vmatmul.mubr.msk.f32.vlgmr.msra.gmra.mxu0 %vm325_vm0, %v283_v6  ;;  %4445 = vmatmul.mubr.msk.f32.vlgmr.msra.gmra.mxu1 %vm325_vm0, %v299_v7  ;;  %v291_v22 = vld [vmem:[%s5002_s25 + $0x48] sm:$0xff]  ;;  %v292_v24 = vld [vmem:[%s5002_s25 + $0x50] sm:$0xff]  ;;  %v293_v26 = vld [vmem:[%s5002_s25 + $0x58] sm:$0xff] }
  0x1f   : > { %4423 = vmatprep.mubr.msk.f32.mxu0 %vm325_vm0, %v284_v8  ;;  %4447 = vmatprep.mubr.msk.f32.mxu1 %vm325_vm0, %v300_v9  ;;  %v307_v23 = vld [vmem:[%s5002_s25 + $0xc8] sm:$0xff]  ;;  %v308_v25 = vld [vmem:[%s5002_s25 + $0xd0] sm:$0xff]  ;;  %v309_v27 = vld [vmem:[%s5002_s25 + $0xd8] sm:$0xff] }
  0x20   : > { %v294_v28 = vld [vmem:[%s5002_s25 + $0x60] sm:$0xff]  ;;  %v295_v30 = vld [vmem:[%s5002_s25 + $0x68] sm:$0xff]  ;;  %v296_v32 = vld [vmem:[%s5002_s25 + $0x70] sm:$0xff] }
  0x21   : > { %v310_v29 = vld [vmem:[%s5002_s25 + $0xe0] sm:$0xff]  ;;  %v311_v31 = vld [vmem:[%s5002_s25 + $0xe8] sm:$0xff]  ;;  %v312_v33 = vld [vmem:[%s5002_s25 + $0xf0] sm:$0xff] }
  0x22   : > { %4424 = vmatmul.mubr.msk.f32.gmra.mxu0 %vm325_vm0, %v285_v10  ;;  %4448 = vmatmul.mubr.msk.f32.gmra.mxu1 %vm325_vm0, %v301_v11  ;;  %v297_v34 = vld [vmem:[%s5002_s25 + $0x78] sm:$0xff]  ;;  %v5091_v42 = vld [vmem:[%s5083_s12] ss:$0 sm:$0xff] }
  0x23   : > { %4426 = vmatprep.mubr.msk.f32.mxu0 %vm325_vm0, %v286_v12  ;;  %4450 = vmatprep.mubr.msk.f32.mxu1 %vm325_vm0, %v302_v13  ;;  %v313_v35 = vld [vmem:[%s5002_s25 + $0xf8] sm:$0xff]  ;;  %s4894_s25 = smov [#allocation2]  }
  0x24   : > { %s4814_s27 = sshll.u32 %s4894_s25, 4  ;;  %s4815_s27 = int_to_ptr.vmem [resolvable:$false] %s4814_s27 }
  0x25   : > { %s4816_s29 = scalar_lea.vmem %s4815_s27, 8192 }
  0x26   : > { %4427 = vmatmul.mubr.msk.f32.gmra.mxu0 %vm325_vm0, %v287_v14  ;;  %4451 = vmatmul.mubr.msk.f32.gmra.mxu1 %vm325_vm0, %v303_v15 }
  0x27   : > { %4429 = vmatprep.mubr.msk.f32.mxu0 %vm325_vm0, %v288_v16  ;;  %4453 = vmatprep.mubr.msk.f32.mxu1 %vm325_vm0, %v304_v17 }
  0x2a   : > { %4430 = vmatmul.mubr.msk.f32.gmra.mxu0 %vm325_vm0, %v289_v18  ;;  %4454 = vmatmul.mubr.msk.f32.gmra.mxu1 %vm325_vm0, %v305_v19  ;;  %v4888_v18 = vmov 683565275  }
  0x2b   : > { %4432 = vmatprep.mubr.msk.f32.mxu0 %vm325_vm0, %v290_v20  ;;  %4456 = vmatprep.mubr.msk.f32.mxu1 %vm325_vm0, %v306_v21 }
  0x2e   : > { %4433 = vmatmul.mubr.msk.f32.gmra.mxu0 %vm325_vm0, %v291_v22  ;;  %4457 = vmatmul.mubr.msk.f32.gmra.mxu1 %vm325_vm0, %v307_v23  ;;  %v4889_v22 = vmov 2475754826  }
  0x2f   : > { %4435 = vmatprep.mubr.msk.f32.mxu0 %vm325_vm0, %v292_v24  ;;  %4459 = vmatprep.mubr.msk.f32.mxu1 %vm325_vm0, %v308_v25  ;;  %v4890_v24 = vmov 2131351028  }
  0x32   : > { %4436 = vmatmul.mubr.msk.f32.gmra.mxu0 %vm325_vm0, %v293_v26  ;;  %4460 = vmatmul.mubr.msk.f32.gmra.mxu1 %vm325_vm0, %v309_v27  ;;  %v4891_v26 = vmov 2102212464  }
  0x33   : > { %4438 = vmatprep.mubr.msk.f32.mxu0 %vm325_vm0, %v294_v28  ;;  %4462 = vmatprep.mubr.msk.f32.mxu1 %vm325_vm0, %v310_v29  ;;  %v4892_v28 = vmov 920167782  }
  0x36   : > { %4439 = vmatmul.mubr.msk.f32.gmra.mxu0 %vm325_vm0, %v295_v30  ;;  %4463 = vmatmul.mubr.msk.f32.gmra.mxu1 %vm325_vm0, %v311_v31 }
  0x37   : > { %4441 = vmatprep.mubr.msk.f32.mxu0 %vm325_vm0, %v296_v32  ;;  %4465 = vmatprep.mubr.msk.f32.mxu1 %vm325_vm0, %v312_v33 }
  0x3a   : > { %4442 = vmatmul.mubr.msk.f32.gmra.mxu0 %vm325_vm0, %v297_v34  ;;  %4466 = vmatmul.mubr.msk.f32.gmra.mxu1 %vm325_vm0, %v313_v35  ;;  %v4893_v35 = vmov 1326507024  }
  0xde   : > { %v4422_v37 = vpop.f32.mrf.mxu0  ;;  %v4446_v39 = vpop.f32.mrf.mxu1 }
  0xdf   : > { %v494_v40 = vadd.f32 %v4422_v37, %v5077_v36  ;;  %v574_v41 = vadd.f32 %v4446_v39, %v5077_v36 }
  0xe0   : > { %v488_v43 = vpop.f32.mrf.mxu0  ;;  %v568_v50 = vpop.f32.mrf.mxu1 }
  0xe1   : > { %v655_v44 = vmul.f32 %v5086_v38, %v494_v40  ;;  %v671_v45 = vmul.f32 %v5086_v38, %v574_v41  ;;  %v489_v46 = vadd.f32 %v5077_v36, %v488_v43  ;;  %v569_v58 = vadd.f32 %v5077_v36, %v568_v50 }
  0xe3   : > { %v5097_v47 = vadd.f32 %v5091_v42, %v655_v44  ;;  %v5100_v48 = vadd.f32 %v5091_v42, %v671_v45  ;;  %v654_v49 = vmul.f32 %v5086_v38, %v489_v46  ;;  %v670_v2 = vmul.f32 %v5086_v38, %v569_v58 }
  0xe5   : > { %v829_v51 = vand.u32 2147483647, %v5097_v47  ;;  %v832_v52 = vand.u32 2139095040, %v5097_v47  ;;  %v2493_v53 = vand.u32 2147483647, %v5100_v48  ;;  %v2496_v54 = vand.u32 2139095040, %v5100_v48 }
  0xe6   : > { %v5110_v57 = vadd.f32 %v5091_v42, %v654_v49  ;;  %v5119_v12 = vadd.f32 %v5091_v42, %v670_v2  ;;  %vm831_vm14 = vcmp.lt.s32.totalorder %v5097_v47, 0 }
  0xe7   : > { %v833_v55 = vshrl.u32 %v832_v52, 23  ;;  %v836_v56 = vand.u32 8388607, %v829_v51  ;;  %v2497_v59 = vshrl.u32 %v2496_v54, 23  ;;  %v2500_v60 = vand.u32 8388607, %v2493_v53 }
  0xe8   : > { %v728_v63 = vand.u32 2139095040, %v5110_v57  ;;  %v725_v5 = vand.u32 2147483647, %v5110_v57  ;;  %vm5227_vm15 = vcmp.le.f32.partialorder %v829_v51, 0.7853982 }
  0xe9   : > { %v4245_v61 = vadd.s32 4294967169, %v833_v55  ;;  %v4309_v62 = vadd.s32 4294967169, %v2497_v59  ;;  %v837_v0 = vor.u32 8388608, %v836_v56  ;;  %v2501_v3 = vor.u32 8388608, %v2500_v60 }
  0xea   : > { %v729_v6 = vshrl.u32 %v728_v63, 23  ;;  %v5129_v16 = vand.u32 8388607, %v725_v5 }
  0xeb   : > { %v839_v1 = vadd.s32 1, %v4245_v61  ;;  %v2503_v4 = vadd.s32 1, %v4309_v62  ;;  %v5121_v13 = vshll.u32 %v837_v0, 8  ;;  %v5125_v15 = vshll.u32 %v2501_v3, 8 }
  0xec   : > { %v4241_v8 = vadd.s32 4294967169, %v729_v6 }
  0xed   : > { %vm840_vm1 = vcmp.gt.s32.totalorder %v839_v1, 0  ;;  %vm2504_vm2 = vcmp.gt.s32.totalorder %v2503_v4, 0 }
  0xee   : > { %v841_v7 = vsel %vm840_vm1, %v839_v1, 0  ;;  %v2505_v11 = vsel %vm2504_vm2, %v2503_v4, 0  ;;  %v5132_v21 = vadd.s32 1, %v4241_v8 }
  0xef   : > { %v842_v9 = vshrl.u32 %v841_v7, 5  ;;  %v843_v10 = vand.u32 31, %v841_v7  ;;  %v5123_v14 = vshrl.u32 %v2505_v11, 5  ;;  %v2507_v20 = vand.u32 31, %v2505_v11 }
  0xf0   : > { %vm736_vm12 = vcmp.gt.s32.totalorder %v5132_v21, 0 }
  0xf1   : > { %v844_v17 = vsub.s32 32, %v843_v10  ;;  %v846_v19 = vshll.u32 %v4888_v18, %v843_v10  ;;  %v849_v23 = vshll.u32 %v4889_v22, %v843_v10  ;;  %v852_v25 = vshll.u32 %v4890_v24, %v843_v10 }
  0xf2   : > { %v855_v27 = vshll.u32 %v4891_v26, %v843_v10  ;;  %v858_v29 = vshll.u32 %v4892_v28, %v843_v10  ;;  %vm861_vm3 = vcmp.lt.s32.totalorder %v842_v9, 1  ;;  %vm862_vm4 = vcmp.lt.s32.totalorder %v842_v9, 2 }
  0xf3   : > { %v847_v30 = vshrl.u32 %v4889_v22, %v844_v17  ;;  %v850_v31 = vshrl.u32 %v4890_v24, %v844_v17  ;;  %v853_v32 = vshrl.u32 %v4891_v26, %v844_v17  ;;  %v845_v33 = vshrl.u32 %v4888_v18, %v844_v17 }
  0xf4   : > { %v856_v34 = vshrl.u32 %v4892_v28, %v844_v17  ;;  %v859_v37 = vshrl.u32 %v4893_v35, %v844_v17  ;;  %v2508_v43 = vsub.s32 32, %v2507_v20  ;;  %vm863_vm5 = vcmp.lt.s32.totalorder %v842_v9, 3 }
  0xf5   : > { %v848_v39 = vor.u32 %v847_v30, %v846_v19  ;;  %v851_v40 = vor.u32 %v850_v31, %v849_v23  ;;  %v854_v41 = vor.u32 %v853_v32, %v852_v25  ;;  %vm864_vm6 = vcmp.lt.s32.totalorder %v842_v9, 4 }
  0xf6   : > { %v857_v44 = vor.u32 %v856_v34, %v855_v27  ;;  %v860_v45 = vor.u32 %v859_v37, %v858_v29  ;;  %v2510_v58 = vshll.u32 %v4888_v18, %v2507_v20  ;;  %v2511_v61 = vshrl.u32 %v4889_v22, %v2508_v43 }
  0xf7   : > { %v865_v46 = vsel %vm861_vm3, %v845_v33, %v848_v39  ;;  %v866_v49 = vsel %vm864_vm6, %v854_v41, 2102212464  ;;  %v869_v50 = vsel %vm861_vm3, %v848_v39, %v851_v40  ;;  %v873_v52 = vsel %vm861_vm3, %v851_v40, %v854_v41 }
  0xf8   : > { %v867_v54 = vsel %vm863_vm5, %v851_v40, %v866_v49  ;;  %v870_v55 = vsel %vm864_vm6, %v857_v44, 920167782  ;;  %v874_v56 = vsel %vm864_vm6, %v860_v45, 1326507024  ;;  %v2513_v62 = vshll.u32 %v4889_v22, %v2507_v20 }
  0xf9   : > { %v871_v59 = vsel %vm863_vm5, %v854_v41, %v870_v55  ;;  %v875_v60 = vsel %vm863_vm5, %v857_v44, %v874_v56  ;;  %v868_v63 = vsel %vm862_vm4, %v865_v46, %v867_v54  ;;  %v2514_v2 = vshrl.u32 %v4890_v24, %v2508_v43 }
  0xfa   : > { %v872_v0 = vsel %vm862_vm4, %v869_v50, %v871_v59  ;;  %v876_v1 = vsel %vm862_vm4, %v873_v52, %v875_v60  ;;  %v2512_v8 = vor.u32 %v2511_v61, %v2510_v58  ;;  %v2516_v11 = vshll.u32 %v4890_v24, %v2507_v20 }
  0xfb   : > { %v5155_v3 = vmul.u32.u64.low %v5121_v13, %v876_v1  ;;  %v5156_v4 = vmul.u32.u64.high %v5121_v13, %v876_v1, %v5155_v3  ;;  %v5159_v6 = vmul.u32.u64.low %v5121_v13, %v872_v0  ;;  %v5160_v7 = vmul.u32.u64.high %v5121_v13, %v872_v0, %v5159_v6 }
  0xfc   : > { %v2515_v10 = vor.u32 %v2514_v2, %v2513_v62  ;;  %v2517_v17 = vshrl.u32 %v4891_v26, %v2508_v43  ;;  %v2509_v19 = vshrl.u32 %v4888_v18, %v2508_v43  ;;  %v2519_v9 = vshll.u32 %v4891_v26, %v2507_v20  ;;  %v4425_v3 = vpop.f32.mrf.mxu0 }
  0xfd   : > { %v2520_v23 = vshrl.u32 %v4892_v28, %v2508_v43  ;;  %v2523_v25 = vshrl.u32 %v4893_v35, %v2508_v43  ;;  %v884_v27 = vmul.u32 %v5121_v13, %v868_v63  ;;  %v2522_v30 = vshll.u32 %v4892_v28, %v2507_v20 }
  0xfe   : > { %v2518_v29 = vor.u32 %v2517_v17, %v2516_v11  ;;  %vm2525_vm7 = vcmp.lt.s32.totalorder %v5123_v14, 1  ;;  %vm886_vm8 = vc.u32 %v5156_v4, %v5159_v6  ;;  %v887_v31 = vadd.s32 1, %v5160_v7 }
  0xff   : > { %v2521_v32 = vor.u32 %v2520_v23, %v2519_v9  ;;  %vm2526_vm9 = vcmp.lt.s32.totalorder %v5123_v14, 2  ;;  %v2524_v33 = vor.u32 %v2523_v25, %v2522_v30  ;;  %vm2527_vm10 = vcmp.lt.s32.totalorder %v5123_v14, 3 }
 0x100   : > { %vm2528_vm11 = vcmp.lt.s32.totalorder %v5123_v14, 4  ;;  %v2533_v34 = vsel %vm2525_vm7, %v2512_v8, %v2515_v10  ;;  %v888_v13 = vsel %vm886_vm8, %v887_v31, %v5160_v7  ;;  %v2537_v20 = vsel %vm2525_vm7, %v2515_v10, %v2518_v29 }
 0x101   : > { %v2530_v37 = vsel %vm2528_vm11, %v2518_v29, 2102212464  ;;  %v2534_v39 = vsel %vm2528_vm11, %v2521_v32, 920167782  ;;  %v889_v40 = vadd.s32 %v888_v13, %v884_v27  ;;  %v2529_v41 = vsel %vm2525_vm7, %v2509_v19, %v2512_v8 }
 0x102   : > { %v2535_v43 = vsel %vm2527_vm10, %v2518_v29, %v2534_v39  ;;  %v2538_v44 = vsel %vm2528_vm11, %v2524_v33, 1326507024  ;;  %v2531_v45 = vsel %vm2527_vm10, %v2515_v10, %v2530_v37  ;;  %v737_v59 = vsel %vm736_vm12, %v5132_v21, 0 }
 0x103   : > { %v2536_v46 = vsel %vm2526_vm9, %v2533_v34, %v2535_v43  ;;  %v2539_v49 = vsel %vm2527_vm10, %v2521_v32, %v2538_v44  ;;  %v890_v50 = vadd.s32 536870912, %v889_v40  ;;  %v2532_v61 = vsel %vm2526_vm9, %v2529_v41, %v2531_v45 }
 0x104   : > { %v2540_v52 = vsel %vm2526_vm9, %v2537_v20, %v2539_v49  ;;  %v5183_v54 = vmul.u32.u64.low %v5125_v15, %v2536_v46  ;;  %v5184_v55 = vmul.u32.u64.high %v5125_v15, %v2536_v46, %v5183_v54  ;;  %v739_v62 = vand.u32 31, %v737_v59 }
 0x105   : > { %v5188_v56 = vmul.u32.u64.low %v5125_v15, %v2540_v52  ;;  %v5189_v58 = vmul.u32.u64.high %v5125_v15, %v2540_v52, %v5188_v56  ;;  %v891_v60 = vshrl.u32 %v890_v50, 30  ;;  %v2392_v63 = vand.u32 2139095040, %v5119_v12 }
 0x106   : > { %v2551_v1 = vadd.s32 1, %v5184_v55  ;;  %v733_v2 = vor.u32 8388608, %v5129_v16  ;;  %v2548_v7 = vmul.u32 %v5125_v15, %v2532_v61  ;;  %v740_v8 = vsub.s32 32, %v739_v62 }
 0x107   : > { %v892_v0 = vshll.u32 %v891_v60, 30  ;;  %vm2550_vm13 = vc.u32 %v5189_v58, %v5183_v54  ;;  %v2393_v10 = vshrl.u32 %v2392_v63, 23  ;;  %v5205_v17 = vadd.f32 %v4425_v3, %v5077_v36 }
 0x108   : > { %v2552_v14 = vsel %vm2550_vm13, %v2551_v1, %v5184_v55  ;;  %v885_v16 = vadd.s32 %v5159_v6, %v5156_v4  ;;  %v5209_v15 = vshll.u32 %v733_v2, 8  ;;  %v2389_v9 = vand.u32 2147483647, %v5119_v12 }
 0x109   : > { %v5200_v21 = vsub.s32 %v889_v40, %v892_v0  ;;  %v2553_v11 = vadd.s32 %v2552_v14, %v2548_v7  ;;  %v5212_v25 = vshrl.u32 %v737_v59, 5  ;;  %v743_v27 = vshrl.u32 %v4889_v22, %v740_v8 }
 0x10a   : > { %v746_v29 = vshrl.u32 %v4890_v24, %v740_v8  ;;  %v749_v31 = vshrl.u32 %v4891_v26, %v740_v8  ;;  %v752_v32 = vshrl.u32 %v4892_v28, %v740_v8  ;;  %v5219_v4 = vadd.s32 4294967169, %v2393_v10 }
 0x10b   : > { %v895_v19 = vsub.s32 0, %v5200_v21  ;;  %v2554_v23 = vadd.s32 536870912, %v2553_v11  ;;  %v915_v6 = vsub.s32 4, %v891_v60  ;;  %v742_v34 = vshll.u32 %v4888_v18, %v739_v62 }
 0x10c   : > { %v745_v13 = vshll.u32 %v4889_v22, %v739_v62  ;;  %v748_v20 = vshll.u32 %v4890_v24, %v739_v62  ;;  %v751_v40 = vshll.u32 %v4891_v26, %v739_v62  ;;  %v755_v41 = vshrl.u32 %v4893_v35, %v740_v8 }
 0x10d   : > { %v4246_v30 = vmin.u32 %v895_v19, %v5200_v21  ;;  %v5221_v33 = vshrl.u32 %v2554_v23, 30  ;;  %v744_v44 = vor.u32 %v743_v27, %v742_v34  ;;  %v5237_v46 = vand.u32 8388607, %v2389_v9 }
 0x10e   : > { %v747_v45 = vor.u32 %v746_v29, %v745_v13  ;;  %v750_v51 = vor.u32 %v749_v31, %v748_v20  ;;  %v753_v50 = vor.u32 %v752_v32, %v751_v40  ;;  %v754_v52 = vshll.u32 %v4892_v28, %v739_v62 }
 0x10f   : > { %v897_v39 = vclz %v4246_v30  ;;  %v2556_v43 = vshll.u32 %v5221_v33, 30  ;;  %v916_v55 = vsel %vm831_vm14, %v915_v6, %v891_v60  ;;  %v741_v59 = vshrl.u32 %v4888_v18, %v740_v8 }
 0x110   : > { %vm757_vm0 = vcmp.lt.s32.totalorder %v5212_v25, 1  ;;  %v756_v61 = vor.u32 %v755_v41, %v754_v52  ;;  %vm758_vm2 = vcmp.lt.s32.totalorder %v5212_v25, 2  ;;  %vm759_vm3 = vcmp.lt.s32.totalorder %v5212_v25, 3 }
 0x111   : > { %v4247_v49 = vadd.s32 4294967294, %v897_v39  ;;  %v5242_v56 = vsub.s32 %v2553_v11, %v2556_v43  ;;  %vm2495_vm4 = vcmp.lt.s32.totalorder %v5100_v48, 0  ;;  %vm760_vm5 = vcmp.lt.s32.totalorder %v5212_v25, 4 }
 0x112   : > { %v765_v60 = vsel %vm757_vm0, %v744_v44, %v747_v45  ;;  %v762_v2 = vsel %vm760_vm5, %v750_v51, 2102212464  ;;  %v766_v3 = vsel %vm760_vm5, %v753_v50, 920167782  ;;  %v769_v10 = vsel %vm757_vm0, %v747_v45, %v750_v51 }
 0x113   : > { %vm4248_vm1 = vcmp.lt.s32.totalorder %v4247_v49, 0  ;;  %v2559_v62 = vsub.s32 0, %v5242_v56  ;;  %v767_v14 = vsel %vm759_vm3, %v750_v51, %v766_v3  ;;  %v770_v27 = vsel %vm760_vm5, %v756_v61, 1326507024 }
 0x114   : > { %v900_v63 = vsel %vm4248_vm1, 0, %v4247_v49  ;;  %v768_v23 = vsel %vm758_vm2, %v765_v60, %v767_v14  ;;  %v918_v29 = vsel %vm5227_vm15, 0, %v916_v55  ;;  %vm5265_vm6 = vcmp.le.f32.partialorder %v2493_v53, 0.7853982 }
 0x115   : > { %v901_v0 = vsub.s32 32, %v900_v63  ;;  %v905_v1 = vsub.s32 4294967266, %v900_v63  ;;  %v902_v7 = vshll.u32 %v5200_v21, %v900_v63  ;;  %v4310_v8 = vmin.u32 %v2559_v62, %v5242_v56 }
 0x116   : > { %v761_v31 = vsel %vm757_vm0, %v741_v59, %v744_v44  ;;  %v2579_v34 = vsub.s32 4, %v5221_v33  ;;  %v771_v13 = vsel %vm759_vm3, %v753_v50, %v770_v27  ;;  %v922_v49 = vadd.s32 3, %v918_v29 }
 0x117   : > { %v903_v11 = vshrl.u32 %v885_v16, %v901_v0  ;;  %v906_v19 = vadd.s32 127, %v905_v1  ;;  %v2561_v30 = vclz %v4310_v8  ;;  %v763_v16 = vsel %vm759_vm3, %v747_v45, %v762_v2 }
 0x118   : > { %v772_v53 = vsel %vm758_vm2, %v769_v10, %v771_v13  ;;  %v5279_v20 = vmul.u32.u64.low %v5209_v15, %v768_v23  ;;  %v5280_v40 = vmul.u32.u64.high %v5209_v15, %v768_v23, %v5279_v20  ;;  %v764_v43 = vsel %vm758_vm2, %v761_v31, %v763_v16 }
 0x119   : > { %v904_v32 = vor.u32 %v903_v11, %v902_v7  ;;  %v907_v6 = vshll.u32 %v906_v19, 23  ;;  %v4311_v39 = vadd.s32 4294967294, %v2561_v30  ;;  %v2549_v51 = vadd.s32 %v5183_v54, %v5189_v58  ;;  %v4449_v54 = vpop.f32.mrf.mxu1 }
 0x11a   : > { %v5286_v44 = vmul.u32.u64.low %v5209_v15, %v772_v53  ;;  %v5287_v45 = vmul.u32.u64.high %v5209_v15, %v772_v53, %v5286_v44  ;;  %v2399_v50 = vadd.s32 1, %v5219_v4  ;;  %v2580_v61 = vsel %vm2495_vm4, %v2579_v34, %v5221_v33 }
 0x11b   : > { %v908_v41 = vor.u32 4788187, %v907_v6  ;;  %vm4312_vm7 = vcmp.lt.s32.totalorder %v4311_v39, 0  ;;  %v911_v55 = vcvt.s32.f32 %v904_v32  ;;  %v780_v62 = vmul.u32 %v5209_v15, %v764_v43 }
 0x11c   : > { %v2564_v59 = vsel %vm4312_vm7, 0, %v4311_v39  ;;  %v783_v60 = vadd.s32 1, %v5280_v40  ;;  %vm782_vm8 = vc.u32 %v5287_v45, %v5279_v20  ;;  %vm2400_vm9 = vcmp.gt.s32.totalorder %v2399_v50, 0 }
 0x11d   : > { %v909_v52 = vand.u32 2147483647, %v908_v41  ;;  %v2565_v25 = vsub.s32 32, %v2564_v59  ;;  %v2569_v63 = vsub.s32 4294967266, %v2564_v59  ;;  %v2566_v1 = vshll.u32 %v5242_v56, %v2564_v59 }
 0x11e   : > { %v784_v2 = vsel %vm782_vm8, %v783_v60, %v5280_v40  ;;  %v2401_v3 = vsel %vm2400_vm9, %v2399_v50, 0  ;;  %v2582_v7 = vsel %vm5265_vm6, 0, %v2580_v61  ;;  %v584_v56 = vadd.f32 %v4449_v54, %v5077_v36 }
 0x11f   : > { %v912_v0 = vmul.f32 %v911_v55, %v909_v52  ;;  %v2567_v58 = vshrl.u32 %v2549_v51, %v2565_v25  ;;  %v2570_v4 = vadd.s32 127, %v2569_v63  ;;  %v785_v15 = vadd.s32 %v784_v2, %v780_v62 }
 0x120   : > { %v2403_v8 = vand.u32 31, %v2401_v3  ;;  %v657_v27 = vmul.f32 %v5086_v38, %v5205_v17  ;;  %v5311_v30 = vand.u32 3, %v922_v49  ;;  %v2586_v16 = vadd.s32 3, %v2582_v7 }
 0x121   : > { %v913_v33 = vxor.u32 2147483648, %v912_v0  ;;  %v2568_v14 = vor.u32 %v2567_v58, %v2566_v1  ;;  %v2571_v10 = vshll.u32 %v2570_v4, 23  ;;  %v786_v19 = vadd.s32 536870912, %v785_v15 }
 0x122   : > { %v2404_v23 = vsub.s32 32, %v2403_v8  ;;  %v2397_v6 = vor.u32 8388608, %v5237_v46  ;;  %v5319_v37 = vshrl.u32 %v2401_v3, 5  ;;  %v2406_v40 = vshll.u32 %v4888_v18, %v2403_v8 }
 0x123   : > { %v914_v11 = vsel %vm831_vm14, %v913_v33, %v912_v0  ;;  %v2572_v31 = vor.u32 4788187, %v2571_v10  ;;  %v5313_v32 = vshrl.u32 %v786_v19, 30  ;;  %v2575_v39 = vcvt.s32.f32 %v2568_v14 }
 0x124   : > { %v917_v29 = vsel %vm5227_vm15, %v5097_v47, %v914_v11  ;;  %v2407_v34 = vshrl.u32 %v4889_v22, %v2404_v23  ;;  %v2410_v17 = vshrl.u32 %v4890_v24, %v2404_v23  ;;  %v2413_v41 = vshrl.u32 %v4891_v26, %v2404_v23 }
 0x125   : > { %4667 = vcosq.f32 %v917_v29  ;;  %v2573_v13 = vand.u32 2147483647, %v2572_v31  ;;  %v788_v53 = vshll.u32 %v5313_v32, 30  ;;  %v2409_v44 = vshll.u32 %v4889_v22, %v2403_v8 }
 0x126   : > { %4669 = vsinq.f32 %v917_v29  ;;  %v2415_v46 = vshll.u32 %v4891_v26, %v2403_v8  ;;  %v2416_v49 = vshrl.u32 %v4892_v28, %v2404_v23  ;;  %v2408_v50 = vor.u32 %v2407_v34, %v2406_v40 }
 0x127   : > { %v2576_v43 = vmul.f32 %v2575_v39, %v2573_v13  ;;  %v5326_v51 = vsub.s32 %v785_v15, %v788_v53  ;;  %v2412_v52 = vshll.u32 %v4890_v24, %v2403_v8  ;;  %v5330_v55 = vmul.f32 %v5086_v38, %v584_v56 }
 0x128   : > { %v2411_v61 = vor.u32 %v2410_v17, %v2409_v44  ;;  %v2417_v25 = vor.u32 %v2416_v49, %v2415_v46  ;;  %v2419_v63 = vshrl.u32 %v4893_v35, %v2404_v23  ;;  %v5333_v62 = vand.u32 3, %v2586_v16 }
 0x129   : > { %v2577_v59 = vxor.u32 2147483648, %v2576_v43  ;;  %v791_v60 = vsub.s32 0, %v5326_v51  ;;  %v2414_v0 = vor.u32 %v2413_v41, %v2412_v52  ;;  %v2418_v1 = vshll.u32 %v4892_v28, %v2403_v8 }
 0x12a   : > { %vm928_vm10 = vcmp.eq.s32.totalorder %v5311_v30, 2  ;;  %vm2421_vm11 = vcmp.lt.s32.totalorder %v5319_v37, 1  ;;  %v5341_v38 = vshll.u32 %v2397_v6, 8  ;;  %v5344_v58 = vadd.f32 %v5091_v42, %v657_v27 }
 0x12b   : > { %v2578_v54 = vsel %vm2495_vm4, %v2577_v59, %v2576_v43  ;;  %vm925_vm12 = vcmp.eq.s32.totalorder %v5311_v30, 0  ;;  %vm727_vm13 = vcmp.lt.s32.totalorder %v5110_v57, 0  ;;  %v4242_v2 = vmin.u32 %v791_v60, %v5326_v51 }
 0x12c   : > { %v2581_v4 = vsel %vm5265_vm6, %v5100_v48, %v2578_v54  ;;  %v2420_v3 = vor.u32 %v2419_v63, %v2418_v1  ;;  %vm2424_vm14 = vcmp.lt.s32.totalorder %v5319_v37, 4  ;;  %vm924_vm15 = vcmp.lt.s32.totalorder %v5311_v30, 2 }
 0x12d   : > { %4671 = vcosq.f32 %v2581_v4  ;;  %v2405_v33 = vshrl.u32 %v4888_v18, %v2404_v23  ;;  %v2429_v7 = vsel %vm2421_vm11, %v2408_v50, %v2411_v61  ;;  %v2430_v21 = vsel %vm2424_vm14, %v2417_v25, 920167782 }
 0x12e   : > { %vm921_vm0 = vweird.f32 %v5097_v47  ;;  %4673 = vsinq.f32 %v2581_v4  ;;  %v793_v15 = vclz %v4242_v2  ;;  %vm2423_vm1 = vcmp.lt.s32.totalorder %v5319_v37, 3 }
 0x12f   : > { %v2426_v8 = vsel %vm2424_vm14, %v2414_v0, 2102212464  ;;  %v811_v14 = vsub.s32 4, %v5313_v32  ;;  %vm2422_vm2 = vcmp.lt.s32.totalorder %v5319_v37, 2  ;;  %v2431_v10 = vsel %vm2423_vm1, %v2414_v0, %v2430_v21 }
 0x130   : > { %v2433_v56 = vsel %vm2421_vm11, %v2411_v61, %v2414_v0  ;;  %v4243_v11 = vadd.s32 4294967294, %v793_v15  ;;  %v2425_v19 = vsel %vm2421_vm11, %v2405_v33, %v2408_v50  ;;  %v2432_v23 = vsel %vm2422_vm2, %v2429_v7, %v2431_v10 }
 0x131   : > { %v2434_v27 = vsel %vm2424_vm14, %v2420_v3, 1326507024  ;;  %v2427_v31 = vsel %vm2423_vm1, %v2411_v61, %v2426_v8  ;;  %v5375_v6 = vmul.u32.u64.low %v5341_v38, %v2432_v23  ;;  %v5376_v34 = vmul.u32.u64.high %v5341_v38, %v2432_v23, %v5375_v6 }
 0x132   : > { %v4668_v29 = vpop.eup %4667  ;;  %v2435_v16 = vsel %vm2423_vm1, %v2417_v25, %v2434_v27  ;;  %v781_v17 = vadd.s32 %v5279_v20, %v5287_v45  ;;  %vm4244_vm3 = vcmp.lt.s32.totalorder %v4243_v11, 0  ;;  %v2428_v52 = vsel %vm2422_vm2, %v2425_v19, %v2427_v31 }
 0x133   : > { %v4670_v13 = vpop.eup %4669  ;;  %v929_v39 = vxor.u32 2147483648, %v4668_v29  ;;  %v2436_v53 = vsel %vm2422_vm2, %v2433_v56, %v2435_v16  ;;  %v796_v41 = vsel %vm4244_vm3, 0, %v4243_v11  ;;  %v812_v45 = vsel %vm727_vm13, %v811_v14, %v5313_v32 }
 0x134   : > { %v926_v40 = vxor.u32 2147483648, %v4670_v13  ;;  %v5386_v43 = vmul.u32.u64.low %v5341_v38, %v2436_v53  ;;  %v5387_v44 = vmul.u32.u64.high %v5341_v38, %v2436_v53, %v5386_v43  ;;  %v797_v49 = vsub.s32 32, %v796_v41 }
 0x135   : > { %v930_v46 = vsel %vm928_vm10, %v929_v39, %v4670_v13  ;;  %v801_v50 = vsub.s32 4294967266, %v796_v41  ;;  %v2447_v59 = vadd.s32 1, %v5376_v34  ;;  %v1040_v61 = vand.u32 2139095040, %v5344_v58 }
 0x136   : > { %v927_v20 = vsel %vm925_vm12, %v4668_v29, %v926_v40  ;;  %v798_v63 = vshll.u32 %v5326_v51, %v796_v41  ;;  %v799_v60 = vshrl.u32 %v781_v17, %v797_v49  ;;  %v2444_v1 = vmul.u32 %v5341_v38, %v2428_v52 }
 0x137   : > { %v931_v25 = vsel %vm924_vm15, %v927_v20, %v930_v46  ;;  %v802_v0 = vadd.s32 127, %v801_v50  ;;  %vm2446_vm4 = vc.u32 %v5387_v44, %v5375_v6  ;;  %v1041_v32 = vshrl.u32 %v1040_v61, 23 }
 0x138   : > { %v932_v37 = vsel %vm921_vm0, nan, %v931_v25  ;;  %v800_v54 = vor.u32 %v799_v60, %v798_v63  ;;  %v2448_v4 = vsel %vm2446_vm4, %v2447_v59, %v5376_v34  ;;  %vm2588_vm5 = vcmp.lt.s32.totalorder %v5333_v62, 2 }
 0x139   : > { %4054 = vst [vmem:[%s5408_s15 + $0x8] sm:$0xff] %v932_v37  ;;  %v803_v30 = vshll.u32 %v802_v0, 23  ;;  %vm5415_vm6 = vcmp.le.f32.partialorder %v725_v5, 0.7853982  ;;  %v2449_v51 = vadd.s32 %v2448_v4, %v2444_v1  ;;  %v4253_v38 = vadd.s32 4294967169, %v1041_v32 }
 0x13a   : > { %v4672_v2 = vpop.eup %4671  ;;  %vm2589_vm7 = vcmp.eq.s32.totalorder %v5333_v62, 0  ;;  %v814_v33 = vsel %vm5415_vm6, 0, %v812_v45  ;;  %v1037_v7 = vand.u32 2147483647, %v5344_v58  ;;  %v5425_v5 = vadd.f32 %v5091_v42, %v5330_v55  ;;  %v498_v55 = vpop.f32.mrf.mxu0 }
 0x13b   : > { %v804_v3 = vor.u32 4788187, %v803_v30  ;;  %v4674_v21 = vpop.eup %4673  ;;  %v2593_v15 = vxor.u32 2147483648, %v4672_v2  ;;  %v2450_v8 = vadd.s32 536870912, %v2449_v51  ;;  %v1047_v14 = vadd.s32 1, %v4253_v38 }
 0x13c   : > { %v2590_v10 = vxor.u32 2147483648, %v4674_v21  ;;  %vm2592_vm8 = vcmp.eq.s32.totalorder %v5333_v62, 2  ;;  %v807_v11 = vcvt.s32.f32 %v800_v54  ;;  %v818_v23 = vadd.s32 3, %v814_v33 }
 0x13d   : > { %v805_v56 = vand.u32 2147483647, %v804_v3  ;;  %v2594_v19 = vsel %vm2592_vm8, %v2593_v15, %v4674_v21  ;;  %v5428_v27 = vshrl.u32 %v2450_v8, 30  ;;  %vm1048_vm9 = vcmp.gt.s32.totalorder %v1047_v14, 0 }
 0x13e   : > { %v2591_v29 = vsel %vm2589_vm7, %v4672_v2, %v2590_v10  ;;  %v1044_v16 = vand.u32 8388607, %v1037_v7  ;;  %v1049_v42 = vsel %vm1048_vm9, %v1047_v14, 0  ;;  %vm2585_vm10 = vweird.f32 %v5100_v48 }
 0x13f   : > { %v808_v31 = vmul.f32 %v807_v11, %v805_v56  ;;  %v2595_v34 = vsel %vm2588_vm5, %v2591_v29, %v2594_v19  ;;  %v2452_v13 = vshll.u32 %v5428_v27, 30  ;;  %v2704_v39 = vand.u32 2139095040, %v5425_v5 }
 0x140   : > { %v2596_v17 = vsel %vm2585_vm10, nan, %v2595_v34  ;;  %v1051_v40 = vand.u32 31, %v1049_v42  ;;  %v5443_v43 = vadd.f32 %v5077_v36, %v498_v55  ;;  %v5447_v48 = vand.u32 3, %v818_v23 }
 0x141   : > { %v809_v53 = vxor.u32 2147483648, %v808_v31  ;;  %4070 = vst [vmem:[%s5408_s15 + $0x88] sm:$0xff] %v2596_v17  ;;  %v5440_v41 = vsub.s32 %v2449_v51, %v2452_v13  ;;  %v1045_v62 = vor.u32 8388608, %v1044_v16  ;;  %v2445_v52 = vadd.s32 %v5375_v6, %v5387_v44 }
 0x142   : > { %v1052_v49 = vsub.s32 32, %v1051_v40  ;;  %v2705_v45 = vshrl.u32 %v2704_v39, 23  ;;  %v1050_v36 = vshrl.u32 %v1049_v42, 5  ;;  %v1054_v63 = vshll.u32 %v4888_v18, %v1051_v40 }
 0x143   : > { %v810_v46 = vsel %vm727_vm13, %v809_v53, %v808_v31  ;;  %v2455_v20 = vsub.s32 0, %v5440_v41  ;;  %v1057_v60 = vshll.u32 %v4889_v22, %v1051_v40  ;;  %v1060_v0 = vshll.u32 %v4890_v24, %v1051_v40 }
 0x144   : > { %v813_v50 = vsel %vm5415_vm6, %v5110_v57, %v810_v46  ;;  %v1055_v59 = vshrl.u32 %v4889_v22, %v1052_v49  ;;  %v1058_v61 = vshrl.u32 %v4890_v24, %v1052_v49  ;;  %v1061_v6 = vshrl.u32 %v4891_v26, %v1052_v49 }
 0x145   : > { %4675 = vcosq.f32 %v813_v50  ;;  %v4306_v25 = vmin.u32 %v2455_v20, %v5440_v41  ;;  %v5462_v44 = vshll.u32 %v1045_v62, 8  ;;  %v2701_v37 = vand.u32 2147483647, %v5425_v5 }
 0x146   : > { %4677 = vsinq.f32 %v813_v50  ;;  %v1056_v32 = vor.u32 %v1055_v59, %v1054_v63  ;;  %v1059_v54 = vor.u32 %v1058_v61, %v1057_v60  ;;  %v1063_v30 = vshll.u32 %v4891_v26, %v1051_v40 }
 0x147   : > { %v2457_v1 = vclz %v4306_v25  ;;  %v1062_v4 = vor.u32 %v1061_v6, %v1060_v0  ;;  %v1064_v47 = vshrl.u32 %v4892_v28, %v1052_v49  ;;  %v1066_v51 = vshll.u32 %v4892_v28, %v1051_v40 }
 0x148   : > { %v1067_v38 = vshrl.u32 %v4893_v35, %v1052_v49  ;;  %vm1069_vm11 = vcmp.lt.s32.totalorder %v1050_v36, 1  ;;  %vm1070_vm12 = vcmp.lt.s32.totalorder %v1050_v36, 2  ;;  %v4317_v3 = vadd.s32 4294967169, %v2705_v45 }
 0x149   : > { %v4307_v2 = vadd.s32 4294967294, %v2457_v1  ;;  %v1053_v33 = vshrl.u32 %v4888_v18, %v1052_v49  ;;  %v1065_v21 = vor.u32 %v1064_v47, %v1063_v30  ;;  %vm1072_vm13 = vcmp.lt.s32.totalorder %v1050_v36, 4 }
 0x14a   : > { %v1068_v15 = vor.u32 %v1067_v38, %v1066_v51  ;;  %vm1071_vm15 = vcmp.lt.s32.totalorder %v1050_v36, 3  ;;  %v1074_v8 = vsel %vm1072_vm13, %v1062_v4, 2102212464  ;;  %v1077_v14 = vsel %vm1069_vm11, %v1056_v32, %v1059_v54 }
 0x14b   : > { %vm4308_vm14 = vcmp.lt.s32.totalorder %v4307_v2, 0  ;;  %v1078_v56 = vsel %vm1072_vm13, %v1065_v21, 920167782  ;;  %v1081_v11 = vsel %vm1069_vm11, %v1059_v54, %v1062_v4  ;;  %vm820_vm0 = vcmp.lt.s32.totalorder %v5447_v48, 2 }
 0x14c   : > { %v2460_v10 = vsel %vm4308_vm14, 0, %v4307_v2  ;;  %v1082_v19 = vsel %vm1072_vm13, %v1068_v15, 1326507024  ;;  %vm2391_vm1 = vcmp.lt.s32.totalorder %v5119_v12, 0  ;;  %v1073_v31 = vsel %vm1069_vm11, %v1053_v33, %v1056_v32 }
 0x14d   : > { %v2461_v23 = vsub.s32 32, %v2460_v10  ;;  %v2465_v29 = vsub.s32 4294967266, %v2460_v10  ;;  %v1079_v16 = vsel %vm1071_vm15, %v1062_v4, %v1078_v56  ;;  %vm817_vm2 = vweird.f32 %v5110_v57 }
 0x14e   : > { %v1075_v42 = vsel %vm1071_vm15, %v1059_v54, %v1074_v8  ;;  %v1080_v55 = vsel %vm1070_vm12, %v1077_v14, %v1079_v16  ;;  %v1083_v34 = vsel %vm1071_vm15, %v1065_v21, %v1082_v19  ;;  %v2711_v13 = vadd.s32 1, %v4317_v3 }
 0x14f   : > { %v2462_v39 = vshll.u32 %v5440_v41, %v2460_v10  ;;  %v2463_v17 = vshrl.u32 %v2445_v52, %v2461_v23  ;;  %v2466_v53 = vadd.s32 127, %v2465_v29  ;;  %v1084_v40 = vsel %vm1070_vm12, %v1081_v11, %v1083_v34 }
 0x150   : > { %v5483_v46 = vmul.u32.u64.low %v5462_v44, %v1084_v40  ;;  %v5484_v62 = vmul.u32.u64.high %v5462_v44, %v1084_v40, %v5483_v46  ;;  %v5487_v49 = vmul.u32.u64.low %v5462_v44, %v1080_v55  ;;  %v5488_v50 = vmul.u32.u64.high %v5462_v44, %v1080_v55, %v5487_v49 }
 0x151   : > { %v2464_v45 = vor.u32 %v2463_v17, %v2462_v39  ;;  %v2467_v59 = vshll.u32 %v2466_v53, 23  ;;  %v1076_v61 = vsel %vm1070_vm12, %v1073_v31, %v1075_v42  ;;  %vm2712_vm3 = vcmp.gt.s32.totalorder %v2711_v13, 0 }
 0x152   : > { %v4676_v20 = vpop.eup %4675  ;;  %v2475_v25 = vsub.s32 4, %v5428_v27  ;;  %v2708_v63 = vand.u32 8388607, %v2701_v37  ;;  %v2713_v60 = vsel %vm2712_vm3, %v2711_v13, 0  ;;  %vm821_vm4 = vcmp.eq.s32.totalorder %v5447_v48, 0 }
 0x153   : > { %v4678_v41 = vpop.eup %4677  ;;  %v825_v52 = vxor.u32 2147483648, %v4676_v20  ;;  %vm824_vm5 = vcmp.eq.s32.totalorder %v5447_v48, 2  ;;  %vm5499_vm6 = vcmp.le.f32.partialorder %v2389_v9, 0.7853982  ;;  %v2468_v36 = vor.u32 4788187, %v2467_v59 }
 0x154   : > { %v822_v0 = vxor.u32 2147483648, %v4678_v41  ;;  %v1092_v32 = vmul.u32 %v5462_v44, %v1076_v61  ;;  %vm1094_vm7 = vc.u32 %v5484_v62, %v5487_v49  ;;  %v1095_v54 = vadd.s32 1, %v5488_v50  ;;  %v5545_v61 = vld [vmem:[%s5072_s7] ss:$0 sm:$0xff] }
 0x155   : > { %v826_v1 = vsel %vm824_vm5, %v825_v52, %v4678_v41  ;;  %v2469_v4 = vand.u32 2147483647, %v2468_v36  ;;  %v2471_v47 = vcvt.s32.f32 %v2464_v45  ;;  %v2715_v51 = vand.u32 31, %v2713_v60 }
 0x156   : > { %v823_v30 = vsel %vm821_vm4, %v4676_v20, %v822_v0  ;;  %v2476_v38 = vsel %vm2391_vm1, %v2475_v25, %v5428_v27  ;;  %v1096_v2 = vsel %vm1094_vm7, %v1095_v54, %v5488_v50  ;;  %v2709_v3 = vor.u32 8388608, %v2708_v63 }
 0x157   : > { %v827_v9 = vsel %vm820_vm0, %v823_v30, %v826_v1  ;;  %v2472_v33 = vmul.f32 %v2471_v47, %v2469_v4  ;;  %v1097_v21 = vadd.s32 %v1096_v2, %v1092_v32  ;;  %v2716_v15 = vsub.s32 32, %v2715_v51  ;;  %v5570_v47 = vld [vmem:[%s5083_s12] ss:$0 sm:$0xff] }
 0x158   : > { %v828_v44 = vsel %vm817_vm2, nan, %v827_v9  ;;  %v5516_v8 = vshrl.u32 %v2713_v60, 5  ;;  %v2718_v14 = vshll.u32 %v4888_v18, %v2715_v51  ;;  %v2721_v48 = vshll.u32 %v4889_v22, %v2715_v51  ;;  %v578_v9 = vpop.f32.mrf.mxu1 }
 0x159   : > { %4053 = vst [vmem:[%s5408_s15] sm:$0xff] %v828_v44  ;;  %v2724_v10 = vshll.u32 %v4890_v24, %v2715_v51  ;;  %v2473_v56 = vxor.u32 2147483648, %v2472_v33  ;;  %v1098_v27 = vadd.s32 536870912, %v1097_v21  ;;  %v2719_v11 = vshrl.u32 %v4889_v22, %v2716_v15 }
 0x15a   : > { %v2727_v19 = vshll.u32 %v4891_v26, %v2715_v51  ;;  %v2722_v57 = vshrl.u32 %v4890_v24, %v2716_v15  ;;  %v2725_v23 = vshrl.u32 %v4891_v26, %v2716_v15  ;;  %v2728_v29 = vshrl.u32 %v4892_v28, %v2716_v15 }
 0x15b   : > { %v2730_v31 = vshll.u32 %v4892_v28, %v2715_v51  ;;  %v2474_v16 = vsel %vm2391_vm1, %v2473_v56, %v2472_v33  ;;  %v1099_v42 = vshrl.u32 %v1098_v27, 30  ;;  %v2720_v55 = vor.u32 %v2719_v11, %v2718_v14 }
 0x15c   : > { %v2731_v34 = vshrl.u32 %v4893_v35, %v2716_v15  ;;  %v2477_v13 = vsel %vm5499_vm6, %v5119_v12, %v2474_v16  ;;  %v2723_v39 = vor.u32 %v2722_v57, %v2721_v48  ;;  %v2726_v17 = vor.u32 %v2725_v23, %v2724_v10  ;;  %v5587_v48 = vld [vmem:[%s7792_s2] ss:$0 sm:$0xff] }
 0x15d   : > { %v2729_v53 = vor.u32 %v2728_v29, %v2727_v19  ;;  %v2478_v40 = vsel %vm5499_vm6, 0, %v2476_v38  ;;  %4679 = vcosq.f32 %v2477_v13  ;;  %v1100_v46 = vshll.u32 %v1099_v42, 30 }
 0x15e   : > { %vm2733_vm8 = vcmp.lt.s32.totalorder %v5516_v8, 1  ;;  %4681 = vsinq.f32 %v2477_v13  ;;  %v2732_v50 = vor.u32 %v2731_v34, %v2730_v31  ;;  %vm2736_vm9 = vcmp.lt.s32.totalorder %v5516_v8, 4 }
 0x15f   : > { %v2741_v20 = vsel %vm2733_vm8, %v2720_v55, %v2723_v39  ;;  %v5539_v45 = vsub.s32 %v1097_v21, %v1100_v46  ;;  %vm2735_vm10 = vcmp.lt.s32.totalorder %v5516_v8, 3  ;;  %v2742_v59 = vsel %vm2736_vm9, %v2729_v53, 920167782 }
 0x160   : > { %v656_v41 = vmul.f32 %v5545_v61, %v5443_v43  ;;  %v2482_v52 = vadd.s32 3, %v2478_v40  ;;  %vm2734_vm11 = vcmp.lt.s32.totalorder %v5516_v8, 2  ;;  %v2743_v25 = vsel %vm2735_vm10, %v2726_v17, %v2742_v59 }
 0x161   : > { %v2749_v63 = vshll.u32 %v2709_v3, 8  ;;  %v1103_v60 = vsub.s32 0, %v5539_v45  ;;  %v2738_v0 = vsel %vm2736_vm9, %v2726_v17, 2102212464  ;;  %v2744_v6 = vsel %vm2734_vm11, %v2741_v20, %v2743_v25 }
 0x162   : > { %v2745_v36 = vsel %vm2733_vm8, %v2723_v39, %v2726_v17  ;;  %v2717_v43 = vshrl.u32 %v4888_v18, %v2716_v15  ;;  %v2746_v1 = vsel %vm2736_vm9, %v2732_v50, 1326507024  ;;  %v5573_v51 = vadd.f32 %v5570_v47, %v656_v41 }
 0x163   : > { %v5562_v32 = vmul.u32.u64.low %v2749_v63, %v2744_v6  ;;  %v5563_v54 = vmul.u32.u64.high %v2749_v63, %v2744_v6, %v5562_v32  ;;  %v4254_v30 = vmin.u32 %v1103_v60, %v5539_v45  ;;  %v2747_v4 = vsel %vm2735_vm10, %v2729_v53, %v2746_v1 }
 0x164   : > { %v2483_v38 = vand.u32 3, %v2482_v52  ;;  %v2737_v2 = vsel %vm2733_vm8, %v2717_v43, %v2720_v55  ;;  %v2739_v3 = vsel %vm2735_vm10, %v2723_v39, %v2738_v0  ;;  %v2748_v44 = vsel %vm2734_vm11, %v2745_v36, %v2747_v4 }
 0x165   : > { %v1105_v33 = vclz %v4254_v30  ;;  %v1123_v21 = vsub.s32 4, %v1099_v42  ;;  %v5581_v15 = vmul.u32.u64.low %v2749_v63, %v2748_v44  ;;  %v5582_v14 = vmul.u32.u64.high %v2749_v63, %v2748_v44, %v5581_v15 }
 0x166   : > { %v579_v10 = vadd.f32 %v5587_v48, %v578_v9  ;;  %vm2481_vm12 = vweird.f32 %v5119_v12  ;;  %vm5593_vm13 = vcmp.le.f32.partialorder %v1037_v7, 0.7853982  ;;  %v2740_v11 = vsel %vm2734_vm11, %v2737_v2, %v2739_v3 }
 0x167   : > { %v4255_v27 = vadd.s32 4294967294, %v1105_v33  ;;  %v933_v19 = vand.u32 2147483647, %v5573_v51  ;;  %v936_v57 = vand.u32 2139095040, %v5573_v51  ;;  %vm2485_vm14 = vcmp.eq.s32.totalorder %v2483_v38, 0 }
 0x168   : > { %vm2488_vm15 = vcmp.eq.s32.totalorder %v2483_v38, 2  ;;  %vm1039_vm0 = vcmp.lt.s32.totalorder %v5344_v58, 0  ;;  %v2759_v23 = vadd.s32 1, %v5563_v54  ;;  %v1093_v7 = vadd.s32 %v5487_v49, %v5484_v62  ;;  %v4428_v49 = vpop.f32.mrf.mxu0 }
 0x169   : > { %vm4256_vm1 = vcmp.lt.s32.totalorder %v4255_v27, 0  ;;  %v1124_v29 = vsel %vm1039_vm0, %v1123_v21, %v1099_v42  ;;  %v937_v31 = vshrl.u32 %v936_v57, 23  ;;  %v2756_v55 = vmul.u32 %v2749_v63, %v2740_v11 }
 0x16a   : > { %v4680_v8 = vpop.eup %4679  ;;  %v1108_v16 = vsel %vm4256_vm1, 0, %v4255_v27  ;;  %vm2758_vm2 = vc.u32 %v5582_v14, %v5562_v32  ;;  %v672_v34 = vmul.f32 %v5545_v61, %v579_v10  ;;  %v940_v62 = vand.u32 8388607, %v933_v19 }
 0x16b   : > { %v4682_v13 = vpop.eup %4681  ;;  %v2489_v39 = vxor.u32 2147483648, %v4680_v8  ;;  %v1109_v17 = vsub.s32 32, %v1108_v16  ;;  %v1113_v53 = vsub.s32 4294967266, %v1108_v16  ;;  %v1110_v42 = vshll.u32 %v5539_v45, %v1108_v16 }
 0x16c   : > { %v2486_v40 = vxor.u32 2147483648, %v4682_v13  ;;  %v2760_v46 = vsel %vm2758_vm2, %v2759_v23, %v5563_v54  ;;  %v4249_v50 = vadd.s32 4294967169, %v937_v31  ;;  %vm2484_vm3 = vcmp.lt.s32.totalorder %v2483_v38, 2 }
 0x16d   : > { %v2490_v20 = vsel %vm2488_vm15, %v2489_v39, %v4682_v13  ;;  %v1111_v59 = vshrl.u32 %v1093_v7, %v1109_v17  ;;  %v1114_v41 = vadd.s32 127, %v1113_v53  ;;  %v2761_v52 = vadd.s32 %v2760_v46, %v2756_v55 }
 0x16e   : > { %v2487_v25 = vsel %vm2485_vm14, %v4680_v8, %v2486_v40  ;;  %v943_v63 = vadd.s32 1, %v4249_v50  ;;  %v514_v60 = vadd.f32 %v5587_v48, %v4428_v49  ;;  %v1126_v1 = vsel %vm5593_vm13, 0, %v1124_v29 }
 0x16f   : > { %v2491_v0 = vsel %vm2484_vm3, %v2487_v25, %v2490_v20  ;;  %v1112_v6 = vor.u32 %v1111_v59, %v1110_v42  ;;  %v1115_v36 = vshll.u32 %v1114_v41, 23  ;;  %v2762_v43 = vadd.s32 536870912, %v2761_v52 }
 0x170   : > { %v2492_v45 = vsel %vm2481_vm12, nan, %v2491_v0  ;;  %v941_v54 = vor.u32 8388608, %v940_v62  ;;  %vm944_vm4 = vcmp.gt.s32.totalorder %v943_v63, 0  ;;  %v5623_v38 = vadd.f32 %v5570_v47, %v672_v34 }
 0x171   : > { %4069 = vst [vmem:[%s5408_s15 + $0x80] sm:$0xff] %v2492_v45  ;;  %v1116_v30 = vor.u32 4788187, %v1115_v36  ;;  %v2763_v4 = vshrl.u32 %v2762_v43, 30  ;;  %v945_v9 = vsel %vm944_vm4, %v943_v63, 0  ;;  %v1119_v44 = vcvt.s32.f32 %v1112_v6 }
 0x172   : > { %v947_v2 = vand.u32 31, %v945_v9  ;;  %v5625_v33 = vadd.s32 3, %v1126_v1  ;;  %vm2703_vm5 = vcmp.lt.s32.totalorder %v5425_v5, 0  ;;  %v2757_v21 = vadd.s32 %v5562_v32, %v5582_v14 }
 0x173   : > { %v1117_v3 = vand.u32 2147483647, %v1116_v30  ;;  %v2764_v12 = vshll.u32 %v2763_v4, 30  ;;  %v5630_v10 = vshll.u32 %v941_v54, 8  ;;  %v5633_v27 = vmul.f32 %v5545_v61, %v514_v60 }
 0x174   : > { %v948_v15 = vsub.s32 32, %v947_v2  ;;  %v946_v23 = vshrl.u32 %v945_v9, 5  ;;  %v2600_v7 = vand.u32 2139095040, %v5623_v38  ;;  %v2787_v29 = vsub.s32 4, %v2763_v4 }
 0x175   : > { %v1120_v11 = vmul.f32 %v1119_v44, %v1117_v3  ;;  %v5635_v57 = vsub.s32 %v2761_v52, %v2764_v12  ;;  %v950_v31 = vshll.u32 %v4888_v18, %v947_v2  ;;  %v953_v55 = vshll.u32 %v4889_v22, %v947_v2 }
 0x176   : > { %v951_v8 = vshrl.u32 %v4889_v22, %v948_v15  ;;  %v954_v16 = vshrl.u32 %v4890_v24, %v948_v15  ;;  %v957_v34 = vshrl.u32 %v4891_v26, %v948_v15  ;;  %v956_v39 = vshll.u32 %v4890_v24, %v947_v2 }
 0x177   : > { %v1121_v32 = vxor.u32 2147483648, %v1120_v11  ;;  %v2767_v14 = vsub.s32 0, %v5635_v57  ;;  %v959_v17 = vshll.u32 %v4891_v26, %v947_v2  ;;  %v960_v53 = vshrl.u32 %v4892_v28, %v948_v15 }
 0x178   : > { %v952_v13 = vor.u32 %v951_v8, %v950_v31  ;;  %v955_v40 = vor.u32 %v954_v16, %v953_v55  ;;  %v962_v42 = vshll.u32 %v4892_v28, %v947_v2  ;;  %v958_v50 = vor.u32 %v957_v34, %v956_v39  ;;  %v4452_v55 = vpop.f32.mrf.mxu1 }
 0x179   : > { %v1122_v62 = vsel %vm1039_vm0, %v1121_v32, %v1120_v11  ;;  %v4318_v49 = vmin.u32 %v2767_v14, %v5635_v57  ;;  %v961_v20 = vor.u32 %v960_v53, %v959_v17  ;;  %v963_v59 = vshrl.u32 %v4893_v35, %v948_v15 }
 0x17a   : > { %v1125_v46 = vsel %vm5593_vm13, %v5344_v58, %v1122_v62  ;;  %v2597_v52 = vand.u32 2147483647, %v5623_v38  ;;  %v2601_v25 = vshrl.u32 %v2600_v7, 23  ;;  %v2788_v63 = vsel %vm2703_vm5, %v2787_v29, %v2763_v4 }
 0x17b   : > { %4683 = vcosq.f32 %v1125_v46  ;;  %v2769_v41 = vclz %v4318_v49  ;;  %v949_v60 = vshrl.u32 %v4888_v18, %v948_v15  ;;  %v964_v0 = vor.u32 %v963_v59, %v962_v42 }
 0x17c   : > { %4685 = vsinq.f32 %v1125_v46  ;;  %vm965_vm6 = vcmp.lt.s32.totalorder %v946_v23, 1  ;;  %vm967_vm7 = vcmp.lt.s32.totalorder %v946_v23, 3  ;;  %vm968_vm8 = vcmp.lt.s32.totalorder %v946_v23, 4 }
 0x17d   : > { %v4319_v6 = vadd.s32 4294967294, %v2769_v41  ;;  %v970_v56 = vsel %vm968_vm8, %v958_v50, 2102212464  ;;  %v973_v36 = vsel %vm965_vm6, %v952_v13, %v955_v40  ;;  %v974_v43 = vsel %vm968_vm8, %v961_v20, 920167782 }
 0x17e   : > { %v977_v45 = vsel %vm965_vm6, %v955_v40, %v958_v50  ;;  %vm966_vm10 = vcmp.lt.s32.totalorder %v946_v23, 2  ;;  %v975_v1 = vsel %vm967_vm7, %v958_v50, %v974_v43  ;;  %v978_v54 = vsel %vm968_vm8, %v964_v0, 1326507024 }
 0x17f   : > { %vm4320_vm9 = vcmp.lt.s32.totalorder %v4319_v6, 0  ;;  %v969_v9 = vsel %vm965_vm6, %v949_v60, %v952_v13  ;;  %v976_v4 = vsel %vm966_vm10, %v973_v36, %v975_v1  ;;  %v979_v2 = vsel %vm967_vm7, %v961_v20, %v978_v54 }
 0x180   : > { %v2772_v30 = vsel %vm4320_vm9, 0, %v4319_v6  ;;  %v971_v12 = vsel %vm967_vm7, %v955_v40, %v970_v56  ;;  %v980_v15 = vsel %vm966_vm10, %v977_v45, %v979_v2  ;;  %v4313_v14 = vadd.s32 4294967169, %v2601_v25 }
 0x181   : > { %v2773_v3 = vsub.s32 32, %v2772_v30  ;;  %v2777_v44 = vsub.s32 4294967266, %v2772_v30  ;;  %v5665_v11 = vmul.u32.u64.low %v5630_v10, %v980_v15  ;;  %v5666_v7 = vmul.u32.u64.high %v5630_v10, %v980_v15, %v5665_v11 }
 0x182   : > { %v5669_v29 = vmul.u32.u64.low %v5630_v10, %v976_v4  ;;  %v5670_v31 = vmul.u32.u64.high %v5630_v10, %v976_v4, %v5669_v29  ;;  %v2774_v8 = vshll.u32 %v5635_v57, %v2772_v30  ;;  %vm5676_vm11 = vcmp.le.f32.partialorder %v2701_v37, 0.7853982 }
 0x183   : > { %v2775_v16 = vshrl.u32 %v2757_v21, %v2773_v3  ;;  %v2778_v32 = vadd.s32 127, %v2777_v44  ;;  %v972_v13 = vsel %vm966_vm10, %v969_v9, %v971_v12  ;;  %v5683_v39 = vadd.f32 %v5570_v47, %v5633_v27 }
 0x184   : > { %vm1129_vm12 = vweird.f32 %v5344_v58  ;;  %v2790_v21 = vsel %vm5676_vm11, 0, %v2788_v63  ;;  %v2607_v53 = vadd.s32 1, %v4313_v14  ;;  %v1131_v62 = vand.u32 3, %v5625_v33 }
 0x185   : > { %v2776_v17 = vor.u32 %v2775_v16, %v2774_v8  ;;  %v2779_v57 = vshll.u32 %v2778_v32, 23  ;;  %vm990_vm13 = vc.u32 %v5666_v7, %v5669_v29  ;;  %v991_v37 = vadd.s32 1, %v5670_v31 }
 0x186   : > { %v5693_v23 = vadd.f32 %v5587_v48, %v4452_v55  ;;  %v988_v49 = vmul.u32 %v5630_v10, %v972_v13  ;;  %v5698_v40 = vand.u32 8388607, %v2597_v52  ;;  %vm2608_vm14 = vcmp.gt.s32.totalorder %v2607_v53, 0 }
 0x187   : > { %v2780_v27 = vor.u32 4788187, %v2779_v57  ;;  %v2794_v46 = vadd.s32 3, %v2790_v21  ;;  %v992_v33 = vsel %vm990_vm13, %v991_v37, %v5670_v31  ;;  %v2609_v50 = vsel %vm2608_vm14, %v2607_v53, 0 }
 0x188   : > { %v4684_v42 = vpop.eup %4683  ;;  %v1248_v20 = vand.u32 2139095040, %v5683_v39  ;;  %v2783_v63 = vcvt.s32.f32 %v2776_v17  ;;  %v993_v60 = vadd.s32 %v992_v33, %v988_v49  ;;  %vm1132_vm15 = vcmp.lt.s32.totalorder %v1131_v62, 2 }
 0x189   : > { %v4686_v59 = vpop.eup %4685  ;;  %v1137_v41 = vxor.u32 2147483648, %v4684_v42  ;;  %v2781_v25 = vand.u32 2147483647, %v2780_v27  ;;  %vm1136_vm0 = vcmp.eq.s32.totalorder %v1131_v62, 2  ;;  %v2611_v10 = vand.u32 31, %v2609_v50 }
 0x18a   : > { %v1134_v0 = vxor.u32 2147483648, %v4686_v59  ;;  %vm1133_vm1 = vcmp.eq.s32.totalorder %v1131_v62, 0  ;;  %v994_v36 = vadd.s32 536870912, %v993_v60  ;;  %v5702_v45 = vand.u32 3, %v2794_v46 }
 0x18b   : > { %v1138_v6 = vsel %vm1136_vm0, %v1137_v41, %v4686_v59  ;;  %v2784_v56 = vmul.f32 %v2783_v63, %v2781_v25  ;;  %v2605_v1 = vor.u32 8388608, %v5698_v40  ;;  %v2612_v54 = vsub.s32 32, %v2611_v10 }
 0x18c   : > { %v1135_v43 = vsel %vm1133_vm1, %v4684_v42, %v1134_v0  ;;  %v5705_v4 = vshrl.u32 %v994_v36, 30  ;;  %v1249_v2 = vshrl.u32 %v1248_v20, 23  ;;  %v2614_v44 = vshll.u32 %v4888_v18, %v2611_v10 }
 0x18d   : > { %v1139_v30 = vsel %vm1132_vm15, %v1135_v43, %v1138_v6  ;;  %v2785_v9 = vxor.u32 2147483648, %v2784_v56  ;;  %v2615_v12 = vshrl.u32 %v4889_v22, %v2612_v54  ;;  %v2618_v15 = vshrl.u32 %v4890_v24, %v2612_v54 }
 0x18e   : > { %v1140_v3 = vsel %vm1129_vm12, nan, %v1139_v30  ;;  %v996_v31 = vshll.u32 %v5705_v4, 30  ;;  %v2620_v8 = vshll.u32 %v4890_v24, %v2611_v10  ;;  %v2621_v16 = vshrl.u32 %v4891_v26, %v2612_v54 }
 0x18f   : > { %4056 = vst [vmem:[%s5408_s15 + $0x18] sm:$0xff] %v1140_v3  ;;  %v2786_v11 = vsel %vm2703_vm5, %v2785_v9, %v2784_v56  ;;  %v2610_v32 = vshrl.u32 %v2609_v50, 5  ;;  %v2617_v14 = vshll.u32 %v4889_v22, %v2611_v10  ;;  %v1245_v55 = vand.u32 2147483647, %v5683_v39 }
 0x190   : > { %v2789_v58 = vsel %vm5676_vm11, %v5425_v5, %v2786_v11  ;;  %v5723_v13 = vsub.s32 %v993_v60, %v996_v31  ;;  %v2616_v17 = vor.u32 %v2615_v12, %v2614_v44  ;;  %v2622_v57 = vor.u32 %v2621_v16, %v2620_v8 }
 0x191   : > { %4687 = vcosq.f32 %v2789_v58  ;;  %v2619_v21 = vor.u32 %v2618_v15, %v2617_v14  ;;  %v2623_v53 = vshll.u32 %v4891_v26, %v2611_v10  ;;  %v2624_v62 = vshrl.u32 %v4892_v28, %v2612_v54 }
 0x192   : > { %4689 = vsinq.f32 %v2789_v58  ;;  %v999_v37 = vsub.s32 0, %v5723_v13  ;;  %v2626_v34 = vshll.u32 %v4892_v28, %v2611_v10  ;;  %v2627_v27 = vshrl.u32 %v4893_v35, %v2612_v54 }
 0x193   : > { %v4261_v49 = vadd.s32 4294967169, %v1249_v2  ;;  %vm935_vm2 = vcmp.lt.s32.totalorder %v5573_v51, 0  ;;  %v2613_v40 = vshrl.u32 %v4888_v18, %v2612_v54  ;;  %v2625_v42 = vor.u32 %v2624_v62, %v2623_v53 }
 0x194   : > { %vm2629_vm3 = vcmp.lt.s32.totalorder %v2610_v32, 1  ;;  %vm2632_vm4 = vcmp.lt.s32.totalorder %v2610_v32, 4  ;;  %v4250_v46 = vmin.u32 %v999_v37, %v5723_v13  ;;  %v2628_v33 = vor.u32 %v2627_v27, %v2626_v34 }
 0x195   : > { %vm2631_vm5 = vcmp.lt.s32.totalorder %v2610_v32, 3  ;;  %v2634_v50 = vsel %vm2632_vm4, %v2622_v57, 2102212464  ;;  %v2633_v20 = vsel %vm2629_vm3, %v2613_v40, %v2616_v17  ;;  %v2637_v41 = vsel %vm2629_vm3, %v2616_v17, %v2619_v21 }
 0x196   : > { %v2635_v59 = vsel %vm2631_vm5, %v2619_v21, %v2634_v50  ;;  %v2638_v25 = vsel %vm2632_vm4, %v2625_v42, 920167782  ;;  %v1001_v63 = vclz %v4250_v46  ;;  %v1019_v60 = vsub.s32 4, %v5705_v4 }
 0x197   : > { %v2641_v0 = vsel %vm2629_vm3, %v2619_v21, %v2622_v57  ;;  %v2645_v10 = vshll.u32 %v2605_v1, 8  ;;  %vm2630_vm6 = vcmp.lt.s32.totalorder %v2610_v32, 2  ;;  %v2639_v6 = vsel %vm2631_vm5, %v2622_v57, %v2638_v25 }
 0x198   : > { %v2642_v56 = vsel %vm2632_vm4, %v2628_v33, 1326507024  ;;  %v1255_v36 = vadd.s32 1, %v4261_v49  ;;  %vm2797_vm7 = vcmp.eq.s32.totalorder %v5702_v45, 0  ;;  %v4251_v43 = vadd.s32 4294967294, %v1001_v63 }
 0x199   : > { %v2636_v54 = vsel %vm2630_vm6, %v2633_v20, %v2635_v59  ;;  %v2640_v30 = vsel %vm2630_vm6, %v2637_v41, %v2639_v6  ;;  %v2643_v9 = vsel %vm2631_vm5, %v2625_v42, %v2642_v56  ;;  %vm2796_vm8 = vcmp.lt.s32.totalorder %v5702_v45, 2 }
 0x19a   : > { %v2644_v2 = vsel %vm2630_vm6, %v2641_v0, %v2643_v9  ;;  %v5739_v3 = vmul.u32.u64.low %v2645_v10, %v2640_v30  ;;  %v5740_v44 = vmul.u32.u64.high %v2645_v10, %v2640_v30, %v5739_v3  ;;  %vm1256_vm9 = vcmp.gt.s32.totalorder %v1255_v36, 0 }
 0x19b   : > { %vm2793_vm10 = vweird.f32 %v5425_v5  ;;  %vm4252_vm11 = vcmp.lt.s32.totalorder %v4251_v43, 0  ;;  %v5744_v1 = vmul.u32.u64.low %v2645_v10, %v2644_v2  ;;  %v5745_v12 = vmul.u32.u64.high %v2645_v10, %v2644_v2, %v5744_v1 }
 0x19c   : > { %v1257_v15 = vsel %vm1256_vm9, %v1255_v36, 0  ;;  %vm2800_vm12 = vcmp.eq.s32.totalorder %v5702_v45, 2  ;;  %v989_v11 = vadd.s32 %v5669_v29, %v5666_v7  ;;  %v1004_v31 = vsel %vm4252_vm11, 0, %v4251_v43  ;;  %v508_v45 = vpop.f32.mrf.mxu0 }
 0x19d   : > { %v1259_v8 = vand.u32 31, %v1257_v15  ;;  %v1005_v16 = vsub.s32 32, %v1004_v31  ;;  %v1009_v58 = vsub.s32 4294967266, %v1004_v31  ;;  %v5753_v32 = vsel %vm935_vm2, %v1019_v60, %v5705_v4 }
 0x19e   : > { %v1252_v14 = vand.u32 8388607, %v1245_v55  ;;  %v4688_v17 = vpop.eup %4687  ;;  %v2652_v57 = vmul.u32 %v2645_v10, %v2636_v54  ;;  %v2655_v21 = vadd.s32 1, %v5740_v44  ;;  %v5758_v53 = vshrl.u32 %v1257_v15, 5 }
 0x19f   : > { %v1260_v62 = vsub.s32 32, %v1259_v8  ;;  %v4690_v7 = vpop.eup %4689  ;;  %v2801_v29 = vxor.u32 2147483648, %v4688_v17  ;;  %vm5762_vm13 = vcmp.le.f32.partialorder %v933_v19, 0.7853982  ;;  %v1006_v4 = vshll.u32 %v5723_v13, %v1004_v31 }
 0x1a0   : > { %v1007_v34 = vshrl.u32 %v989_v11, %v1005_v16  ;;  %v1010_v27 = vadd.s32 127, %v1009_v58  ;;  %v2798_v49 = vxor.u32 2147483648, %v4690_v7  ;;  %vm2654_vm14 = vc.u32 %v5745_v12, %v5739_v3 }
 0x1a1   : > { %v1262_v40 = vshll.u32 %v4888_v18, %v1259_v8  ;;  %v1263_v42 = vshrl.u32 %v4889_v22, %v1260_v62  ;;  %v2802_v46 = vsel %vm2800_vm12, %v2801_v29, %v4690_v7  ;;  %v2656_v50 = vsel %vm2654_vm14, %v2655_v21, %v5740_v44 }
 0x1a2   : > { %v1008_v19 = vor.u32 %v1007_v34, %v1006_v4  ;;  %v1011_v33 = vshll.u32 %v1010_v27, 23  ;;  %v2799_v13 = vsel %vm2797_vm7, %v4688_v17, %v2798_v49  ;;  %v2657_v20 = vadd.s32 %v2656_v50, %v2652_v57 }
 0x1a3   : > { %v1265_v59 = vshll.u32 %v4889_v22, %v1259_v8  ;;  %v1266_v41 = vshrl.u32 %v4890_v24, %v1260_v62  ;;  %v2803_v25 = vsel %vm2796_vm8, %v2799_v13, %v2802_v46  ;;  %v1264_v0 = vor.u32 %v1263_v42, %v1262_v40 }
 0x1a4   : > { %v1012_v63 = vor.u32 4788187, %v1011_v33  ;;  %v1015_v60 = vcvt.s32.f32 %v1008_v19  ;;  %v2804_v10 = vsel %vm2793_vm10, nan, %v2803_v25  ;;  %v2658_v6 = vadd.s32 536870912, %v2657_v20 }
 0x1a5   : > { %v1268_v56 = vshll.u32 %v4890_v24, %v1259_v8  ;;  %v1269_v36 = vshrl.u32 %v4891_v26, %v1260_v62  ;;  %4072 = vst [vmem:[%s5408_s15 + $0x98] sm:$0xff] %v2804_v10  ;;  %v1267_v54 = vor.u32 %v1266_v41, %v1265_v59  ;;  %v1271_v30 = vshll.u32 %v4891_v26, %v1259_v8 }
 0x1a6   : > { %v1013_v43 = vand.u32 2147483647, %v1012_v63  ;;  %v1272_v9 = vshrl.u32 %v4892_v28, %v1260_v62  ;;  %v2659_v2 = vshrl.u32 %v2658_v6, 30  ;;  %v1253_v44 = vor.u32 8388608, %v1252_v14 }
 0x1a7   : > { %v1275_v1 = vshrl.u32 %v4893_v35, %v1260_v62  ;;  %v675_v5 = vmul.f32 %v5545_v61, %v5693_v23  ;;  %v1270_v11 = vor.u32 %v1269_v36, %v1268_v56  ;;  %v1274_v16 = vshll.u32 %v4892_v28, %v1259_v8 }
 0x1a8   : > { %v1016_v15 = vmul.f32 %v1015_v60, %v1013_v43  ;;  %v1273_v31 = vor.u32 %v1272_v9, %v1271_v30  ;;  %v1022_v58 = vsel %vm5762_vm13, 0, %v5753_v32  ;;  %v2660_v17 = vshll.u32 %v2659_v2, 30 }
 0x1a9   : > { %vm1277_vm15 = vcmp.lt.s32.totalorder %v5758_v53, 1  ;;  %v509_v57 = vadd.f32 %v5587_v48, %v508_v45  ;;  %v1276_v21 = vor.u32 %v1275_v1, %v1274_v16  ;;  %vm1280_vm0 = vcmp.lt.s32.totalorder %v5758_v53, 4 }
 0x1aa   : > { %v1017_v14 = vxor.u32 2147483648, %v1016_v15  ;;  %v1285_v23 = vsel %vm1277_vm15, %v1264_v0, %v1267_v54  ;;  %v5799_v7 = vsub.s32 %v2657_v20, %v2660_v17  ;;  %vm1279_vm1 = vcmp.lt.s32.totalorder %v5758_v53, 3 }
 0x1ab   : > { %v1286_v8 = vsel %vm1280_vm0, %v1273_v31, 920167782  ;;  %v1293_v32 = vshll.u32 %v1253_v44, 8  ;;  %v1261_v4 = vshrl.u32 %v4888_v18, %v1260_v62  ;;  %vm1278_vm3 = vcmp.lt.s32.totalorder %v5758_v53, 2 }
 0x1ac   : > { %v1018_v29 = vsel %vm935_vm2, %v1017_v14, %v1016_v15  ;;  %v1287_v34 = vsel %vm1279_vm1, %v1270_v11, %v1286_v8  ;;  %v2663_v49 = vsub.s32 0, %v5799_v7  ;;  %v1282_v40 = vsel %vm1280_vm0, %v1270_v11, 2102212464 }
 0x1ad   : > { %v1021_v27 = vsel %vm5762_vm13, %v5573_v51, %v1018_v29  ;;  %v1288_v42 = vsel %vm1278_vm3, %v1285_v23, %v1287_v34  ;;  %v1289_v62 = vsel %vm1277_vm15, %v1267_v54, %v1270_v11  ;;  %v1290_v46 = vsel %vm1280_vm0, %v1276_v21, 1326507024 }
 0x1ae   : > { %4691 = vcosq.f32 %v1021_v27  ;;  %v5823_v19 = vadd.f32 %v5570_v47, %v675_v5  ;;  %v4314_v37 = vmin.u32 %v2663_v49, %v5799_v7  ;;  %v1281_v33 = vsel %vm1277_vm15, %v1261_v4, %v1264_v0 }
 0x1af   : > { %4693 = vsinq.f32 %v1021_v27  ;;  %v1291_v50 = vsel %vm1279_vm1, %v1273_v31, %v1290_v46  ;;  %v1283_v13 = vsel %vm1279_vm1, %v1267_v54, %v1282_v40  ;;  %v1026_v25 = vadd.s32 3, %v1022_v58 }
 0x1b0   : > { %v1292_v20 = vsel %vm1278_vm3, %v1289_v62, %v1291_v50  ;;  %v5834_v59 = vmul.u32.u64.low %v1293_v32, %v1288_v42  ;;  %v5835_v41 = vmul.u32.u64.high %v1293_v32, %v1288_v42, %v5834_v59  ;;  %v2665_v63 = vclz %v4314_v37 }
 0x1b1   : > { %v2683_v60 = vsub.s32 4, %v2659_v2  ;;  %v5838_v10 = vmul.u32.u64.low %v1293_v32, %v1292_v20  ;;  %v5839_v6 = vmul.u32.u64.high %v1293_v32, %v1292_v20, %v5838_v10  ;;  %v1284_v56 = vsel %vm1278_vm3, %v1281_v33, %v1283_v13 }
 0x1b2   : > { %v4315_v0 = vadd.s32 4294967294, %v2665_v63  ;;  %v2912_v36 = vand.u32 2139095040, %v5823_v19  ;;  %vm5846_vm2 = vcmp.le.f32.partialorder %v2597_v52, 0.7853982  ;;  %vm2599_vm4 = vcmp.lt.s32.totalorder %v5623_v38, 0 }
 0x1b3   : > { %v1303_v54 = vadd.s32 1, %v5835_v41  ;;  %v658_v30 = vmul.f32 %v5545_v61, %v509_v57  ;;  %v1027_v9 = vand.u32 3, %v1026_v25  ;;  %v2684_v53 = vsel %vm2599_vm4, %v2683_v60, %v2659_v2 }
 0x1b4   : > { %vm4316_vm5 = vcmp.lt.s32.totalorder %v4315_v0, 0  ;;  %v2913_v45 = vshrl.u32 %v2912_v36, 23  ;;  %v1300_v1 = vmul.u32 %v1293_v32, %v1284_v56  ;;  %vm1302_vm6 = vc.u32 %v5839_v6, %v5834_v59 }
 0x1b5   : > { %v2668_v44 = vsel %vm4316_vm5, 0, %v4315_v0  ;;  %v2909_v52 = vand.u32 2147483647, %v5823_v19  ;;  %v2653_v5 = vadd.s32 %v5739_v3, %v5745_v12  ;;  %v1304_v31 = vsel %vm1302_vm6, %v1303_v54, %v5835_v41 }
 0x1b6   : > { %v2669_v15 = vsub.s32 32, %v2668_v44  ;;  %v2673_v11 = vsub.s32 4294967266, %v2668_v44  ;;  %v2686_v16 = vsel %vm5846_vm2, 0, %v2684_v53  ;;  %v1305_v58 = vadd.s32 %v1304_v31, %v1300_v1 }
 0x1b7   : > { %v4325_v2 = vadd.s32 4294967169, %v2913_v45  ;;  %v5864_v17 = vadd.f32 %v5570_v47, %v658_v30  ;;  %vm1025_vm7 = vweird.f32 %v5573_v51  ;;  %v2670_v57 = vshll.u32 %v5799_v7, %v2668_v44 }
 0x1b8   : > { %v2671_v14 = vshrl.u32 %v2653_v5, %v2669_v15  ;;  %v2674_v21 = vadd.s32 127, %v2673_v11  ;;  %vm1028_vm8 = vcmp.lt.s32.totalorder %v1027_v9, 2  ;;  %v1306_v3 = vadd.s32 536870912, %v1305_v58 }
 0x1b9   : > { %v2916_v12 = vand.u32 8388607, %v2909_v52  ;;  %v2919_v23 = vadd.s32 1, %v4325_v2  ;;  %vm1029_vm9 = vcmp.eq.s32.totalorder %v1027_v9, 0  ;;  %v2690_v4 = vadd.s32 3, %v2686_v16 }
 0x1ba   : > { %v2672_v32 = vor.u32 %v2671_v14, %v2670_v57  ;;  %v2675_v29 = vshll.u32 %v2674_v21, 23  ;;  %vm1247_vm10 = vcmp.lt.s32.totalorder %v5683_v39, 0  ;;  %v1307_v27 = vshrl.u32 %v1306_v3, 30 }
 0x1bb   : > { %v4692_v8 = vpop.eup %4691  ;;  %vm2920_vm11 = vcmp.gt.s32.totalorder %v2919_v23, 0  ;;  %v1144_v7 = vand.u32 2139095040, %v5864_v17  ;;  %vm1032_vm12 = vcmp.eq.s32.totalorder %v1027_v9, 2  ;;  %v2917_v37 = vor.u32 8388608, %v2916_v12 }
 0x1bc   : > { %v4694_v34 = vpop.eup %4693  ;;  %v1033_v47 = vxor.u32 2147483648, %v4692_v8  ;;  %v2676_v40 = vor.u32 4788187, %v2675_v29  ;;  %v2921_v42 = vsel %vm2920_vm11, %v2919_v23, 0  ;;  %v1308_v46 = vshll.u32 %v1307_v27, 30 }
 0x1bd   : > { %v1030_v49 = vxor.u32 2147483648, %v4694_v34  ;;  %v1141_v33 = vand.u32 2147483647, %v5864_v17  ;;  %v2679_v20 = vcvt.s32.f32 %v2672_v32  ;;  %v2923_v41 = vand.u32 31, %v2921_v42 }
 0x1be   : > { %v1034_v62 = vsel %vm1032_vm12, %v1033_v47, %v4694_v34  ;;  %v2677_v13 = vand.u32 2147483647, %v2676_v40  ;;  %v5875_v63 = vand.u32 3, %v2690_v4  ;;  %v5877_v60 = vsub.s32 %v1305_v58, %v1308_v46 }
 0x1bf   : > { %v1031_v50 = vsel %vm1029_vm9, %v4692_v8, %v1030_v49  ;;  %v1145_v10 = vshrl.u32 %v1144_v7, 23  ;;  %v1331_v36 = vsub.s32 4, %v1307_v27  ;;  %v2924_v54 = vsub.s32 32, %v2923_v41 }
 0x1c0   : > { %v1035_v25 = vsel %vm1028_vm8, %v1031_v50, %v1034_v62  ;;  %v2680_v56 = vmul.f32 %v2679_v20, %v2677_v13  ;;  %v1301_v30 = vadd.s32 %v5834_v59, %v5839_v6  ;;  %v1311_v53 = vsub.s32 0, %v5877_v60 }
 0x1c1   : > { %v1036_v0 = vsel %vm1025_vm7, nan, %v1035_v25  ;;  %v5885_v45 = vshll.u32 %v2917_v37, 8  ;;  %v5889_v9 = vand.u32 8388607, %v1141_v33  ;;  %v2922_v1 = vshrl.u32 %v2921_v42, 5 }
 0x1c2   : > { %4055 = vst [vmem:[%s5408_s15 + $0x10] sm:$0xff] %v1036_v0  ;;  %v2681_v44 = vxor.u32 2147483648, %v2680_v56  ;;  %v2927_v51 = vshrl.u32 %v4889_v22, %v2924_v54  ;;  %v2930_v5 = vshrl.u32 %v4890_v24, %v2924_v54  ;;  %v4262_v15 = vmin.u32 %v1311_v53, %v5877_v60 }
 0x1c3   : > { %v2926_v11 = vshll.u32 %v4888_v18, %v2923_v41  ;;  %v2929_v59 = vshll.u32 %v4889_v22, %v2923_v41  ;;  %v2933_v6 = vshrl.u32 %v4891_v26, %v2924_v54  ;;  %v5901_v16 = vsel %vm1247_vm10, %v1331_v36, %v1307_v27 }
 0x1c4   : > { %v2682_v31 = vsel %vm2599_vm4, %v2681_v44, %v2680_v56  ;;  %v2932_v58 = vshll.u32 %v4890_v24, %v2923_v41  ;;  %v4257_v2 = vadd.s32 4294967169, %v1145_v10  ;;  %v1313_v14 = vclz %v4262_v15 }
 0x1c5   : > { %v2685_v57 = vsel %vm5846_vm2, %v5623_v38, %v2682_v31  ;;  %v2928_v21 = vor.u32 %v2927_v51, %v2926_v11  ;;  %v2931_v3 = vor.u32 %v2930_v5, %v2929_v59  ;;  %v2935_v23 = vshll.u32 %v4891_v26, %v2923_v41  ;;  %v588_v51 = vpop.f32.mrf.mxu1 }
 0x1c6   : > { %4695 = vcosq.f32 %v2685_v57  ;;  %v2934_v12 = vor.u32 %v2933_v6, %v2932_v58  ;;  %v2936_v8 = vshrl.u32 %v4892_v28, %v2924_v54  ;;  %v4263_v32 = vadd.s32 4294967294, %v1313_v14 }
 0x1c7   : > { %4697 = vsinq.f32 %v2685_v57  ;;  %v2938_v29 = vshll.u32 %v4892_v28, %v2923_v41  ;;  %v2939_v4 = vshrl.u32 %v4893_v35, %v2924_v54  ;;  %vm5913_vm13 = vcmp.le.f32.partialorder %v1245_v55, 0.7853982 }
 0x1c8   : > { %v2925_v34 = vshrl.u32 %v4888_v18, %v2924_v54  ;;  %v2937_v47 = vor.u32 %v2936_v8, %v2935_v23  ;;  %vm2941_vm14 = vcmp.lt.s32.totalorder %v2922_v1, 1  ;;  %vm2944_vm15 = vcmp.lt.s32.totalorder %v2922_v1, 4 }
 0x1c9   : > { %vm4264_vm0 = vcmp.lt.s32.totalorder %v4263_v32, 0  ;;  %v2940_v27 = vor.u32 %v2939_v4, %v2938_v29  ;;  %vm2942_vm1 = vcmp.lt.s32.totalorder %v2922_v1, 2  ;;  %v2946_v7 = vsel %vm2944_vm15, %v2934_v12, 2102212464 }
 0x1ca   : > { %v1316_v49 = vsel %vm4264_vm0, 0, %v4263_v32  ;;  %vm2943_vm3 = vcmp.lt.s32.totalorder %v2922_v1, 3  ;;  %v2949_v40 = vsel %vm2941_vm14, %v2928_v21, %v2931_v3  ;;  %v2950_v42 = vsel %vm2944_vm15, %v2937_v47, 920167782 }
 0x1cb   : > { %v1317_v55 = vsub.s32 32, %v1316_v49  ;;  %v1321_v62 = vsub.s32 4294967266, %v1316_v49  ;;  %v2945_v46 = vsel %vm2941_vm14, %v2925_v34, %v2928_v21  ;;  %v2947_v37 = vsel %vm2943_vm3, %v2931_v3, %v2946_v7 }
 0x1cc   : > { %v1318_v50 = vshll.u32 %v5877_v60, %v1316_v49  ;;  %v2951_v13 = vsel %vm2943_vm3, %v2934_v12, %v2950_v42  ;;  %v2953_v20 = vsel %vm2941_vm14, %v2931_v3, %v2934_v12  ;;  %v2954_v41 = vsel %vm2944_vm15, %v2940_v27, 1326507024 }
 0x1cd   : > { %v1319_v25 = vshrl.u32 %v1301_v30, %v1317_v55  ;;  %v1322_v10 = vadd.s32 127, %v1321_v62  ;;  %v2952_v0 = vsel %vm2942_vm1, %v2949_v40, %v2951_v13  ;;  %v2955_v56 = vsel %vm2943_vm3, %v2937_v47, %v2954_v41 }
 0x1ce   : > { %v2956_v36 = vsel %vm2942_vm1, %v2953_v20, %v2955_v56  ;;  %v5928_v54 = vmul.u32.u64.low %v5885_v45, %v2952_v0  ;;  %v5929_v53 = vmul.u32.u64.high %v5885_v45, %v2952_v0, %v5928_v54  ;;  %v1151_v44 = vadd.s32 1, %v4257_v2 }
 0x1cf   : > { %v1320_v60 = vor.u32 %v1319_v25, %v1318_v50  ;;  %v1323_v5 = vshll.u32 %v1322_v10, 23  ;;  %v5933_v15 = vmul.u32.u64.low %v5885_v45, %v2956_v36  ;;  %v5934_v11 = vmul.u32.u64.high %v5885_v45, %v2956_v36, %v5933_v15  ;;  %v4431_v10 = vpop.f32.mrf.mxu0 }
 0x1d0   : > { %vm2689_vm2 = vweird.f32 %v5623_v38  ;;  %vm2692_vm4 = vcmp.lt.s32.totalorder %v5875_v63, 2  ;;  %vm2693_vm5 = vcmp.eq.s32.totalorder %v5875_v63, 0  ;;  %v2948_v30 = vsel %vm2942_vm1, %v2945_v46, %v2947_v37 }
 0x1d1   : > { %vm1152_vm6 = vcmp.gt.s32.totalorder %v1151_v44, 0  ;;  %v1324_v59 = vor.u32 4788187, %v1323_v5  ;;  %v1334_v6 = vsel %vm5913_vm13, 0, %v5901_v16  ;;  %v589_v58 = vadd.f32 %v5587_v48, %v588_v51 }
 0x1d2   : > { %v1153_v31 = vsel %vm1152_vm6, %v1151_v44, 0  ;;  %vm2696_vm7 = vcmp.eq.s32.totalorder %v5875_v63, 2  ;;  %v2967_v2 = vadd.s32 1, %v5929_v53  ;;  %v1149_v57 = vor.u32 8388608, %v5889_v9 }
 0x1d3   : > { %v1155_v14 = vand.u32 31, %v1153_v31  ;;  %v4696_v21 = vpop.eup %4695  ;;  %v1325_v3 = vand.u32 2147483647, %v1324_v59  ;;  %v1327_v1 = vcvt.s32.f32 %v1320_v60  ;;  %v2964_v12 = vmul.u32 %v5885_v45, %v2948_v30 }
 0x1d4   : > { %vm2966_vm8 = vc.u32 %v5934_v11, %v5928_v54  ;;  %v4698_v23 = vpop.eup %4697  ;;  %v2697_v16 = vxor.u32 2147483648, %v4696_v21  ;;  %v1338_v8 = vadd.s32 3, %v1334_v6  ;;  %v674_v9 = vmul.f32 %v5545_v61, %v589_v58 }
 0x1d5   : > { %v2968_v32 = vsel %vm2966_vm8, %v2967_v2, %v5929_v53  ;;  %v1156_v29 = vsub.s32 32, %v1155_v14  ;;  %v2694_v4 = vxor.u32 2147483648, %v4698_v23  ;;  %v1328_v34 = vmul.f32 %v1327_v1, %v1325_v3 }
 0x1d6   : > { %v2969_v47 = vadd.s32 %v2968_v32, %v2964_v12  ;;  %v2698_v27 = vsel %vm2696_vm7, %v2697_v16, %v4698_v23  ;;  %v5954_v7 = vshrl.u32 %v1153_v31, 5  ;;  %v1158_v62 = vshll.u32 %v4888_v18, %v1155_v14  ;;  %v5988_v31 = vld [vmem:[%s5083_s12] ss:$0 sm:$0xff] }
 0x1d7   : > { %v1159_v45 = vshrl.u32 %v4889_v22, %v1156_v29  ;;  %v1162_v49 = vshrl.u32 %v4890_v24, %v1156_v29  ;;  %v2695_v40 = vsel %vm2693_vm5, %v4696_v21, %v2694_v4  ;;  %v1329_v42 = vxor.u32 2147483648, %v1328_v34 }
 0x1d8   : > { %v2970_v55 = vadd.s32 536870912, %v2969_v47  ;;  %v2699_v61 = vsel %vm2692_vm4, %v2695_v40, %v2698_v27  ;;  %v1161_v46 = vshll.u32 %v4889_v22, %v1155_v14  ;;  %v1164_v37 = vshll.u32 %v4890_v24, %v1155_v14  ;;  %v6015_v27 = vld [vmem:[%s5072_s7] ss:$0 sm:$0xff] }
 0x1d9   : > { %v1165_v50 = vshrl.u32 %v4891_v26, %v1156_v29  ;;  %v2700_v13 = vsel %vm2689_vm2, nan, %v2699_v61  ;;  %v1330_v20 = vsel %vm1247_vm10, %v1329_v42, %v1328_v34  ;;  %v1160_v25 = vor.u32 %v1159_v45, %v1158_v62 }
 0x1da   : > { %v2971_v41 = vshrl.u32 %v2970_v55, 30  ;;  %4071 = vst [vmem:[%s5408_s15 + $0x90] sm:$0xff] %v2700_v13  ;;  %v1333_v63 = vsel %vm5913_vm13, %v5683_v39, %v1330_v20  ;;  %v1163_v0 = vor.u32 %v1162_v49, %v1161_v46  ;;  %v1167_v56 = vshll.u32 %v4891_v26, %v1155_v14 }
 0x1db   : > { %v1168_v36 = vshrl.u32 %v4892_v28, %v1156_v29  ;;  %4699 = vcosq.f32 %v1333_v63  ;;  %v1170_v53 = vshll.u32 %v4892_v28, %v1155_v14  ;;  %v1171_v44 = vshrl.u32 %v4893_v35, %v1156_v29 }
 0x1dc   : > { %v2972_v38 = vshll.u32 %v2971_v41, 30  ;;  %4701 = vsinq.f32 %v1333_v63  ;;  %v1166_v51 = vor.u32 %v1165_v50, %v1164_v37  ;;  %v524_v5 = vadd.f32 %v5587_v48, %v4431_v10 }
 0x1dd   : > { %v1169_v60 = vor.u32 %v1168_v36, %v1167_v56  ;;  %v5979_v15 = vand.u32 3, %v1338_v8  ;;  %v1172_v30 = vor.u32 %v1171_v44, %v1170_v53  ;;  %vm1173_vm9 = vcmp.lt.s32.totalorder %v5954_v7, 1 }
 0x1de   : > { %v5981_v43 = vsub.s32 %v2969_v47, %v2972_v38  ;;  %vm1176_vm10 = vcmp.lt.s32.totalorder %v5954_v7, 4  ;;  %v1181_v59 = vsel %vm1173_vm9, %v1160_v25, %v1163_v0  ;;  %v1189_v6 = vshll.u32 %v1149_v57, 8 }
 0x1df   : > { %v5991_v58 = vadd.f32 %v5988_v31, %v674_v9  ;;  %v1157_v2 = vshrl.u32 %v4888_v18, %v1156_v29  ;;  %vm1175_vm11 = vcmp.lt.s32.totalorder %v5954_v7, 3  ;;  %v1182_v14 = vsel %vm1176_vm10, %v1169_v60, 920167782 }
 0x1e0   : > { %v2975_v48 = vsub.s32 0, %v5981_v43  ;;  %vm1174_vm12 = vcmp.lt.s32.totalorder %v5954_v7, 2  ;;  %v1178_v21 = vsel %vm1176_vm10, %v1166_v51, 2102212464  ;;  %v1183_v3 = vsel %vm1175_vm11, %v1166_v51, %v1182_v14 }
 0x1e1   : > { %v1186_v1 = vsel %vm1176_vm10, %v1172_v30, 1326507024  ;;  %v2995_v12 = vsub.s32 4, %v2971_v41  ;;  %v1184_v23 = vsel %vm1174_vm12, %v1181_v59, %v1183_v3  ;;  %v1185_v16 = vsel %vm1173_vm9, %v1163_v0, %v1166_v51 }
 0x1e2   : > { %v4326_v57 = vmin.u32 %v2975_v48, %v5981_v43  ;;  %vm6004_vm13 = vcmp.le.f32.partialorder %v2909_v52, 0.7853982  ;;  %v1187_v32 = vsel %vm1175_vm11, %v1169_v60, %v1186_v1  ;;  %v1177_v47 = vsel %vm1173_vm9, %v1157_v2, %v1160_v25 }
 0x1e3   : > { %v6008_v29 = vmul.u32.u64.low %v1189_v6, %v1184_v23  ;;  %v6009_v4 = vmul.u32.u64.high %v1189_v6, %v1184_v23, %v6008_v29  ;;  %v1179_v9 = vsel %vm1175_vm11, %v1163_v0, %v1178_v21  ;;  %v661_v45 = vmul.f32 %v6015_v27, %v524_v5  ;;  %v6060_v23 = vld [vmem:[%s7792_s2] ss:$0 sm:$0xff] }
 0x1e4   : > { %v2977_v34 = vclz %v4326_v57  ;;  %vm1340_vm14 = vcmp.lt.s32.totalorder %v5979_v15, 2  ;;  %vm2911_vm15 = vcmp.lt.s32.totalorder %v5823_v19, 0  ;;  %v1188_v52 = vsel %vm1174_vm12, %v1185_v16, %v1187_v32 }
 0x1e5   : > { %v2808_v49 = vand.u32 2139095040, %v5991_v58  ;;  %vm1337_vm0 = vweird.f32 %v5683_v39  ;;  %v2996_v42 = vsel %vm2911_vm15, %v2995_v12, %v2971_v41  ;;  %vm1341_vm1 = vcmp.eq.s32.totalorder %v5979_v15, 0 }
 0x1e6   : > { %v4327_v40 = vadd.s32 4294967294, %v2977_v34  ;;  %v6026_v55 = vmul.u32.u64.low %v1189_v6, %v1188_v52  ;;  %v6027_v62 = vmul.u32.u64.high %v1189_v6, %v1188_v52, %v6026_v55  ;;  %vm1344_vm3 = vcmp.eq.s32.totalorder %v5979_v15, 2 }
 0x1e7   : > { %v1180_v61 = vsel %vm1174_vm12, %v1177_v47, %v1179_v9  ;;  %v2809_v46 = vshrl.u32 %v2808_v49, 23  ;;  %v2965_v37 = vadd.s32 %v5928_v54, %v5934_v11  ;;  %v1199_v50 = vadd.s32 1, %v6009_v4 }
 0x1e8   : > { %vm4328_vm2 = vcmp.lt.s32.totalorder %v4327_v40, 0  ;;  %v6037_v13 = vadd.f32 %v5988_v31, %v661_v45  ;;  %v4700_v20 = vpop.eup %4699  ;;  %v2998_v25 = vsel %vm6004_vm13, 0, %v2996_v42  ;;  %v2805_v10 = vand.u32 2147483647, %v5991_v58 }
 0x1e9   : > { %v2980_v41 = vsel %vm4328_vm2, 0, %v4327_v40  ;;  %v4321_v63 = vadd.s32 4294967169, %v2809_v46  ;;  %v4702_v7 = vpop.eup %4701  ;;  %v1345_v0 = vxor.u32 2147483648, %v4700_v20  ;;  %v1196_v38 = vmul.u32 %v1189_v6, %v1180_v61 }
 0x1ea   : > { %v2981_v56 = vsub.s32 32, %v2980_v41  ;;  %v2985_v36 = vsub.s32 4294967266, %v2980_v41  ;;  %v1342_v54 = vxor.u32 2147483648, %v4702_v7  ;;  %v2982_v11 = vshll.u32 %v5981_v43, %v2980_v41  ;;  %v4455_v43 = vpop.f32.mrf.mxu1 }
 0x1eb   : > { %vm1198_vm4 = vc.u32 %v6027_v62, %v6008_v29  ;;  %v2815_v53 = vadd.s32 1, %v4321_v63  ;;  %v1346_v44 = vsel %vm1344_vm3, %v1345_v0, %v4702_v7  ;;  %v2812_v6 = vand.u32 8388607, %v2805_v10 }
 0x1ec   : > { %v2983_v51 = vshrl.u32 %v2965_v37, %v2981_v56  ;;  %v2986_v60 = vadd.s32 127, %v2985_v36  ;;  %v1200_v5 = vsel %vm1198_vm4, %v1199_v50, %v6009_v4  ;;  %v1343_v30 = vsel %vm1341_vm1, %v4700_v20, %v1342_v54 }
 0x1ed   : > { %v1201_v59 = vadd.s32 %v1200_v5, %v1196_v38  ;;  %vm2816_vm5 = vcmp.gt.s32.totalorder %v2815_v53, 0  ;;  %v1347_v48 = vsel %vm1340_vm14, %v1343_v30, %v1346_v44  ;;  %v6063_v16 = vadd.f32 %v6060_v23, %v4455_v43 }
 0x1ee   : > { %v2984_v2 = vor.u32 %v2983_v51, %v2982_v11  ;;  %v2987_v14 = vshll.u32 %v2986_v60, 23  ;;  %v2817_v21 = vsel %vm2816_vm5, %v2815_v53, 0  ;;  %v1348_v3 = vsel %vm1337_vm0, nan, %v1347_v48 }
 0x1ef   : > { %v1202_v1 = vadd.s32 536870912, %v1201_v59  ;;  %v2819_v57 = vand.u32 31, %v2817_v21  ;;  %4058 = vst [vmem:[%s5408_s15 + $0x28] sm:$0xff] %v1348_v3  ;;  %v6065_v15 = vadd.s32 3, %v2998_v25  ;;  %vm1143_vm6 = vcmp.lt.s32.totalorder %v5864_v17, 0 }
 0x1f0   : > { %v2988_v12 = vor.u32 4788187, %v2987_v14  ;;  %v1453_v39 = vand.u32 2147483647, %v6037_v13  ;;  %v2991_v47 = vcvt.s32.f32 %v2984_v2  ;;  %v2813_v9 = vor.u32 8388608, %v2812_v6 }
 0x1f1   : > { %v1203_v32 = vshrl.u32 %v1202_v1, 30  ;;  %v2820_v4 = vsub.s32 32, %v2819_v57  ;;  %v1456_v45 = vand.u32 2139095040, %v6037_v13  ;;  %v2818_v49 = vshrl.u32 %v2817_v21, 5 }
 0x1f2   : > { %v2989_v34 = vand.u32 2147483647, %v2988_v12  ;;  %v2822_v40 = vshll.u32 %v4888_v18, %v2819_v57  ;;  %v2825_v20 = vshll.u32 %v4889_v22, %v2819_v57  ;;  %v2828_v41 = vshll.u32 %v4890_v24, %v2819_v57 }
 0x1f3   : > { %v1204_v52 = vshll.u32 %v1203_v32, 30  ;;  %v2823_v42 = vshrl.u32 %v4889_v22, %v2820_v4  ;;  %v2826_v61 = vshrl.u32 %v4890_v24, %v2820_v4  ;;  %v2829_v46 = vshrl.u32 %v4891_v26, %v2820_v4 }
 0x1f4   : > { %v2992_v55 = vmul.f32 %v2991_v47, %v2989_v34  ;;  %v2832_v37 = vshrl.u32 %v4892_v28, %v2820_v4  ;;  %v2835_v25 = vshrl.u32 %v4893_v35, %v2820_v4  ;;  %v1227_v7 = vsub.s32 4, %v1203_v32 }
 0x1f5   : > { %v6075_v50 = vsub.s32 %v1201_v59, %v1204_v52  ;;  %v2831_v0 = vshll.u32 %v4891_v26, %v2819_v57  ;;  %v2834_v56 = vshll.u32 %v4892_v28, %v2819_v57  ;;  %v2824_v38 = vor.u32 %v2823_v42, %v2822_v40 }
 0x1f6   : > { %v2993_v63 = vxor.u32 2147483648, %v2992_v55  ;;  %v2827_v54 = vor.u32 %v2826_v61, %v2825_v20  ;;  %v2830_v11 = vor.u32 %v2829_v46, %v2828_v41  ;;  %v2853_v51 = vshll.u32 %v2813_v9, 8 }
 0x1f7   : > { %v1207_v36 = vsub.s32 0, %v6075_v50  ;;  %v2833_v44 = vor.u32 %v2832_v37, %v2831_v0  ;;  %v1457_v60 = vshrl.u32 %v1456_v45, 23  ;;  %vm6090_vm7 = vcmp.le.f32.partialorder %v1141_v33, 0.7853982 }
 0x1f8   : > { %v2994_v53 = vsel %vm2911_vm15, %v2993_v63, %v2992_v55  ;;  %v2821_v6 = vshrl.u32 %v4888_v18, %v2820_v4  ;;  %v2836_v43 = vor.u32 %v2835_v25, %v2834_v56  ;;  %v1228_v48 = vsel %vm1143_vm6, %v1227_v7, %v1203_v32 }
 0x1f9   : > { %v2997_v5 = vsel %vm6004_vm13, %v5823_v19, %v2994_v53  ;;  %v4258_v59 = vmin.u32 %v1207_v36, %v6075_v50  ;;  %vm2837_vm8 = vcmp.lt.s32.totalorder %v2818_v49, 1  ;;  %vm2840_vm9 = vcmp.lt.s32.totalorder %v2818_v49, 4 }
 0x1fa   : > { %4703 = vcosq.f32 %v2997_v5  ;;  %v2842_v2 = vsel %vm2840_vm9, %v2830_v11, 2102212464  ;;  %v2845_v14 = vsel %vm2837_vm8, %v2824_v38, %v2827_v54  ;;  %vm2838_vm10 = vcmp.lt.s32.totalorder %v2818_v49, 2 }
 0x1fb   : > { %4705 = vsinq.f32 %v2997_v5  ;;  %v1209_v8 = vclz %v4258_v59  ;;  %vm2839_vm11 = vcmp.lt.s32.totalorder %v2818_v49, 3  ;;  %v2846_v33 = vsel %vm2840_vm9, %v2833_v44, 920167782 }
 0x1fc   : > { %v2849_v21 = vsel %vm2837_vm8, %v2827_v54, %v2830_v11  ;;  %v2841_v1 = vsel %vm2837_vm8, %v2821_v6, %v2824_v38  ;;  %v2847_v57 = vsel %vm2839_vm11, %v2830_v11, %v2846_v33  ;;  %v2850_v12 = vsel %vm2840_vm9, %v2836_v43, 1326507024 }
 0x1fd   : > { %v4259_v3 = vadd.s32 4294967294, %v1209_v8  ;;  %v2843_v4 = vsel %vm2839_vm11, %v2827_v54, %v2842_v2  ;;  %v2848_v34 = vsel %vm2838_vm10, %v2845_v14, %v2847_v57  ;;  %v2851_v47 = vsel %vm2839_vm11, %v2833_v44, %v2850_v12 }
 0x1fe   : > { %v4269_v9 = vadd.s32 4294967169, %v1457_v60  ;;  %v2852_v32 = vsel %vm2838_vm10, %v2849_v21, %v2851_v47  ;;  %v6100_v45 = vmul.u32.u64.low %v2853_v51, %v2848_v34  ;;  %v6101_v52 = vmul.u32.u64.high %v2853_v51, %v2848_v34, %v6100_v45 }
 0x1ff   : > { %vm4260_vm12 = vcmp.lt.s32.totalorder %v4259_v3, 0  ;;  %v1197_v40 = vadd.s32 %v6008_v29, %v6027_v62  ;;  %v6106_v55 = vmul.u32.u64.low %v2853_v51, %v2852_v32  ;;  %v6107_v61 = vmul.u32.u64.high %v2853_v51, %v2852_v32, %v6106_v55 }
 0x200   : > { %v1212_v42 = vsel %vm4260_vm12, 0, %v4259_v3  ;;  %v2844_v20 = vsel %vm2838_vm10, %v2841_v1, %v2843_v4  ;;  %v1463_v41 = vadd.s32 1, %v4269_v9  ;;  %v3003_v25 = vand.u32 3, %v6065_v15 }
 0x201   : > { %v1213_v46 = vsub.s32 32, %v1212_v42  ;;  %v1217_v37 = vsub.s32 4294967266, %v1212_v42  ;;  %v1214_v63 = vshll.u32 %v6075_v50, %v1212_v42  ;;  %v1230_v7 = vsel %vm6090_vm7, 0, %v1228_v48 }
 0x202   : > { %v2863_v29 = vadd.s32 1, %v6101_v52  ;;  %vm1464_vm13 = vcmp.gt.s32.totalorder %v1463_v41, 0  ;;  %v2860_v62 = vmul.u32 %v2853_v51, %v2844_v20  ;;  %vm2862_vm14 = vc.u32 %v6107_v61, %v6100_v45 }
 0x203   : > { %v1215_v0 = vshrl.u32 %v1197_v40, %v1213_v46  ;;  %v1218_v56 = vadd.s32 127, %v1217_v37  ;;  %v6119_v49 = vand.u32 8388607, %v1453_v39  ;;  %v1465_v36 = vsel %vm1464_vm13, %v1463_v41, 0  ;;  %v518_v37 = vpop.f32.mrf.mxu0 }
 0x204   : > { %v2864_v50 = vsel %vm2862_vm14, %v2863_v29, %v6101_v52  ;;  %v677_v54 = vmul.f32 %v6015_v27, %v6063_v16  ;;  %vm3001_vm15 = vweird.f32 %v5823_v19  ;;  %vm3004_vm0 = vcmp.lt.s32.totalorder %v3003_v25, 2 }
 0x205   : > { %v1216_v15 = vor.u32 %v1215_v0, %v1214_v63  ;;  %v1219_v38 = vshll.u32 %v1218_v56, 23  ;;  %v2865_v11 = vadd.s32 %v2864_v50, %v2860_v62  ;;  %v1467_v53 = vand.u32 31, %v1465_v36 }
 0x206   : > { %vm3005_vm1 = vcmp.eq.s32.totalorder %v3003_v25, 0  ;;  %vm3008_vm3 = vcmp.eq.s32.totalorder %v3003_v25, 2  ;;  %v6125_v60 = vadd.s32 3, %v1230_v7  ;;  %v1461_v43 = vor.u32 8388608, %v6119_v49 }
 0x207   : > { %v4704_v44 = vpop.eup %4703  ;;  %v1220_v51 = vor.u32 4788187, %v1219_v38  ;;  %v2866_v6 = vadd.s32 536870912, %v2865_v11  ;;  %v1468_v48 = vsub.s32 32, %v1467_v53  ;;  %v1223_v16 = vcvt.s32.f32 %v1216_v15 }
 0x208   : > { %v4706_v5 = vpop.eup %4705  ;;  %v3009_v59 = vxor.u32 2147483648, %v4704_v44  ;;  %v6129_v14 = vadd.f32 %v5988_v31, %v677_v54  ;;  %v1470_v3 = vshll.u32 %v4888_v18, %v1467_v53  ;;  %v1466_v32 = vshrl.u32 %v1465_v36, 5 }
 0x209   : > { %v3006_v8 = vxor.u32 2147483648, %v4706_v5  ;;  %v1221_v2 = vand.u32 2147483647, %v1220_v51  ;;  %v2867_v21 = vshrl.u32 %v2866_v6, 30  ;;  %v1471_v1 = vshrl.u32 %v4889_v22, %v1468_v48 }
 0x20a   : > { %v3010_v33 = vsel %vm3008_vm3, %v3009_v59, %v4706_v5  ;;  %v1474_v4 = vshrl.u32 %v4890_v24, %v1468_v48  ;;  %v1477_v34 = vshrl.u32 %v4891_v26, %v1468_v48  ;;  %v1473_v52 = vshll.u32 %v4889_v22, %v1467_v53 }
 0x20b   : > { %v3007_v57 = vsel %vm3005_vm1, %v4704_v44, %v3006_v8  ;;  %v1224_v12 = vmul.f32 %v1223_v16, %v1221_v2  ;;  %v2868_v9 = vshll.u32 %v2867_v21, 30  ;;  %vm2807_vm2 = vcmp.lt.s32.totalorder %v5991_v58, 0 }
 0x20c   : > { %v3011_v47 = vsel %vm3004_vm0, %v3007_v57, %v3010_v33  ;;  %v1472_v55 = vor.u32 %v1471_v1, %v1470_v3  ;;  %v1476_v46 = vshll.u32 %v4890_v24, %v1467_v53  ;;  %v1475_v41 = vor.u32 %v1474_v4, %v1473_v52 }
 0x20d   : > { %v3012_v40 = vsel %vm3001_vm15, nan, %v3011_v47  ;;  %v1225_v42 = vxor.u32 2147483648, %v1224_v12  ;;  %v6143_v20 = vsub.s32 %v2865_v11, %v2868_v9  ;;  %v1479_v25 = vshll.u32 %v4891_v26, %v1467_v53 }
 0x20e   : > { %4074 = vst [vmem:[%s5408_s15 + $0xa8] sm:$0xff] %v3012_v40  ;;  %v1480_v63 = vshrl.u32 %v4892_v28, %v1468_v48  ;;  %v1478_v19 = vor.u32 %v1477_v34, %v1476_v46  ;;  %v1482_v0 = vshll.u32 %v4892_v28, %v1467_v53  ;;  %v1483_v56 = vshrl.u32 %v4893_v35, %v1468_v48 }
 0x20f   : > { %v1226_v7 = vsel %vm1143_vm6, %v1225_v42, %v1224_v12  ;;  %v2871_v62 = vsub.s32 0, %v6143_v20  ;;  %v519_v36 = vadd.f32 %v6060_v23, %v518_v37  ;;  %v1469_v15 = vshrl.u32 %v4888_v18, %v1468_v48 }
 0x210   : > { %v1229_v29 = vsel %vm6090_vm7, %v5864_v17, %v1226_v7  ;;  %v1481_v49 = vor.u32 %v1480_v63, %v1479_v25  ;;  %v1484_v38 = vor.u32 %v1483_v56, %v1482_v0  ;;  %vm1485_vm4 = vcmp.lt.s32.totalorder %v1466_v32, 1 }
 0x211   : > { %4707 = vcosq.f32 %v1229_v29  ;;  %v4322_v50 = vmin.u32 %v2871_v62, %v6143_v20  ;;  %v2891_v54 = vsub.s32 4, %v2867_v21  ;;  %vm1488_vm5 = vcmp.lt.s32.totalorder %v1466_v32, 4 }
 0x212   : > { %4709 = vsinq.f32 %v1229_v29  ;;  %v1490_v11 = vsel %vm1488_vm5, %v1478_v19, 2102212464  ;;  %v1493_v53 = vsel %vm1485_vm4, %v1472_v55, %v1475_v41  ;;  %v1494_v44 = vsel %vm1488_vm5, %v1481_v49, 920167782 }
 0x213   : > { %v1501_v30 = vshll.u32 %v1461_v43, 8  ;;  %v2873_v51 = vclz %v4322_v50  ;;  %vm1487_vm6 = vcmp.lt.s32.totalorder %v1466_v32, 3  ;;  %v1489_v5 = vsel %vm1485_vm4, %v1469_v15, %v1472_v55 }
 0x214   : > { %v1497_v59 = vsel %vm1485_vm4, %v1475_v41, %v1478_v19  ;;  %vm1486_vm7 = vcmp.lt.s32.totalorder %v1466_v32, 2  ;;  %v1491_v6 = vsel %vm1487_vm6, %v1475_v41, %v1490_v11  ;;  %v1495_v8 = vsel %vm1487_vm6, %v1478_v19, %v1494_v44 }
 0x215   : > { %v1498_v2 = vsel %vm1488_vm5, %v1484_v38, 1326507024  ;;  %v4323_v48 = vadd.s32 4294967294, %v2873_v51  ;;  %v2892_v16 = vsel %vm2807_vm2, %v2891_v54, %v2867_v21  ;;  %v1496_v33 = vsel %vm1486_vm7, %v1493_v53, %v1495_v8 }
 0x216   : > { %v1499_v3 = vsel %vm1487_vm6, %v1481_v49, %v1498_v2  ;;  %v1492_v1 = vsel %vm1486_vm7, %v1489_v5, %v1491_v6  ;;  %v6160_v12 = vmul.u32.u64.low %v1501_v30, %v1496_v33  ;;  %v6161_v4 = vmul.u32.u64.high %v1501_v30, %v1496_v33, %v6160_v12 }
 0x217   : > { %v1500_v57 = vsel %vm1486_vm7, %v1497_v59, %v1499_v3  ;;  %vm4324_vm8 = vcmp.lt.s32.totalorder %v4323_v48, 0  ;;  %v3120_v47 = vand.u32 2139095040, %v6129_v14  ;;  %v1235_v9 = vand.u32 3, %v6125_v60 }
 0x218   : > { %v6164_v43 = vmul.u32.u64.low %v1501_v30, %v1500_v57  ;;  %v6165_v34 = vmul.u32.u64.high %v1501_v30, %v1500_v57, %v6164_v43  ;;  %vm6171_vm9 = vcmp.le.f32.partialorder %v2805_v10, 0.7853982  ;;  %v2876_v32 = vsel %vm4324_vm8, 0, %v4323_v48 }
 0x219   : > { %v660_v52 = vmul.f32 %v6015_v27, %v519_v36  ;;  %v2861_v40 = vadd.s32 %v6100_v45, %v6107_v61  ;;  %v2877_v42 = vsub.s32 32, %v2876_v32  ;;  %v2881_v55 = vsub.s32 4294967266, %v2876_v32 }
 0x21a   : > { %v3121_v46 = vshrl.u32 %v3120_v47, 23  ;;  %v2894_v37 = vsel %vm6171_vm9, 0, %v2892_v16  ;;  %v1508_v41 = vmul.u32 %v1501_v30, %v1492_v1  ;;  %v1511_v60 = vadd.s32 1, %v6161_v4 }
 0x21b   : > { %v3117_v10 = vand.u32 2147483647, %v6129_v14  ;;  %v2878_v25 = vshll.u32 %v6143_v20, %v2876_v32  ;;  %v2879_v63 = vshrl.u32 %v2861_v40, %v2877_v42  ;;  %v2882_v7 = vadd.s32 127, %v2881_v55 }
 0x21c   : > { %vm1510_vm10 = vc.u32 %v6165_v34, %v6160_v12  ;;  %vm1236_vm11 = vcmp.lt.s32.totalorder %v1235_v9, 2  ;;  %v4333_v61 = vadd.s32 4294967169, %v3121_v46  ;;  %v6187_v19 = vadd.f32 %v5988_v31, %v660_v52 }
 0x21d   : > { %v1512_v45 = vsel %vm1510_vm10, %v1511_v60, %v6161_v4  ;;  %vm1237_vm12 = vcmp.eq.s32.totalorder %v1235_v9, 0  ;;  %v2880_v56 = vor.u32 %v2879_v63, %v2878_v25  ;;  %v2883_v29 = vshll.u32 %v2882_v7, 23 }
 0x21e   : > { %v4708_v0 = vpop.eup %4707  ;;  %v1513_v62 = vadd.s32 %v1512_v45, %v1508_v41  ;;  %vm1240_vm13 = vcmp.eq.s32.totalorder %v1235_v9, 2  ;;  %v2898_v36 = vadd.s32 3, %v2894_v37  ;;  %v3127_v15 = vadd.s32 1, %v4333_v61 }
 0x21f   : > { %v4710_v49 = vpop.eup %4709  ;;  %v1241_v20 = vxor.u32 2147483648, %v4708_v0  ;;  %v2884_v50 = vor.u32 4788187, %v2883_v29  ;;  %v3124_v11 = vand.u32 8388607, %v3117_v10  ;;  %v2887_v44 = vcvt.s32.f32 %v2880_v56 }
 0x220   : > { %v1238_v38 = vxor.u32 2147483648, %v4710_v49  ;;  %v1514_v54 = vadd.s32 536870912, %v1513_v62  ;;  %vm3128_vm14 = vcmp.gt.s32.totalorder %v3127_v15, 0  ;;  %v1352_v30 = vand.u32 2139095040, %v6187_v19 }
 0x221   : > { %v1242_v53 = vsel %vm1240_vm13, %v1241_v20, %v4710_v49  ;;  %v2885_v5 = vand.u32 2147483647, %v2884_v50  ;;  %v3129_v6 = vsel %vm3128_vm14, %v3127_v15, 0  ;;  %vm1233_vm15 = vweird.f32 %v5864_v17 }
 0x222   : > { %v1239_v51 = vsel %vm1237_vm12, %v4708_v0, %v1238_v38  ;;  %v6193_v59 = vshrl.u32 %v1514_v54, 30  ;;  %v3131_v2 = vand.u32 31, %v3129_v6  ;;  %v6199_v3 = vand.u32 3, %v2898_v36 }
 0x223   : > { %v1243_v8 = vsel %vm1236_vm11, %v1239_v51, %v1242_v53  ;;  %v2888_v16 = vmul.f32 %v2887_v44, %v2885_v5  ;;  %v3125_v1 = vor.u32 8388608, %v3124_v11  ;;  %v6203_v47 = vshrl.u32 %v3129_v6, 5 }
 0x224   : > { %v1244_v48 = vsel %vm1233_vm15, nan, %v1243_v8  ;;  %v1516_v33 = vshll.u32 %v6193_v59, 30  ;;  %v3132_v57 = vsub.s32 32, %v3131_v2  ;;  %v1353_v32 = vshrl.u32 %v1352_v30, 23 }
 0x225   : > { %4057 = vst [vmem:[%s5408_s15 + $0x20] sm:$0xff] %v1244_v48  ;;  %v2889_v4 = vxor.u32 2147483648, %v2888_v16  ;;  %v3134_v17 = vshll.u32 %v4888_v18, %v3131_v2  ;;  %v3137_v52 = vshll.u32 %v4889_v22, %v3131_v2  ;;  %v3140_v46 = vshll.u32 %v4890_v24, %v3131_v2 }
 0x226   : > { %v6201_v43 = vsub.s32 %v1513_v62, %v1516_v33  ;;  %v3135_v9 = vshrl.u32 %v4889_v22, %v3132_v57  ;;  %v3138_v40 = vshrl.u32 %v4890_v24, %v3132_v57  ;;  %v3141_v37 = vshrl.u32 %v4891_v26, %v3132_v57 }
 0x227   : > { %v2890_v42 = vsel %vm2807_vm2, %v2889_v4, %v2888_v16  ;;  %v3143_v25 = vshll.u32 %v4891_v26, %v3131_v2  ;;  %v3144_v63 = vshrl.u32 %v4892_v28, %v3132_v57  ;;  %v3146_v56 = vshll.u32 %v4892_v28, %v3131_v2 }
 0x228   : > { %v1519_v55 = vsub.s32 0, %v6201_v43  ;;  %v2893_v41 = vsel %vm6171_vm9, %v5991_v58, %v2890_v42  ;;  %v3136_v60 = vor.u32 %v3135_v9, %v3134_v17  ;;  %v3139_v45 = vor.u32 %v3138_v40, %v3137_v52 }
 0x229   : > { %4711 = vcosq.f32 %v2893_v41  ;;  %v3142_v61 = vor.u32 %v3141_v37, %v3140_v46  ;;  %v3145_v0 = vor.u32 %v3144_v63, %v3143_v25  ;;  %v3147_v29 = vshrl.u32 %v4893_v35, %v3132_v57 }
 0x22a   : > { %v4270_v7 = vmin.u32 %v1519_v55, %v6201_v43  ;;  %4713 = vsinq.f32 %v2893_v41  ;;  %vm1455_vm0 = vcmp.lt.s32.totalorder %v6037_v13, 0  ;;  %v1509_v21 = vadd.s32 %v6160_v12, %v6165_v34 }
 0x22b   : > { %v6225_v49 = vshll.u32 %v3125_v1, 8  ;;  %v1349_v20 = vand.u32 2147483647, %v6187_v19  ;;  %v3133_v36 = vshrl.u32 %v4888_v18, %v3132_v57  ;;  %v3148_v15 = vor.u32 %v3147_v29, %v3146_v56  ;;  %v598_v1 = vpop.f32.mrf.mxu1 }
 0x22c   : > { %v1521_v62 = vclz %v4270_v7  ;;  %vm3149_vm1 = vcmp.lt.s32.totalorder %v6203_v47, 1  ;;  %v4265_v38 = vadd.s32 4294967169, %v1353_v32  ;;  %vm3151_vm3 = vcmp.lt.s32.totalorder %v6203_v47, 3 }
 0x22d   : > { %vm3152_vm2 = vcmp.lt.s32.totalorder %v6203_v47, 4  ;;  %v3157_v54 = vsel %vm3149_vm1, %v3136_v60, %v3139_v45  ;;  %vm6236_vm4 = vcmp.le.f32.partialorder %v1453_v39, 0.7853982  ;;  %v3161_v53 = vsel %vm3149_vm1, %v3139_v45, %v3142_v61 }
 0x22e   : > { %v4271_v50 = vadd.s32 4294967294, %v1521_v62  ;;  %v3154_v34 = vsel %vm3152_vm2, %v3142_v61, 2102212464  ;;  %v3158_v11 = vsel %vm3152_vm2, %v3145_v0, 920167782  ;;  %vm3150_vm6 = vcmp.lt.s32.totalorder %v6203_v47, 2 }
 0x22f   : > { %v3162_v44 = vsel %vm3152_vm2, %v3148_v15, 1326507024  ;;  %v3159_v30 = vsel %vm3151_vm3, %v3142_v61, %v3158_v11  ;;  %v1539_v39 = vsub.s32 4, %v6193_v59  ;;  %v3153_v16 = vsel %vm3149_vm1, %v3133_v36, %v3136_v60 }
 0x230   : > { %vm4272_vm5 = vcmp.lt.s32.totalorder %v4271_v50, 0  ;;  %v3163_v51 = vsel %vm3151_vm3, %v3145_v0, %v3162_v44  ;;  %v3160_v6 = vsel %vm3150_vm6, %v3157_v54, %v3159_v30  ;;  %v3155_v33 = vsel %vm3151_vm3, %v3139_v45, %v3154_v34 }
 0x231   : > { %v1524_v5 = vsel %vm4272_vm5, 0, %v4271_v50  ;;  %v3164_v8 = vsel %vm3150_vm6, %v3161_v53, %v3163_v51  ;;  %v6261_v32 = vmul.u32.u64.low %v6225_v49, %v3160_v6  ;;  %v6262_v17 = vmul.u32.u64.high %v6225_v49, %v3160_v6, %v6261_v32 }
 0x232   : > { %v1525_v2 = vsub.s32 32, %v1524_v5  ;;  %v1529_v48 = vsub.s32 4294967266, %v1524_v5  ;;  %v6257_v57 = vmul.u32.u64.low %v6225_v49, %v3164_v8  ;;  %v6258_v4 = vmul.u32.u64.high %v6225_v49, %v3164_v8, %v6257_v57 }
 0x233   : > { %vm2897_vm7 = vweird.f32 %v5991_v58  ;;  %v1526_v9 = vshll.u32 %v6201_v43, %v1524_v5  ;;  %v1359_v42 = vadd.s32 1, %v4265_v38  ;;  %vm2900_vm8 = vcmp.lt.s32.totalorder %v6199_v3, 2 }
 0x234   : > { %v1527_v52 = vshrl.u32 %v1509_v21, %v1525_v2  ;;  %v1530_v40 = vadd.s32 127, %v1529_v48  ;;  %v1540_v55 = vsel %vm1455_vm0, %v1539_v39, %v6193_v59  ;;  %v3156_v46 = vsel %vm3150_vm6, %v3153_v16, %v3155_v33 }
 0x235   : > { %v599_v37 = vadd.f32 %v6060_v23, %v598_v1  ;;  %vm2901_vm9 = vcmp.eq.s32.totalorder %v6199_v3, 0  ;;  %vm1360_vm10 = vcmp.gt.s32.totalorder %v1359_v42, 0  ;;  %vm3174_vm11 = vc.u32 %v6258_v4, %v6261_v32 }
 0x236   : > { %v1528_v41 = vor.u32 %v1527_v52, %v1526_v9  ;;  %v1531_v60 = vshll.u32 %v1530_v40, 23  ;;  %v4712_v43 = vpop.eup %4711  ;;  %v3175_v25 = vadd.s32 1, %v6262_v17  ;;  %v1356_v63 = vand.u32 8388607, %v1349_v20 }
 0x237   : > { %v1361_v59 = vsel %vm1360_vm10, %v1359_v42, 0  ;;  %v4714_v7 = vpop.eup %4713  ;;  %v2905_v47 = vxor.u32 2147483648, %v4712_v43  ;;  %v1542_v61 = vsel %vm6236_vm4, 0, %v1540_v55  ;;  %v3172_v0 = vmul.u32 %v6225_v49, %v3156_v46 }
 0x238   : > { %v1532_v45 = vor.u32 4788187, %v1531_v60  ;;  %v2902_v56 = vxor.u32 2147483648, %v4714_v7  ;;  %vm2904_vm12 = vcmp.eq.s32.totalorder %v6199_v3, 2  ;;  %v3176_v29 = vsel %vm3174_vm11, %v3175_v25, %v6262_v17 }
 0x239   : > { %v1363_v21 = vand.u32 31, %v1361_v59  ;;  %v2906_v62 = vsel %vm2904_vm12, %v2905_v47, %v4714_v7  ;;  %v1535_v15 = vcvt.s32.f32 %v1528_v41  ;;  %v3177_v38 = vadd.s32 %v3176_v29, %v3172_v0 }
 0x23a   : > { %v1533_v36 = vand.u32 2147483647, %v1532_v45  ;;  %v2903_v50 = vsel %vm2901_vm9, %v4712_v43, %v2902_v56  ;;  %v1546_v54 = vadd.s32 3, %v1542_v61  ;;  %v676_v11 = vmul.f32 %v6015_v27, %v599_v37 }
 0x23b   : > { %v1364_v34 = vsub.s32 32, %v1363_v21  ;;  %v2907_v49 = vsel %vm2900_vm8, %v2903_v50, %v2906_v62  ;;  %v3178_v44 = vadd.s32 536870912, %v3177_v38  ;;  %v1357_v30 = vor.u32 8388608, %v1356_v63 }
 0x23c   : > { %v1536_v53 = vmul.f32 %v1535_v15, %v1533_v36  ;;  %v2908_v51 = vsel %vm2897_vm7, nan, %v2907_v49  ;;  %v1366_v5 = vshll.u32 %v4888_v18, %v1363_v21  ;;  %v1369_v48 = vshll.u32 %v4889_v22, %v1363_v21 }
 0x23d   : > { %v1367_v39 = vshrl.u32 %v4889_v22, %v1364_v34  ;;  %v1370_v6 = vshrl.u32 %v4890_v24, %v1364_v34  ;;  %4073 = vst [vmem:[%s5408_s15 + $0xa0] sm:$0xff] %v2908_v51  ;;  %v3179_v2 = vshrl.u32 %v3178_v44, 30  ;;  %v1373_v3 = vshrl.u32 %v4891_v26, %v1364_v34 }
 0x23e   : > { %v1537_v8 = vxor.u32 2147483648, %v1536_v53  ;;  %v1362_v16 = vshrl.u32 %v1361_v59, 5  ;;  %v1372_v33 = vshll.u32 %v4890_v24, %v1363_v21  ;;  %v1375_v1 = vshll.u32 %v4891_v26, %v1363_v21 }
 0x23f   : > { %v1376_v58 = vshrl.u32 %v4892_v28, %v1364_v34  ;;  %v3180_v17 = vshll.u32 %v3179_v2, 30  ;;  %v1368_v9 = vor.u32 %v1367_v39, %v1366_v5  ;;  %v1371_v52 = vor.u32 %v1370_v6, %v1369_v48 }
 0x240   : > { %v1538_v57 = vsel %vm1455_vm0, %v1537_v8, %v1536_v53  ;;  %v1378_v55 = vshll.u32 %v4892_v28, %v1363_v21  ;;  %v1379_v46 = vshrl.u32 %v4893_v35, %v1364_v34  ;;  %v1374_v41 = vor.u32 %v1373_v3, %v1372_v33 }
 0x241   : > { %v1541_v40 = vsel %vm6236_vm4, %v6037_v13, %v1538_v57  ;;  %v1377_v42 = vor.u32 %v1376_v58, %v1375_v1  ;;  %v6308_v37 = vsub.s32 %v3177_v38, %v3180_v17  ;;  %v6310_v60 = vand.u32 3, %v1546_v54 }
 0x242   : > { %4715 = vcosq.f32 %v1541_v40  ;;  %v1380_v43 = vor.u32 %v1379_v46, %v1378_v55  ;;  %v6313_v25 = vadd.f32 %v5988_v31, %v676_v11  ;;  %vm1381_vm13 = vcmp.lt.s32.totalorder %v1362_v16, 1 }
 0x243   : > { %4717 = vsinq.f32 %v1541_v40  ;;  %v3183_v63 = vsub.s32 0, %v6308_v37  ;;  %vm1384_vm14 = vcmp.lt.s32.totalorder %v1362_v16, 4  ;;  %v1397_v12 = vshll.u32 %v1357_v30, 8  ;;  %v4434_v30 = vpop.f32.mrf.mxu0 }
 0x244   : > { %v1365_v59 = vshrl.u32 %v4888_v18, %v1364_v34  ;;  %vm1383_vm15 = vcmp.lt.s32.totalorder %v1362_v16, 3  ;;  %v1389_v7 = vsel %vm1381_vm13, %v1368_v9, %v1371_v52  ;;  %v1390_v47 = vsel %vm1384_vm14, %v1377_v42, 920167782 }
 0x245   : > { %v4334_v45 = vmin.u32 %v3183_v63, %v6308_v37  ;;  %vm1382_vm0 = vcmp.lt.s32.totalorder %v1362_v16, 2  ;;  %v1386_v61 = vsel %vm1384_vm14, %v1374_v41, 2102212464  ;;  %v1391_v0 = vsel %vm1383_vm15, %v1374_v41, %v1390_v47 }
 0x246   : > { %v3203_v56 = vsub.s32 4, %v3179_v2  ;;  %v1392_v29 = vsel %vm1382_vm0, %v1389_v7, %v1391_v0  ;;  %v1393_v21 = vsel %vm1381_vm13, %v1371_v52, %v1374_v41  ;;  %v1394_v62 = vsel %vm1384_vm14, %v1380_v43, 1326507024 }
 0x247   : > { %vm3119_vm1 = vcmp.lt.s32.totalorder %v6129_v14, 0  ;;  %v3185_v36 = vclz %v4334_v45  ;;  %v1385_v15 = vsel %vm1381_vm13, %v1365_v59, %v1368_v9  ;;  %v1387_v38 = vsel %vm1383_vm15, %v1371_v52, %v1386_v61 }
 0x248   : > { %v1395_v50 = vsel %vm1383_vm15, %v1377_v42, %v1394_v62  ;;  %v6323_v54 = vmul.u32.u64.low %v1397_v12, %v1392_v29  ;;  %v6324_v34 = vmul.u32.u64.high %v1397_v12, %v1392_v29, %v6323_v54  ;;  %vm6328_vm3 = vcmp.le.f32.partialorder %v3117_v10, 0.7853982 }
 0x249   : > { %v4335_v49 = vadd.s32 4294967294, %v3185_v36  ;;  %v1396_v53 = vsel %vm1382_vm0, %v1393_v21, %v1395_v50  ;;  %v3016_v44 = vand.u32 2139095040, %v6313_v25  ;;  %vm1548_vm2 = vcmp.lt.s32.totalorder %v6310_v60, 2 }
 0x24a   : > { %v3204_v51 = vsel %vm3119_vm1, %v3203_v56, %v3179_v2  ;;  %v6337_v5 = vmul.u32.u64.low %v1397_v12, %v1396_v53  ;;  %v6338_v39 = vmul.u32.u64.high %v1397_v12, %v1396_v53, %v6337_v5  ;;  %v3013_v6 = vand.u32 2147483647, %v6313_v25 }
 0x24b   : > { %vm1545_vm4 = vweird.f32 %v6037_v13  ;;  %vm1552_vm5 = vcmp.eq.s32.totalorder %v6310_v60, 2  ;;  %vm4336_vm6 = vcmp.lt.s32.totalorder %v4335_v49, 0  ;;  %v1388_v10 = vsel %vm1382_vm0, %v1385_v15, %v1387_v38 }
 0x24c   : > { %v3017_v8 = vshrl.u32 %v3016_v44, 23  ;;  %v3173_v48 = vadd.s32 %v6261_v32, %v6258_v4  ;;  %v3188_v3 = vsel %vm4336_vm6, 0, %v4335_v49  ;;  %v1407_v33 = vadd.s32 1, %v6324_v34 }
 0x24d   : > { %v534_v2 = vadd.f32 %v6060_v23, %v4434_v30  ;;  %v3189_v1 = vsub.s32 32, %v3188_v3  ;;  %v3193_v58 = vsub.s32 4294967266, %v3188_v3  ;;  %v3206_v57 = vsel %vm6328_vm3, 0, %v3204_v51 }
 0x24e   : > { %v4329_v17 = vadd.s32 4294967169, %v3017_v8  ;;  %v3190_v52 = vshll.u32 %v6308_v37, %v3188_v3  ;;  %v1404_v16 = vmul.u32 %v1397_v12, %v1388_v10  ;;  %vm1406_vm7 = vc.u32 %v6338_v39, %v6323_v54 }
 0x24f   : > { %v4716_v9 = vpop.eup %4715  ;;  %v3020_v4 = vand.u32 8388607, %v3013_v6  ;;  %v3191_v42 = vshrl.u32 %v3173_v48, %v3189_v1  ;;  %v3194_v55 = vadd.s32 127, %v3193_v58  ;;  %v1408_v46 = vsel %vm1406_vm7, %v1407_v33, %v6324_v34 }
 0x250   : > { %v4718_v32 = vpop.eup %4717  ;;  %v1553_v40 = vxor.u32 2147483648, %v4716_v9  ;;  %v1409_v43 = vadd.s32 %v1408_v46, %v1404_v16  ;;  %v3023_v63 = vadd.s32 1, %v4329_v17  ;;  %v663_v59 = vmul.f32 %v6015_v27, %v534_v2 }
 0x251   : > { %v1550_v41 = vxor.u32 2147483648, %v4718_v32  ;;  %vm1549_vm8 = vcmp.eq.s32.totalorder %v6310_v60, 0  ;;  %v3192_v12 = vor.u32 %v3191_v42, %v3190_v52  ;;  %v3195_v7 = vshll.u32 %v3194_v55, 23 }
 0x252   : > { %v1554_v37 = vsel %vm1552_vm5, %v1553_v40, %v4718_v32  ;;  %v3210_v45 = vadd.s32 3, %v3206_v57  ;;  %v1410_v61 = vadd.s32 536870912, %v1409_v43  ;;  %vm3024_vm9 = vcmp.gt.s32.totalorder %v3023_v63, 0 }
 0x253   : > { %v1551_v47 = vsel %vm1549_vm8, %v4716_v9, %v1550_v41  ;;  %v3196_v56 = vor.u32 4788187, %v3195_v7  ;;  %v3021_v29 = vor.u32 8388608, %v3020_v4  ;;  %v3025_v21 = vsel %vm3024_vm9, %v3023_v63, 0 }
 0x254   : > { %v1555_v0 = vsel %vm1548_vm2, %v1551_v47, %v1554_v37  ;;  %v6363_v62 = vshrl.u32 %v1410_v61, 30  ;;  %v3027_v36 = vand.u32 31, %v3025_v21  ;;  %v6366_v15 = vadd.f32 %v5988_v31, %v663_v59 }
 0x255   : > { %v1556_v27 = vsel %vm1545_vm4, nan, %v1555_v0  ;;  %v3197_v38 = vand.u32 2147483647, %v3196_v56  ;;  %v3199_v50 = vcvt.s32.f32 %v3192_v12  ;;  %v6370_v53 = vand.u32 3, %v3210_v45 }
 0x256   : > { %4060 = vst [vmem:[%s5408_s15 + $0x38] sm:$0xff] %v1556_v27  ;;  %v1412_v34 = vshll.u32 %v6363_v62, 30  ;;  %v3028_v49 = vsub.s32 32, %v3027_v36  ;;  %v1405_v44 = vadd.s32 %v6323_v54, %v6338_v39  ;;  %v6376_v51 = vshll.u32 %v3021_v29, 8 }
 0x257   : > { %v3200_v60 = vmul.f32 %v3199_v50, %v3197_v38  ;;  %v1664_v31 = vand.u32 2139095040, %v6366_v15  ;;  %v3030_v10 = vshll.u32 %v4888_v18, %v3027_v36  ;;  %v3033_v33 = vshll.u32 %v4889_v22, %v3027_v36 }
 0x258   : > { %v6373_v30 = vsub.s32 %v1409_v43, %v1412_v34  ;;  %v3031_v13 = vshrl.u32 %v4889_v22, %v3028_v49  ;;  %v3034_v8 = vshrl.u32 %v4890_v24, %v3028_v49  ;;  %v3037_v48 = vshrl.u32 %v4891_v26, %v3028_v49  ;;  %v4458_v34 = vpop.f32.mrf.mxu1 }
 0x259   : > { %v3201_v5 = vxor.u32 2147483648, %v3200_v60  ;;  %v3036_v54 = vshll.u32 %v4890_v24, %v3027_v36  ;;  %v3040_v39 = vshrl.u32 %v4892_v28, %v3028_v49  ;;  %v3026_v1 = vshrl.u32 %v3025_v21, 5 }
 0x25a   : > { %v1415_v3 = vsub.s32 0, %v6373_v30  ;;  %v3032_v58 = vor.u32 %v3031_v13, %v3030_v10  ;;  %v3039_v57 = vshll.u32 %v4891_v26, %v3027_v36  ;;  %v3035_v52 = vor.u32 %v3034_v8, %v3033_v33 }
 0x25b   : > { %v3202_v2 = vsel %vm3119_vm1, %v3201_v5, %v3200_v60  ;;  %v3038_v16 = vor.u32 %v3037_v48, %v3036_v54  ;;  %v3042_v32 = vshll.u32 %v4892_v28, %v3027_v36  ;;  %v3043_v40 = vshrl.u32 %v4893_v35, %v3028_v49 }
 0x25c   : > { %v3205_v17 = vsel %vm6328_vm3, %v6129_v14, %v3202_v2  ;;  %v4266_v9 = vmin.u32 %v1415_v3, %v6373_v30  ;;  %v3041_v4 = vor.u32 %v3040_v39, %v3039_v57  ;;  %vm1351_vm10 = vcmp.lt.s32.totalorder %v6187_v19, 0 }
 0x25d   : > { %4719 = vcosq.f32 %v3205_v17  ;;  %v1661_v55 = vand.u32 2147483647, %v6366_v15  ;;  %v1665_v46 = vshrl.u32 %v1664_v31, 23  ;;  %v1435_v11 = vsub.s32 4, %v6363_v62 }
 0x25e   : > { %4721 = vsinq.f32 %v3205_v17  ;;  %v1417_v42 = vclz %v4266_v9  ;;  %v3029_v41 = vshrl.u32 %v4888_v18, %v3028_v49  ;;  %v3044_v43 = vor.u32 %v3043_v40, %v3042_v32 }
 0x25f   : > { %vm3045_vm11 = vcmp.lt.s32.totalorder %v3026_v1, 1  ;;  %vm3047_vm12 = vcmp.lt.s32.totalorder %v3026_v1, 3  ;;  %vm3048_vm13 = vcmp.lt.s32.totalorder %v3026_v1, 4  ;;  %vm6401_vm14 = vcmp.le.f32.partialorder %v1349_v20, 0.7853982 }
 0x260   : > { %v4267_v63 = vadd.s32 4294967294, %v1417_v42  ;;  %v3053_v59 = vsel %vm3045_vm11, %v3032_v58, %v3035_v52  ;;  %v3050_v12 = vsel %vm3048_vm13, %v3038_v16, 2102212464  ;;  %v3054_v7 = vsel %vm3048_vm13, %v3041_v4, 920167782 }
 0x261   : > { %v3057_v47 = vsel %vm3045_vm11, %v3035_v52, %v3038_v16  ;;  %v3058_v45 = vsel %vm3048_vm13, %v3044_v43, 1326507024  ;;  %vm3046_vm0 = vcmp.lt.s32.totalorder %v3026_v1, 2  ;;  %v3055_v61 = vsel %vm3047_vm12, %v3038_v16, %v3054_v7 }
 0x262   : > { %vm4268_vm15 = vcmp.lt.s32.totalorder %v4267_v63, 0  ;;  %v3059_v0 = vsel %vm3047_vm12, %v3041_v4, %v3058_v45  ;;  %v3049_v29 = vsel %vm3045_vm11, %v3029_v41, %v3032_v58  ;;  %v3056_v21 = vsel %vm3046_vm0, %v3053_v59, %v3055_v61 }
 0x263   : > { %v1420_v56 = vsel %vm4268_vm15, 0, %v4267_v63  ;;  %v3060_v27 = vsel %vm3046_vm0, %v3057_v47, %v3059_v0  ;;  %v3051_v38 = vsel %vm3047_vm12, %v3035_v52, %v3050_v12  ;;  %v4277_v50 = vadd.s32 4294967169, %v1665_v46  ;;  %v6439_v63 = vld [vmem:[%s5072_s7] ss:$0 sm:$0xff] }
 0x264   : > { %v1421_v20 = vsub.s32 32, %v1420_v56  ;;  %v1425_v36 = vsub.s32 4294967266, %v1420_v56  ;;  %v6411_v49 = vmul.u32.u64.low %v6376_v51, %v3060_v27  ;;  %v6412_v60 = vmul.u32.u64.high %v6376_v51, %v3060_v27, %v6411_v49 }
 0x265   : > { %v6415_v13 = vmul.u32.u64.low %v6376_v51, %v3056_v21  ;;  %v6416_v31 = vmul.u32.u64.high %v6376_v51, %v3056_v21, %v6415_v13  ;;  %v1422_v5 = vshll.u32 %v6373_v30, %v1420_v56  ;;  %v1671_v48 = vadd.s32 1, %v4277_v50 }
 0x266   : > { %v1423_v10 = vshrl.u32 %v1405_v44, %v1421_v20  ;;  %v1426_v8 = vadd.s32 127, %v1425_v36  ;;  %vm3209_vm1 = vweird.f32 %v6129_v14  ;;  %vm3212_vm3 = vcmp.lt.s32.totalorder %v6370_v53, 2 }
 0x267   : > { %v1436_v3 = vsel %vm1351_vm10, %v1435_v11, %v6363_v62  ;;  %v3052_v33 = vsel %vm3046_vm0, %v3049_v29, %v3051_v38  ;;  %v614_v54 = vadd.f32 %v6060_v23, %v4458_v34  ;;  %vm3213_vm2 = vcmp.eq.s32.totalorder %v6370_v53, 0 }
 0x268   : > { %v1424_v39 = vor.u32 %v1423_v10, %v1422_v5  ;;  %v1427_v2 = vshll.u32 %v1426_v8, 23  ;;  %vm1672_vm4 = vcmp.gt.s32.totalorder %v1671_v48, 0  ;;  %vm3070_vm5 = vc.u32 %v6412_v60, %v6415_v13 }
 0x269   : > { %v3071_v44 = vadd.s32 1, %v6416_v31  ;;  %v1668_v30 = vand.u32 8388607, %v1661_v55  ;;  %v1673_v58 = vsel %vm1672_vm4, %v1671_v48, 0  ;;  %v1438_v23 = vsel %vm6401_vm14, 0, %v1436_v3 }
 0x26a   : > { %v4720_v57 = vpop.eup %4719  ;;  %v1428_v62 = vor.u32 4788187, %v1427_v2  ;;  %v3068_v1 = vmul.u32 %v6376_v51, %v3052_v33  ;;  %v1675_v17 = vand.u32 31, %v1673_v58  ;;  %vm3216_vm6 = vcmp.eq.s32.totalorder %v6370_v53, 2  ;;  %v6469_v2 = vld [vmem:[%s5083_s12] ss:$0 sm:$0xff] }
 0x26b   : > { %v4722_v9 = vpop.eup %4721  ;;  %v3217_v52 = vxor.u32 2147483648, %v4720_v57  ;;  %v1431_v16 = vcvt.s32.f32 %v1424_v39  ;;  %v3072_v4 = vsel %vm3070_vm5, %v3071_v44, %v6416_v31  ;;  %v1442_v41 = vadd.s32 3, %v1438_v23  ;;  %v528_v23 = vpop.f32.mrf.mxu0 }
 0x26c   : > { %v3214_v32 = vxor.u32 2147483648, %v4722_v9  ;;  %v1429_v40 = vand.u32 2147483647, %v1428_v62  ;;  %v3073_v42 = vadd.s32 %v3072_v4, %v3068_v1  ;;  %v1676_v46 = vsub.s32 32, %v1675_v17 }
 0x26d   : > { %v3218_v11 = vsel %vm3216_vm6, %v3217_v52, %v4722_v9  ;;  %v1669_v43 = vor.u32 8388608, %v1668_v30  ;;  %v679_v51 = vmul.f32 %v6439_v63, %v614_v54  ;;  %v1678_v47 = vshll.u32 %v4888_v18, %v1675_v17 }
 0x26e   : > { %v3215_v59 = vsel %vm3213_vm2, %v4720_v57, %v3214_v32  ;;  %v1432_v12 = vmul.f32 %v1431_v16, %v1429_v40  ;;  %v3074_v7 = vadd.s32 536870912, %v3073_v42  ;;  %v1679_v61 = vshrl.u32 %v4889_v22, %v1676_v46 }
 0x26f   : > { %v3219_v45 = vsel %vm3212_vm3, %v3215_v59, %v3218_v11  ;;  %v1681_v0 = vshll.u32 %v4889_v22, %v1675_v17  ;;  %v1682_v56 = vshrl.u32 %v4890_v24, %v1676_v46  ;;  %v1685_v20 = vshrl.u32 %v4891_v26, %v1676_v46  ;;  %v6491_v11 = vld [vmem:[%s7792_s2] ss:$0 sm:$0xff] }
 0x270   : > { %v3220_v29 = vsel %vm3209_vm1, nan, %v3219_v45  ;;  %v1433_v21 = vxor.u32 2147483648, %v1432_v12  ;;  %v3075_v27 = vshrl.u32 %v3074_v7, 30  ;;  %v1674_v36 = vshrl.u32 %v1673_v58, 5 }
 0x271   : > { %4076 = vst [vmem:[%s5408_s15 + $0xb8] sm:$0xff] %v3220_v29  ;;  %v1684_v38 = vshll.u32 %v4890_v24, %v1675_v17  ;;  %v1687_v53 = vshll.u32 %v4891_v26, %v1675_v17  ;;  %v1688_v50 = vshrl.u32 %v4892_v28, %v1676_v46  ;;  %v1680_v31 = vor.u32 %v1679_v61, %v1678_v47 }
 0x272   : > { %v1434_v34 = vsel %vm1351_vm10, %v1433_v21, %v1432_v12  ;;  %v3076_v49 = vshll.u32 %v3075_v27, 30  ;;  %v1683_v14 = vor.u32 %v1682_v56, %v1681_v0  ;;  %v1690_v8 = vshll.u32 %v4892_v28, %v1675_v17 }
 0x273   : > { %v1437_v5 = vsel %vm6401_vm14, %v6187_v19, %v1434_v34  ;;  %v1689_v10 = vor.u32 %v1688_v50, %v1687_v53  ;;  %v1691_v48 = vshrl.u32 %v4893_v35, %v1676_v46  ;;  %v1686_v33 = vor.u32 %v1685_v20, %v1684_v38 }
 0x274   : > { %4723 = vcosq.f32 %v1437_v5  ;;  %v6464_v3 = vsub.s32 %v3073_v42, %v3076_v49  ;;  %v6466_v54 = vand.u32 3, %v1442_v41  ;;  %v6472_v44 = vadd.f32 %v6469_v2, %v679_v51 }
 0x275   : > { %4725 = vsinq.f32 %v1437_v5  ;;  %v1692_v39 = vor.u32 %v1691_v48, %v1690_v8  ;;  %vm1693_vm7 = vcmp.lt.s32.totalorder %v1674_v36, 1  ;;  %vm1696_vm8 = vcmp.lt.s32.totalorder %v1674_v36, 4 }
 0x276   : > { %v3079_v37 = vsub.s32 0, %v6464_v3  ;;  %v1709_v30 = vshll.u32 %v1669_v43, 8  ;;  %v1677_v58 = vshrl.u32 %v4888_v18, %v1676_v46  ;;  %vm1695_vm9 = vcmp.lt.s32.totalorder %v1674_v36, 3 }
 0x277   : > { %v1701_v57 = vsel %vm1693_vm7, %v1680_v31, %v1683_v14  ;;  %v1702_v62 = vsel %vm1696_vm8, %v1689_v10, 920167782  ;;  %vm1694_vm10 = vcmp.lt.s32.totalorder %v1674_v36, 2  ;;  %v1698_v17 = vsel %vm1696_vm8, %v1686_v33, 2102212464 }
 0x278   : > { %v4330_v1 = vmin.u32 %v3079_v37, %v6464_v3  ;;  %v1703_v9 = vsel %vm1695_vm9, %v1686_v33, %v1702_v62  ;;  %v3099_v52 = vsub.s32 4, %v3075_v27  ;;  %v1705_v4 = vsel %vm1693_vm7, %v1683_v14, %v1686_v33 }
 0x279   : > { %v1704_v16 = vsel %vm1694_vm10, %v1701_v57, %v1703_v9  ;;  %v1706_v32 = vsel %vm1696_vm8, %v1692_v39, 1326507024  ;;  %vm6483_vm11 = vcmp.le.f32.partialorder %v3013_v6, 0.7853982  ;;  %v1697_v46 = vsel %vm1693_vm7, %v1677_v58, %v1680_v31  ;;  %v608_v9 = vpop.f32.mrf.mxu1 }
 0x27a   : > { %v3081_v42 = vclz %v4330_v1  ;;  %v529_v41 = vadd.f32 %v6491_v11, %v528_v23  ;;  %v1699_v43 = vsel %vm1695_vm9, %v1683_v14, %v1698_v17  ;;  %v1707_v51 = vsel %vm1695_vm9, %v1689_v10, %v1706_v32 }
 0x27b   : > { %v6496_v59 = vmul.u32.u64.low %v1709_v30, %v1704_v16  ;;  %v6497_v12 = vmul.u32.u64.high %v1709_v30, %v1704_v16, %v6496_v59  ;;  %vm3015_vm12 = vcmp.lt.s32.totalorder %v6313_v25, 0  ;;  %v1708_v7 = vsel %vm1694_vm10, %v1705_v4, %v1707_v51 }
 0x27c   : > { %v4331_v6 = vadd.s32 4294967294, %v3081_v42  ;;  %v3328_v47 = vand.u32 2139095040, %v6472_v44  ;;  %vm1444_vm13 = vcmp.lt.s32.totalorder %v6466_v54, 2  ;;  %v3100_v45 = vsel %vm3015_vm12, %v3099_v52, %v3075_v27  ;;  %v4437_v42 = vpop.f32.mrf.mxu0 }
 0x27d   : > { %v6506_v61 = vmul.u32.u64.low %v1709_v30, %v1708_v7  ;;  %v6507_v0 = vmul.u32.u64.high %v1709_v30, %v1708_v7, %v6506_v61  ;;  %v3325_v56 = vand.u32 2147483647, %v6472_v44  ;;  %vm1441_vm14 = vweird.f32 %v6187_v19 }
 0x27e   : > { %vm1448_vm15 = vcmp.eq.s32.totalorder %v6466_v54, 2  ;;  %vm4332_vm0 = vcmp.lt.s32.totalorder %v4331_v6, 0  ;;  %v1700_v29 = vsel %vm1694_vm10, %v1697_v46, %v1699_v43  ;;  %v3329_v21 = vshrl.u32 %v3328_v47, 23 }
 0x27f   : > { %v3069_v20 = vadd.s32 %v6415_v13, %v6412_v60  ;;  %v3084_v38 = vsel %vm4332_vm0, 0, %v4331_v6  ;;  %v1719_v53 = vadd.s32 1, %v6497_v12  ;;  %v662_v27 = vmul.f32 %v6439_v63, %v529_v41 }
 0x280   : > { %v3085_v50 = vsub.s32 32, %v3084_v38  ;;  %v3089_v34 = vsub.s32 4294967266, %v3084_v38  ;;  %v3102_v49 = vsel %vm6483_vm11, 0, %v3100_v45  ;;  %v4341_v31 = vadd.s32 4294967169, %v3329_v21 }
 0x281   : > { %v4724_v14 = vpop.eup %4723  ;;  %v3086_v5 = vshll.u32 %v6464_v3, %v3084_v38  ;;  %v1716_v36 = vmul.u32 %v1709_v30, %v1700_v29  ;;  %vm1718_vm1 = vc.u32 %v6507_v0, %v6496_v59  ;;  %v3332_v60 = vand.u32 8388607, %v3325_v56 }
 0x282   : > { %v4726_v13 = vpop.eup %4725  ;;  %v1449_v10 = vxor.u32 2147483648, %v4724_v14  ;;  %v3087_v8 = vshrl.u32 %v3069_v20, %v3085_v50  ;;  %v3090_v48 = vadd.s32 127, %v3089_v34  ;;  %v1720_v33 = vsel %vm1718_vm1, %v1719_v53, %v6497_v12 }
 0x283   : > { %v1446_v39 = vxor.u32 2147483648, %v4726_v13  ;;  %v1721_v37 = vadd.s32 %v1720_v33, %v1716_v36  ;;  %v3335_v58 = vadd.s32 1, %v4341_v31  ;;  %v6526_v57 = vadd.f32 %v6469_v2, %v662_v27 }
 0x284   : > { %vm1445_vm3 = vcmp.eq.s32.totalorder %v6466_v54, 0  ;;  %v1450_v3 = vsel %vm1448_vm15, %v1449_v10, %v4726_v13  ;;  %v3088_v30 = vor.u32 %v3087_v8, %v3086_v5  ;;  %v3091_v62 = vshll.u32 %v3090_v48, 23 }
 0x285   : > { %v1447_v23 = vsel %vm1445_vm3, %v4724_v14, %v1446_v39  ;;  %v3106_v1 = vadd.s32 3, %v3102_v49  ;;  %v1722_v17 = vadd.s32 536870912, %v1721_v37  ;;  %vm3336_vm2 = vcmp.gt.s32.totalorder %v3335_v58, 0 }
 0x286   : > { %v1451_v52 = vsel %vm1444_vm13, %v1447_v23, %v1450_v3  ;;  %v3092_v16 = vor.u32 4788187, %v3091_v62  ;;  %v3333_v4 = vor.u32 8388608, %v3332_v60  ;;  %v3337_v32 = vsel %vm3336_vm2, %v3335_v58, 0 }
 0x287   : > { %v1452_v46 = vsel %vm1441_vm14, nan, %v1451_v52  ;;  %v1723_v41 = vshrl.u32 %v1722_v17, 30  ;;  %v3339_v43 = vand.u32 31, %v3337_v32  ;;  %v1560_v51 = vand.u32 2139095040, %v6526_v57 }
 0x288   : > { %4059 = vst [vmem:[%s5408_s15 + $0x30] sm:$0xff] %v1452_v46  ;;  %v3093_v12 = vand.u32 2147483647, %v3092_v16  ;;  %v3095_v6 = vcvt.s32.f32 %v3088_v30  ;;  %v6538_v7 = vadd.f32 %v6491_v11, %v608_v9  ;;  %v6540_v47 = vand.u32 3, %v3106_v1 }
 0x289   : > { %vm1663_vm4 = vcmp.lt.s32.totalorder %v6366_v15, 0  ;;  %v1724_v54 = vshll.u32 %v1723_v41, 30  ;;  %v3340_v45 = vsub.s32 32, %v3339_v43  ;;  %v6544_v61 = vadd.f32 %v6491_v11, %v4437_v42 }
 0x28a   : > { %v3096_v19 = vmul.f32 %v3095_v6, %v3093_v12  ;;  %v1717_v29 = vadd.s32 %v6496_v59, %v6507_v0  ;;  %v6548_v21 = vshll.u32 %v3333_v4, 8  ;;  %v1557_v20 = vand.u32 2147483647, %v6526_v57 }
 0x28b   : > { %v6551_v38 = vsub.s32 %v1721_v37, %v1724_v54  ;;  %v6553_v53 = vshrl.u32 %v3337_v32, 5  ;;  %v3343_v27 = vshrl.u32 %v4889_v22, %v3340_v45  ;;  %v1561_v50 = vshrl.u32 %v1560_v51, 23 }
 0x28c   : > { %v3097_v34 = vxor.u32 2147483648, %v3096_v19  ;;  %v3342_v49 = vshll.u32 %v4888_v18, %v3339_v43  ;;  %v3346_v31 = vshrl.u32 %v4890_v24, %v3340_v45  ;;  %v3349_v14 = vshrl.u32 %v4891_v26, %v3340_v45 }
 0x28d   : > { %v1727_v59 = vsub.s32 0, %v6551_v38  ;;  %v3345_v0 = vshll.u32 %v4889_v22, %v3339_v43  ;;  %v3348_v5 = vshll.u32 %v4890_v24, %v3339_v43  ;;  %v3352_v36 = vshrl.u32 %v4892_v28, %v3340_v45 }
 0x28e   : > { %v3098_v60 = vsel %vm3015_vm12, %v3097_v34, %v3096_v19  ;;  %v1747_v13 = vsub.s32 4, %v1723_v41  ;;  %v3344_v10 = vor.u32 %v3343_v27, %v3342_v49  ;;  %v3351_v8 = vshll.u32 %v4891_v26, %v3339_v43 }
 0x28f   : > { %v3101_v48 = vsel %vm6483_vm11, %v6313_v25, %v3098_v60  ;;  %v4278_v33 = vmin.u32 %v1727_v59, %v6551_v38  ;;  %v3347_v39 = vor.u32 %v3346_v31, %v3345_v0  ;;  %v3350_v37 = vor.u32 %v3349_v14, %v3348_v5 }
 0x290   : > { %4727 = vcosq.f32 %v3101_v48  ;;  %v3353_v58 = vor.u32 %v3352_v36, %v3351_v8  ;;  %v3354_v3 = vshll.u32 %v4892_v28, %v3339_v43  ;;  %v3355_v30 = vshrl.u32 %v4893_v35, %v3340_v45 }
 0x291   : > { %4729 = vsinq.f32 %v3101_v48  ;;  %v1729_v62 = vclz %v4278_v33  ;;  %v4273_v23 = vadd.s32 4294967169, %v1561_v50  ;;  %v6574_v1 = vand.u32 8388607, %v1557_v20 }
 0x292   : > { %vm6578_vm5 = vcmp.le.f32.partialorder %v1661_v55, 0.7853982  ;;  %v1748_v17 = vsel %vm1663_vm4, %v1747_v13, %v1723_v41  ;;  %v3341_v9 = vshrl.u32 %v4888_v18, %v3340_v45  ;;  %v3356_v52 = vor.u32 %v3355_v30, %v3354_v3 }
 0x293   : > { %vm3357_vm6 = vcmp.lt.s32.totalorder %v6553_v53, 1  ;;  %v4279_v16 = vadd.s32 4294967294, %v1729_v62  ;;  %vm3359_vm7 = vcmp.lt.s32.totalorder %v6553_v53, 3  ;;  %vm3360_vm8 = vcmp.lt.s32.totalorder %v6553_v53, 4 }
 0x294   : > { %v3365_v4 = vsel %vm3357_vm6, %v3344_v10, %v3347_v39  ;;  %v3362_v32 = vsel %vm3360_vm8, %v3350_v37, 2102212464  ;;  %v3366_v42 = vsel %vm3360_vm8, %v3353_v58, 920167782  ;;  %v3369_v55 = vsel %vm3357_vm6, %v3347_v39, %v3350_v37 }
 0x295   : > { %v3370_v46 = vsel %vm3360_vm8, %v3356_v52, 1326507024  ;;  %vm4280_vm9 = vcmp.lt.s32.totalorder %v4279_v16, 0  ;;  %vm3358_vm10 = vcmp.lt.s32.totalorder %v6553_v53, 2  ;;  %v3367_v41 = vsel %vm3359_vm7, %v3350_v37, %v3366_v42 }
 0x296   : > { %v3371_v43 = vsel %vm3359_vm7, %v3353_v58, %v3370_v46  ;;  %v1732_v51 = vsel %vm4280_vm9, 0, %v4279_v16  ;;  %v3361_v12 = vsel %vm3357_vm6, %v3341_v9, %v3344_v10  ;;  %v3368_v6 = vsel %vm3358_vm10, %v3365_v4, %v3367_v41 }
 0x297   : > { %v3372_v54 = vsel %vm3358_vm10, %v3369_v55, %v3371_v43  ;;  %v1733_v45 = vsub.s32 32, %v1732_v51  ;;  %v1737_v19 = vsub.s32 4294967266, %v1732_v51  ;;  %v3363_v27 = vsel %vm3359_vm7, %v3347_v39, %v3362_v32 }
 0x298   : > { %v1567_v50 = vadd.s32 1, %v4273_v23  ;;  %v6600_v34 = vmul.u32.u64.low %v6548_v21, %v3372_v54  ;;  %v6601_v49 = vmul.u32.u64.high %v6548_v21, %v3372_v54, %v6600_v34  ;;  %v1734_v59 = vshll.u32 %v6551_v38, %v1732_v51 }
 0x299   : > { %v6604_v31 = vmul.u32.u64.low %v6548_v21, %v3368_v6  ;;  %v6605_v14 = vmul.u32.u64.high %v6548_v21, %v3368_v6, %v6604_v31  ;;  %v1735_v0 = vshrl.u32 %v1717_v29, %v1733_v45  ;;  %v1738_v5 = vadd.s32 127, %v1737_v19 }
 0x29a   : > { %vm1568_vm11 = vcmp.gt.s32.totalorder %v1567_v50, 0  ;;  %vm3105_vm12 = vweird.f32 %v6313_v25  ;;  %vm3108_vm13 = vcmp.lt.s32.totalorder %v6540_v47, 2  ;;  %vm3109_vm14 = vcmp.eq.s32.totalorder %v6540_v47, 0 }
 0x29b   : > { %v3364_v36 = vsel %vm3358_vm10, %v3361_v12, %v3363_v27  ;;  %v1569_v60 = vsel %vm1568_vm11, %v1567_v50, 0  ;;  %v1736_v13 = vor.u32 %v1735_v0, %v1734_v59  ;;  %v1739_v10 = vshll.u32 %v1738_v5, 23 }
 0x29c   : > { %v1750_v8 = vsel %vm6578_vm5, 0, %v1748_v17  ;;  %v1571_v48 = vand.u32 31, %v1569_v60  ;;  %vm3112_vm15 = vcmp.eq.s32.totalorder %v6540_v47, 2  ;;  %vm3382_vm0 = vc.u32 %v6601_v49, %v6604_v31 }
 0x29d   : > { %v3383_v29 = vadd.s32 1, %v6605_v14  ;;  %v678_v38 = vmul.f32 %v6439_v63, %v6538_v7  ;;  %v4728_v33 = vpop.eup %4727  ;;  %v1740_v53 = vor.u32 4788187, %v1739_v10  ;;  %v3380_v39 = vmul.u32 %v6548_v21, %v3364_v36 }
 0x29e   : > { %v1565_v37 = vor.u32 8388608, %v6574_v1  ;;  %v1572_v58 = vsub.s32 32, %v1571_v48  ;;  %v4730_v3 = vpop.eup %4729  ;;  %v3113_v30 = vxor.u32 2147483648, %v4728_v33  ;;  %v1754_v62 = vadd.s32 3, %v1750_v8 }
 0x29f   : > { %v3384_v23 = vsel %vm3382_vm0, %v3383_v29, %v6605_v14  ;;  %v6625_v17 = vshrl.u32 %v1569_v60, 5  ;;  %v3110_v9 = vxor.u32 2147483648, %v4730_v3  ;;  %v1741_v52 = vand.u32 2147483647, %v1740_v53 }
 0x2a0   : > { %v1743_v16 = vcvt.s32.f32 %v1736_v13  ;;  %v3385_v4 = vadd.s32 %v3384_v23, %v3380_v39  ;;  %v3114_v7 = vsel %vm3112_vm15, %v3113_v30, %v4730_v3  ;;  %v1574_v21 = vshll.u32 %v4888_v18, %v1571_v48 }
 0x2a1   : > { %v1575_v1 = vshrl.u32 %v4889_v22, %v1572_v58  ;;  %v1578_v32 = vshrl.u32 %v4890_v24, %v1572_v58  ;;  %v3111_v42 = vsel %vm3109_vm14, %v4728_v33, %v3110_v9  ;;  %v1581_v41 = vshrl.u32 %v4891_v26, %v1572_v58 }
 0x2a2   : > { %v1744_v55 = vmul.f32 %v1743_v16, %v1741_v52  ;;  %v3386_v46 = vadd.s32 536870912, %v3385_v4  ;;  %v3115_v43 = vsel %vm3108_vm13, %v3111_v42, %v3114_v7  ;;  %v1577_v51 = vshll.u32 %v4889_v22, %v1571_v48 }
 0x2a3   : > { %v1580_v12 = vshll.u32 %v4890_v24, %v1571_v48  ;;  %v1583_v6 = vshll.u32 %v4891_v26, %v1571_v48  ;;  %v3116_v54 = vsel %vm3105_vm12, nan, %v3115_v43  ;;  %v1584_v27 = vshrl.u32 %v4892_v28, %v1572_v58 }
 0x2a4   : > { %v1745_v45 = vxor.u32 2147483648, %v1744_v55  ;;  %v3387_v19 = vshrl.u32 %v3386_v46, 30  ;;  %4075 = vst [vmem:[%s5408_s15 + $0xb0] sm:$0xff] %v3116_v54  ;;  %v1576_v50 = vor.u32 %v1575_v1, %v1574_v21  ;;  %v1579_v34 = vor.u32 %v1578_v32, %v1577_v51 }
 0x2a5   : > { %v1586_v14 = vshll.u32 %v4892_v28, %v1571_v48  ;;  %v1587_v47 = vshrl.u32 %v4893_v35, %v1572_v58  ;;  %v1582_v5 = vor.u32 %v1581_v41, %v1580_v12  ;;  %v1585_v36 = vor.u32 %v1584_v27, %v1583_v6 }
 0x2a6   : > { %v1746_v59 = vsel %vm1663_vm4, %v1745_v45, %v1744_v55  ;;  %v3388_v0 = vshll.u32 %v3387_v19, 30  ;;  %v6651_v60 = vand.u32 3, %v1754_v62  ;;  %v1605_v10 = vshll.u32 %v1565_v37, 8 }
 0x2a7   : > { %v1749_v25 = vsel %vm6578_vm5, %v6366_v15, %v1746_v59  ;;  %v1588_v13 = vor.u32 %v1587_v47, %v1586_v14  ;;  %vm1589_vm1 = vcmp.lt.s32.totalorder %v6625_v17, 1  ;;  %v6657_v48 = vadd.f32 %v6469_v2, %v678_v38 }
 0x2a8   : > { %4731 = vcosq.f32 %v1749_v25  ;;  %v6653_v8 = vsub.s32 %v3385_v4, %v3388_v0  ;;  %v1573_v29 = vshrl.u32 %v4888_v18, %v1572_v58  ;;  %vm1592_vm3 = vcmp.lt.s32.totalorder %v6625_v17, 4 }
 0x2a9   : > { %4733 = vsinq.f32 %v1749_v25  ;;  %v1597_v33 = vsel %vm1589_vm1, %v1576_v50, %v1579_v34  ;;  %vm1591_vm2 = vcmp.lt.s32.totalorder %v6625_v17, 3  ;;  %v1594_v53 = vsel %vm1592_vm3, %v1582_v5, 2102212464 }
 0x2aa   : > { %v3391_v40 = vsub.s32 0, %v6653_v8  ;;  %v1598_v39 = vsel %vm1592_vm3, %v1585_v36, 920167782  ;;  %vm1590_vm4 = vcmp.lt.s32.totalorder %v6625_v17, 2  ;;  %v1601_v3 = vsel %vm1589_vm1, %v1579_v34, %v1582_v5 }
 0x2ab   : > { %v1599_v37 = vsel %vm1591_vm2, %v1582_v5, %v1598_v39  ;;  %v1602_v30 = vsel %vm1592_vm3, %v1588_v13, 1326507024  ;;  %v1593_v62 = vsel %vm1589_vm1, %v1573_v29, %v1576_v50  ;;  %v1595_v9 = vsel %vm1591_vm2, %v1579_v34, %v1594_v53 }
 0x2ac   : > { %v4342_v38 = vmin.u32 %v3391_v40, %v6653_v8  ;;  %v1600_v58 = vsel %vm1590_vm4, %v1597_v33, %v1599_v37  ;;  %v1603_v23 = vsel %vm1591_vm2, %v1585_v36, %v1602_v30  ;;  %v3411_v21 = vsub.s32 4, %v3387_v19 }
 0x2ad   : > { %v1604_v52 = vsel %vm1590_vm4, %v1601_v3, %v1603_v23  ;;  %v6669_v16 = vmul.u32.u64.low %v1605_v10, %v1600_v58  ;;  %v6670_v4 = vmul.u32.u64.high %v1605_v10, %v1600_v58, %v6669_v16  ;;  %vm3327_vm5 = vcmp.lt.s32.totalorder %v6472_v44, 0 }
 0x2ae   : > { %v3393_v7 = vclz %v4342_v38  ;;  %v6674_v1 = vmul.u32.u64.low %v1605_v10, %v1604_v52  ;;  %v6675_v32 = vmul.u32.u64.high %v1605_v10, %v1604_v52, %v6674_v1  ;;  %v665_v42 = vmul.f32 %v6439_v63, %v6544_v61 }
 0x2af   : > { %vm6681_vm6 = vcmp.le.f32.partialorder %v3325_v56, 0.7853982  ;;  %v1596_v41 = vsel %vm1590_vm4, %v1593_v62, %v1595_v9  ;;  %v3224_v43 = vand.u32 2139095040, %v6657_v48  ;;  %vm1756_vm7 = vcmp.lt.s32.totalorder %v6651_v60, 2 }
 0x2b0   : > { %v4343_v46 = vadd.s32 4294967294, %v3393_v7  ;;  %vm1757_vm8 = vcmp.eq.s32.totalorder %v6651_v60, 0  ;;  %v1615_v51 = vadd.s32 1, %v6670_v4  ;;  %v3221_v61 = vand.u32 2147483647, %v6657_v48 }
 0x2b1   : > { %vm1753_vm9 = vweird.f32 %v6366_v15  ;;  %vm1760_vm10 = vcmp.eq.s32.totalorder %v6651_v60, 2  ;;  %v3412_v56 = vsel %vm3327_vm5, %v3411_v21, %v3387_v19  ;;  %v3225_v17 = vshrl.u32 %v3224_v43, 23 }
 0x2b2   : > { %vm4344_vm11 = vcmp.lt.s32.totalorder %v4343_v46, 0  ;;  %v1612_v6 = vmul.u32 %v1605_v10, %v1596_v41  ;;  %vm1614_vm12 = vc.u32 %v6675_v32, %v6669_v16  ;;  %v6699_v54 = vadd.f32 %v6469_v2, %v665_v42 }
 0x2b3   : > { %v3396_v12 = vsel %vm4344_vm11, 0, %v4343_v46  ;;  %v3381_v45 = vadd.s32 %v6604_v31, %v6601_v49  ;;  %v1616_v34 = vsel %vm1614_vm12, %v1615_v51, %v6670_v4  ;;  %v3414_v19 = vsel %vm6681_vm6, 0, %v3412_v56 }
 0x2b4   : > { %v3397_v27 = vsub.s32 32, %v3396_v12  ;;  %v3401_v50 = vsub.s32 4294967266, %v3396_v12  ;;  %v1617_v47 = vadd.s32 %v1616_v34, %v1612_v6  ;;  %v4337_v59 = vadd.s32 4294967169, %v3225_v17 }
 0x2b5   : > { %v4732_v14 = vpop.eup %4731  ;;  %v3228_v0 = vand.u32 8388607, %v3221_v61  ;;  %v3398_v25 = vshll.u32 %v6653_v8, %v3396_v12  ;;  %v1872_v33 = vand.u32 2139095040, %v6699_v54  ;;  %v3418_v37 = vadd.s32 3, %v3414_v19  ;;  %v4461_v8 = vpop.f32.mrf.mxu1 }
 0x2b6   : > { %v4734_v5 = vpop.eup %4733  ;;  %v1761_v36 = vxor.u32 2147483648, %v4732_v14  ;;  %v3399_v13 = vshrl.u32 %v3381_v45, %v3397_v27  ;;  %v3402_v10 = vadd.s32 127, %v3401_v50  ;;  %v1618_v31 = vadd.s32 536870912, %v1617_v47 }
 0x2b7   : > { %v1758_v49 = vxor.u32 2147483648, %v4734_v5  ;;  %v3231_v29 = vadd.s32 1, %v4337_v59  ;;  %v3229_v38 = vor.u32 8388608, %v3228_v0  ;;  %v1869_v9 = vand.u32 2147483647, %v6699_v54 }
 0x2b8   : > { %v1762_v40 = vsel %vm1760_vm10, %v1761_v36, %v4734_v5  ;;  %v3400_v53 = vor.u32 %v3399_v13, %v3398_v25  ;;  %v3403_v39 = vshll.u32 %v3402_v10, 23  ;;  %v1619_v30 = vshrl.u32 %v1618_v31, 30 }
 0x2b9   : > { %v1759_v3 = vsel %vm1757_vm8, %v4732_v14, %v1758_v49  ;;  %vm3232_vm13 = vcmp.gt.s32.totalorder %v3231_v29, 0  ;;  %vm1559_vm14 = vcmp.lt.s32.totalorder %v6526_v57, 0  ;;  %v1873_v7 = vshrl.u32 %v1872_v33, 23 }
 0x2ba   : > { %v1763_v62 = vsel %vm1756_vm7, %v1759_v3, %v1762_v40  ;;  %v3404_v58 = vor.u32 4788187, %v3403_v39  ;;  %v3233_v23 = vsel %vm3232_vm13, %v3231_v29, 0  ;;  %v1620_v4 = vshll.u32 %v1619_v30, 30 }
 0x2bb   : > { %v1764_v52 = vsel %vm1753_vm9, nan, %v1763_v62  ;;  %v3407_v1 = vcvt.s32.f32 %v3400_v53  ;;  %v3235_v42 = vand.u32 31, %v3233_v23  ;;  %v6722_v46 = vadd.f32 %v6491_v11, %v4461_v8 }
 0x2bc   : > { %4062 = vst [vmem:[%s5408_s15 + $0x48] sm:$0xff] %v1764_v52  ;;  %v3405_v21 = vand.u32 2147483647, %v3404_v58  ;;  %v6724_v60 = vand.u32 3, %v3418_v37  ;;  %v1613_v41 = vadd.s32 %v6669_v16, %v6675_v32  ;;  %v6728_v43 = vsub.s32 %v1617_v47, %v1620_v4 }
 0x2bd   : > { %v6730_v15 = vshll.u32 %v3229_v38, 8  ;;  %v1643_v56 = vsub.s32 4, %v1619_v30  ;;  %v3236_v17 = vsub.s32 32, %v3235_v42  ;;  %v6734_v12 = vand.u32 8388607, %v1869_v9 }
 0x2be   : > { %v3408_v51 = vmul.f32 %v3407_v1, %v3405_v21  ;;  %v1623_v6 = vsub.s32 0, %v6728_v43  ;;  %v3234_v45 = vshrl.u32 %v3233_v23, 5  ;;  %v3238_v27 = vshll.u32 %v4888_v18, %v3235_v42 }
 0x2bf   : > { %v4285_v50 = vadd.s32 4294967169, %v1873_v7  ;;  %vm6740_vm15 = vcmp.le.f32.partialorder %v1557_v20, 0.7853982  ;;  %v3239_v32 = vshrl.u32 %v4889_v22, %v3236_v17  ;;  %v3241_v14 = vshll.u32 %v4889_v22, %v3235_v42 }
 0x2c0   : > { %v3409_v34 = vxor.u32 2147483648, %v3408_v51  ;;  %v3242_v19 = vshrl.u32 %v4890_v24, %v3236_v17  ;;  %v4274_v47 = vmin.u32 %v1623_v6, %v6728_v43  ;;  %v3244_v59 = vshll.u32 %v4890_v24, %v3235_v42 }
 0x2c1   : > { %v3245_v0 = vshrl.u32 %v4891_v26, %v3236_v17  ;;  %v3247_v5 = vshll.u32 %v4891_v26, %v3235_v42  ;;  %v3240_v36 = vor.u32 %v3239_v32, %v3238_v27  ;;  %v3248_v13 = vshrl.u32 %v4892_v28, %v3236_v17 }
 0x2c2   : > { %v3410_v20 = vsel %vm3327_vm5, %v3409_v34, %v3408_v51  ;;  %v3243_v25 = vor.u32 %v3242_v19, %v3241_v14  ;;  %v1625_v49 = vclz %v4274_v47  ;;  %v1644_v31 = vsel %vm1559_vm14, %v1643_v56, %v1619_v30 }
 0x2c3   : > { %v3413_v10 = vsel %vm6681_vm6, %v6472_v44, %v3410_v20  ;;  %vm3253_vm0 = vcmp.lt.s32.totalorder %v3234_v45, 1  ;;  %v3246_v29 = vor.u32 %v3245_v0, %v3244_v59  ;;  %v3249_v33 = vor.u32 %v3248_v13, %v3247_v5 }
 0x2c4   : > { %4735 = vcosq.f32 %v3413_v10  ;;  %vm3254_vm1 = vcmp.lt.s32.totalorder %v3234_v45, 2  ;;  %v4275_v40 = vadd.s32 4294967294, %v1625_v49  ;;  %v3250_v53 = vshll.u32 %v4892_v28, %v3235_v42 }
 0x2c5   : > { %4737 = vsinq.f32 %v3413_v10  ;;  %v3251_v39 = vshrl.u32 %v4893_v35, %v3236_v17  ;;  %v3237_v37 = vshrl.u32 %v4888_v18, %v3236_v17  ;;  %vm3255_vm3 = vcmp.lt.s32.totalorder %v3234_v45, 3 }
 0x2c6   : > { %vm3256_vm2 = vcmp.lt.s32.totalorder %v3234_v45, 4  ;;  %v3261_v55 = vsel %vm3253_vm0, %v3240_v36, %v3243_v25  ;;  %vm4276_vm4 = vcmp.lt.s32.totalorder %v4275_v40, 0  ;;  %v1646_v7 = vsel %vm6740_vm15, 0, %v1644_v31 }
 0x2c7   : > { %v3252_v3 = vor.u32 %v3251_v39, %v3250_v53  ;;  %v3258_v30 = vsel %vm3256_vm2, %v3246_v29, 2102212464  ;;  %v3262_v38 = vsel %vm3256_vm2, %v3249_v33, 920167782  ;;  %v1628_v8 = vsel %vm4276_vm4, 0, %v4275_v40 }
 0x2c8   : > { %v3257_v62 = vsel %vm3253_vm0, %v3237_v37, %v3240_v36  ;;  %v3259_v58 = vsel %vm3255_vm3, %v3243_v25, %v3258_v30  ;;  %v3263_v23 = vsel %vm3255_vm3, %v3246_v29, %v3262_v38  ;;  %v1629_v52 = vsub.s32 32, %v1628_v8 }
 0x2c9   : > { %v1633_v4 = vsub.s32 4294967266, %v1628_v8  ;;  %v3265_v21 = vsel %vm3253_vm0, %v3243_v25, %v3246_v29  ;;  %v1630_v1 = vshll.u32 %v6728_v43, %v1628_v8  ;;  %v3264_v42 = vsel %vm3254_vm1, %v3261_v55, %v3263_v23 }
 0x2ca   : > { %v3266_v51 = vsel %vm3256_vm2, %v3252_v3, 1326507024  ;;  %v1879_v56 = vadd.s32 1, %v4285_v50  ;;  %v1631_v17 = vshrl.u32 %v1613_v41, %v1629_v52  ;;  %v3260_v27 = vsel %vm3254_vm1, %v3257_v62, %v3259_v58 }
 0x2cb   : > { %v1634_v6 = vadd.s32 127, %v1633_v4  ;;  %v3267_v34 = vsel %vm3255_vm3, %v3249_v33, %v3266_v51  ;;  %v6778_v14 = vmul.u32.u64.low %v6730_v15, %v3264_v42  ;;  %v6779_v19 = vmul.u32.u64.high %v6730_v15, %v3264_v42, %v6778_v14 }
 0x2cc   : > { %v3268_v32 = vsel %vm3254_vm1, %v3265_v21, %v3267_v34  ;;  %vm1880_vm5 = vcmp.gt.s32.totalorder %v1879_v56, 0  ;;  %v1632_v43 = vor.u32 %v1631_v17, %v1630_v1  ;;  %vm3417_vm6 = vweird.f32 %v6472_v44 }
 0x2cd   : > { %v1635_v47 = vshll.u32 %v1634_v6, 23  ;;  %v6783_v59 = vmul.u32.u64.low %v6730_v15, %v3268_v32  ;;  %v6784_v0 = vmul.u32.u64.high %v6730_v15, %v3268_v32, %v6783_v59  ;;  %vm3420_vm7 = vcmp.lt.s32.totalorder %v6724_v60, 2 }
 0x2ce   : > { %v1881_v41 = vsel %vm1880_vm5, %v1879_v56, 0  ;;  %v681_v45 = vmul.f32 %v6439_v63, %v6722_v46  ;;  %vm3421_vm8 = vcmp.eq.s32.totalorder %v6724_v60, 0  ;;  %vm3424_vm9 = vcmp.eq.s32.totalorder %v6724_v60, 2 }
 0x2cf   : > { %v1636_v50 = vor.u32 4788187, %v1635_v47  ;;  %v1883_v5 = vand.u32 31, %v1881_v41  ;;  %v1650_v20 = vadd.s32 3, %v1646_v7  ;;  %v3276_v36 = vmul.u32 %v6730_v15, %v3260_v27 }
 0x2d0   : > { %v3279_v25 = vadd.s32 1, %v6779_v19  ;;  %v1877_v13 = vor.u32 8388608, %v6734_v12  ;;  %v1639_v31 = vcvt.s32.f32 %v1632_v43  ;;  %vm3278_vm10 = vc.u32 %v6784_v0, %v6778_v14 }
 0x2d1   : > { %v4736_v10 = vpop.eup %4735  ;;  %v1637_v49 = vand.u32 2147483647, %v1636_v50  ;;  %v1884_v63 = vsub.s32 32, %v1883_v5  ;;  %v6798_v40 = vshrl.u32 %v1881_v41, 5  ;;  %v6801_v53 = vadd.f32 %v6469_v2, %v681_v45 }
 0x2d2   : > { %v4738_v46 = vpop.eup %4737  ;;  %v3425_v29 = vxor.u32 2147483648, %v4736_v10  ;;  %v3280_v33 = vsel %vm3278_vm10, %v3279_v25, %v6779_v19  ;;  %v1886_v12 = vshll.u32 %v4888_v18, %v1883_v5  ;;  %v1889_v30 = vshll.u32 %v4889_v22, %v1883_v5 }
 0x2d3   : > { %v3422_v15 = vxor.u32 2147483648, %v4738_v46  ;;  %v1640_v39 = vmul.f32 %v1639_v31, %v1637_v49  ;;  %v3281_v37 = vadd.s32 %v3280_v33, %v3276_v36  ;;  %v1887_v3 = vshrl.u32 %v4889_v22, %v1884_v63 }
 0x2d4   : > { %v3426_v55 = vsel %vm3424_vm9, %v3425_v29, %v4738_v46  ;;  %v1890_v38 = vshrl.u32 %v4890_v24, %v1884_v63  ;;  %v1892_v23 = vshll.u32 %v4890_v24, %v1883_v5  ;;  %v1893_v21 = vshrl.u32 %v4891_v26, %v1884_v63 }
 0x2d5   : > { %v3423_v8 = vsel %vm3421_vm8, %v4736_v10, %v3422_v15  ;;  %v1641_v62 = vxor.u32 2147483648, %v1640_v39  ;;  %v3282_v58 = vadd.s32 536870912, %v3281_v37  ;;  %v1888_v4 = vor.u32 %v1887_v3, %v1886_v12  ;;  %v538_v15 = vpop.f32.mrf.mxu0 }
 0x2d6   : > { %v3427_v52 = vsel %vm3420_vm7, %v3423_v8, %v3426_v55  ;;  %v1891_v7 = vor.u32 %v1890_v38, %v1889_v30  ;;  %v1895_v56 = vshll.u32 %v4891_v26, %v1883_v5  ;;  %v1896_v60 = vshrl.u32 %v4892_v28, %v1884_v63 }
 0x2d7   : > { %v3428_v1 = vsel %vm3417_vm6, nan, %v3427_v52  ;;  %v1642_v42 = vsel %vm1559_vm14, %v1641_v62, %v1640_v39  ;;  %v3283_v51 = vshrl.u32 %v3282_v58, 30  ;;  %v1898_v6 = vshll.u32 %v4892_v28, %v1883_v5 }
 0x2d8   : > { %4078 = vst [vmem:[%s5408_s15 + $0xc8] sm:$0xff] %v3428_v1  ;;  %v1645_v17 = vsel %vm6740_vm15, %v6526_v57, %v1642_v42  ;;  %v1899_v27 = vshrl.u32 %v4893_v35, %v1884_v63  ;;  %v1894_v34 = vor.u32 %v1893_v21, %v1892_v23  ;;  %v1897_v32 = vor.u32 %v1896_v60, %v1895_v56 }
 0x2d9   : > { %4739 = vcosq.f32 %v1645_v17  ;;  %v3284_v44 = vshll.u32 %v3283_v51, 30  ;;  %v6827_v43 = vand.u32 3, %v1650_v20  ;;  %vm1901_vm11 = vcmp.lt.s32.totalorder %v6798_v40, 1 }
 0x2da   : > { %4741 = vsinq.f32 %v1645_v17  ;;  %v1900_v19 = vor.u32 %v1899_v27, %v1898_v6  ;;  %v1917_v16 = vshll.u32 %v1877_v13, 8  ;;  %v1885_v59 = vshrl.u32 %v4888_v18, %v1884_v63 }
 0x2db   : > { %v6829_v47 = vsub.s32 %v3281_v37, %v3284_v44  ;;  %vm1904_vm12 = vcmp.lt.s32.totalorder %v6798_v40, 4  ;;  %v1909_v41 = vsel %vm1901_vm11, %v1888_v4, %v1891_v7  ;;  %v3536_v45 = vand.u32 2139095040, %v6801_v53 }
 0x2dc   : > { %vm1902_vm13 = vcmp.lt.s32.totalorder %v6798_v40, 2  ;;  %vm1903_vm14 = vcmp.lt.s32.totalorder %v6798_v40, 3  ;;  %v1910_v5 = vsel %vm1904_vm12, %v1897_v32, 920167782  ;;  %v1906_v20 = vsel %vm1904_vm12, %v1894_v34, 2102212464 }
 0x2dd   : > { %v3287_v50 = vsub.s32 0, %v6829_v47  ;;  %v1911_v36 = vsel %vm1903_vm14, %v1894_v34, %v1910_v5  ;;  %v1913_v25 = vsel %vm1901_vm11, %v1891_v7, %v1894_v34  ;;  %v1914_v13 = vsel %vm1904_vm12, %v1900_v19, 1326507024 }
 0x2de   : > { %v3307_v49 = vsub.s32 4, %v3283_v51  ;;  %v1912_v31 = vsel %vm1902_vm13, %v1909_v41, %v1911_v36  ;;  %v1915_v63 = vsel %vm1903_vm14, %v1897_v32, %v1914_v13  ;;  %vm6857_vm15 = vcmp.le.f32.partialorder %v3221_v61, 0.7853982 }
 0x2df   : > { %v4338_v10 = vmin.u32 %v3287_v50, %v6829_v47  ;;  %v1916_v46 = vsel %vm1902_vm13, %v1913_v25, %v1915_v63  ;;  %v6851_v29 = vmul.u32.u64.low %v1917_v16, %v1912_v31  ;;  %v6852_v33 = vmul.u32.u64.high %v1917_v16, %v1912_v31, %v6851_v29  ;;  %v6893_v50 = vld [vmem:[%s5072_s7] ss:$0 sm:$0xff]  ;;  %v618_v25 = vpop.f32.mrf.mxu1 }
 0x2e0   : > { %v1905_v12 = vsel %vm1901_vm11, %v1885_v59, %v1888_v4  ;;  %v1907_v55 = vsel %vm1903_vm14, %v1891_v7, %v1906_v20  ;;  %vm3223_vm0 = vcmp.lt.s32.totalorder %v6657_v48, 0  ;;  %v3537_v38 = vshrl.u32 %v3536_v45, 23 }
 0x2e1   : > { %v3289_v37 = vclz %v4338_v10  ;;  %v6866_v3 = vmul.u32.u64.low %v1917_v16, %v1916_v46  ;;  %v6867_v30 = vmul.u32.u64.high %v1917_v16, %v1916_v46, %v6866_v3  ;;  %vm1649_vm1 = vweird.f32 %v6526_v57 }
 0x2e2   : > { %vm1652_vm3 = vcmp.lt.s32.totalorder %v6827_v43, 2  ;;  %v3308_v8 = vsel %vm3223_vm0, %v3307_v49, %v3283_v51  ;;  %v539_v62 = vadd.f32 %v6491_v11, %v538_v15  ;;  %vm1653_vm2 = vcmp.eq.s32.totalorder %v6827_v43, 0 }
 0x2e3   : > { %v4339_v61 = vadd.s32 4294967294, %v3289_v37  ;;  %v1908_v58 = vsel %vm1902_vm13, %v1905_v12, %v1907_v55  ;;  %v1927_v23 = vadd.s32 1, %v6852_v33  ;;  %v4349_v52 = vadd.s32 4294967169, %v3537_v38 }
 0x2e4   : > { %vm1656_vm4 = vcmp.eq.s32.totalorder %v6827_v43, 2  ;;  %v3277_v4 = vadd.s32 %v6778_v14, %v6784_v0  ;;  %v3533_v7 = vand.u32 2147483647, %v6801_v53  ;;  %v3310_v42 = vsel %vm6857_vm15, 0, %v3308_v8 }
 0x2e5   : > { %vm4340_vm5 = vcmp.lt.s32.totalorder %v4339_v61, 0  ;;  %vm1926_vm6 = vc.u32 %v6867_v30, %v6851_v29  ;;  %v3543_v40 = vadd.s32 1, %v4349_v52  ;;  %v1924_v6 = vmul.u32 %v1917_v16, %v1908_v58 }
 0x2e6   : > { %v4740_v21 = vpop.eup %4739  ;;  %v3292_v1 = vsel %vm4340_vm5, 0, %v4339_v61  ;;  %v1928_v0 = vsel %vm1926_vm6, %v1927_v23, %v6852_v33  ;;  %v3314_v41 = vadd.s32 3, %v3310_v42  ;;  %v664_v16 = vmul.f32 %v6893_v50, %v539_v62 }
 0x2e7   : > { %v4742_v51 = vpop.eup %4741  ;;  %v1657_v56 = vxor.u32 2147483648, %v4740_v21  ;;  %v3293_v17 = vsub.s32 32, %v3292_v1  ;;  %v3297_v60 = vsub.s32 4294967266, %v3292_v1  ;;  %v3294_v14 = vshll.u32 %v6829_v47, %v3292_v1 }
 0x2e8   : > { %v1654_v27 = vxor.u32 2147483648, %v4742_v51  ;;  %vm3544_vm7 = vcmp.gt.s32.totalorder %v3543_v40, 0  ;;  %v1929_v19 = vadd.s32 %v1928_v0, %v1924_v6  ;;  %v3540_v10 = vand.u32 8388607, %v3533_v7 }
 0x2e9   : > { %v1658_v44 = vsel %vm1656_vm4, %v1657_v56, %v4742_v51  ;;  %v3295_v34 = vshrl.u32 %v3277_v4, %v3293_v17  ;;  %v3298_v32 = vadd.s32 127, %v3297_v60  ;;  %v3545_v45 = vsel %vm3544_vm7, %v3543_v40, 0 }
 0x2ea   : > { %v1655_v59 = vsel %vm1653_vm2, %v4740_v21, %v1654_v27  ;;  %v1930_v36 = vadd.s32 536870912, %v1929_v19  ;;  %v3547_v49 = vand.u32 31, %v3545_v45  ;;  %v6906_v33 = vadd.f32 %v6469_v2, %v664_v16 }
 0x2eb   : > { %v1659_v47 = vsel %vm1652_vm3, %v1655_v59, %v1658_v44  ;;  %v3296_v5 = vor.u32 %v3295_v34, %v3294_v14  ;;  %v3299_v20 = vshll.u32 %v3298_v32, 23  ;;  %v6909_v43 = vadd.f32 %v6491_v11, %v618_v25 }
 0x2ec   : > { %v1660_v13 = vsel %vm1649_vm1, nan, %v1659_v47  ;;  %v6903_v63 = vshrl.u32 %v1930_v36, 30  ;;  %v3548_v46 = vsub.s32 32, %v3547_v49  ;;  %v6911_v12 = vand.u32 3, %v3314_v41 }
 0x2ed   : > { %4061 = vst [vmem:[%s5408_s15 + $0x40] sm:$0xff] %v1660_v13  ;;  %v3300_v31 = vor.u32 4788187, %v3299_v20  ;;  %v3303_v37 = vcvt.s32.f32 %v3296_v5  ;;  %v3541_v55 = vor.u32 8388608, %v3540_v10  ;;  %v3550_v2 = vshll.u32 %v4888_v18, %v3547_v49 }
 0x2ee   : > { %v1932_v57 = vshll.u32 %v6903_v63, 30  ;;  %v3551_v3 = vshrl.u32 %v4889_v22, %v3548_v46  ;;  %v3554_v38 = vshrl.u32 %v4890_v24, %v3548_v46  ;;  %v3557_v61 = vshrl.u32 %v4891_v26, %v3548_v46 }
 0x2ef   : > { %v3301_v15 = vand.u32 2147483647, %v3300_v31  ;;  %v3560_v11 = vshrl.u32 %v4892_v28, %v3548_v46  ;;  %v3546_v58 = vshrl.u32 %v3545_v45, 5  ;;  %v3553_v23 = vshll.u32 %v4889_v22, %v3547_v49 }
 0x2f0   : > { %v6917_v62 = vsub.s32 %v1929_v19, %v1932_v57  ;;  %v3556_v52 = vshll.u32 %v4890_v24, %v3547_v49  ;;  %v1768_v4 = vand.u32 2139095040, %v6906_v33  ;;  %v3552_v42 = vor.u32 %v3551_v3, %v3550_v2 }
 0x2f1   : > { %v3304_v8 = vmul.f32 %v3303_v37, %v3301_v15  ;;  %v3559_v40 = vshll.u32 %v4891_v26, %v3547_v49  ;;  %v3555_v51 = vor.u32 %v3554_v38, %v3553_v23  ;;  %v3562_v17 = vshll.u32 %v4892_v28, %v3547_v49 }
 0x2f2   : > { %v1935_v1 = vsub.s32 0, %v6917_v62  ;;  %v3558_v56 = vor.u32 %v3557_v61, %v3556_v52  ;;  %v3563_v60 = vshrl.u32 %v4893_v35, %v3548_v46  ;;  %v3581_v0 = vshll.u32 %v3541_v55, 8 }
 0x2f3   : > { %v3305_v21 = vxor.u32 2147483648, %v3304_v8  ;;  %v3561_v14 = vor.u32 %v3560_v11, %v3559_v40  ;;  %v3549_v34 = vshrl.u32 %v4888_v18, %v3548_v46  ;;  %v1769_v19 = vshrl.u32 %v1768_v4, 23 }
 0x2f4   : > { %v4286_v27 = vmin.u32 %v1935_v1, %v6917_v62  ;;  %v3564_v32 = vor.u32 %v3563_v60, %v3562_v17  ;;  %vm3565_vm8 = vcmp.lt.s32.totalorder %v3546_v58, 1  ;;  %vm3568_vm9 = vcmp.lt.s32.totalorder %v3546_v58, 4 }
 0x2f5   : > { %v3306_v6 = vsel %vm3223_vm0, %v3305_v21, %v3304_v8  ;;  %vm3566_vm10 = vcmp.lt.s32.totalorder %v3546_v58, 2  ;;  %v3570_v41 = vsel %vm3568_vm9, %v3558_v56, 2102212464  ;;  %v3573_v45 = vsel %vm3565_vm8, %v3552_v42, %v3555_v51 }
 0x2f6   : > { %v3309_v44 = vsel %vm6857_vm15, %v6657_v48, %v3306_v6  ;;  %v1937_v59 = vclz %v4286_v27  ;;  %vm3567_vm11 = vcmp.lt.s32.totalorder %v3546_v58, 3  ;;  %v3574_v47 = vsel %vm3568_vm9, %v3561_v14, 920167782 }
 0x2f7   : > { %4743 = vcosq.f32 %v3309_v44  ;;  %v3577_v5 = vsel %vm3565_vm8, %v3555_v51, %v3558_v56  ;;  %v3569_v20 = vsel %vm3565_vm8, %v3549_v34, %v3552_v42  ;;  %v3575_v36 = vsel %vm3567_vm11, %v3558_v56, %v3574_v47 }
 0x2f8   : > { %4745 = vsinq.f32 %v3309_v44  ;;  %v4287_v16 = vadd.s32 4294967294, %v1937_v59  ;;  %v3578_v39 = vsel %vm3568_vm9, %v3564_v32, 1326507024  ;;  %v4281_v25 = vadd.s32 4294967169, %v1769_v19 }
 0x2f9   : > { %vm6937_vm12 = vcmp.le.f32.partialorder %v1869_v9, 0.7853982  ;;  %v3571_v10 = vsel %vm3567_vm11, %v3555_v51, %v3570_v41  ;;  %v3576_v49 = vsel %vm3566_vm10, %v3573_v45, %v3575_v36  ;;  %v3579_v31 = vsel %vm3567_vm11, %v3561_v14, %v3578_v39 }
 0x2fa   : > { %vm4288_vm13 = vcmp.lt.s32.totalorder %v4287_v16, 0  ;;  %v3580_v15 = vsel %vm3566_vm10, %v3577_v5, %v3579_v31  ;;  %v6943_v37 = vmul.u32.u64.low %v3581_v0, %v3576_v49  ;;  %v6944_v57 = vmul.u32.u64.high %v3581_v0, %v3576_v49, %v6943_v37 }
 0x2fb   : > { %v1940_v46 = vsel %vm4288_vm13, 0, %v4287_v16  ;;  %v1925_v55 = vadd.s32 %v6851_v29, %v6867_v30  ;;  %v1955_v38 = vsub.s32 4, %v6903_v63  ;;  %vm1871_vm14 = vcmp.lt.s32.totalorder %v6699_v54, 0 }
 0x2fc   : > { %v1941_v3 = vsub.s32 32, %v1940_v46  ;;  %v1945_v9 = vsub.s32 4294967266, %v1940_v46  ;;  %v6951_v61 = vmul.u32.u64.low %v3581_v0, %v3580_v15  ;;  %v6952_v8 = vmul.u32.u64.high %v3581_v0, %v3580_v15, %v6951_v61 }
 0x2fd   : > { %v1775_v2 = vadd.s32 1, %v4281_v25  ;;  %v1942_v11 = vshll.u32 %v6917_v62, %v1940_v46  ;;  %v3572_v4 = vsel %vm3566_vm10, %v3569_v20, %v3571_v10  ;;  %vm3316_vm15 = vcmp.lt.s32.totalorder %v6911_v12, 2 }
 0x2fe   : > { %v1943_v23 = vshrl.u32 %v1925_v55, %v1941_v3  ;;  %v1946_v52 = vadd.s32 127, %v1945_v9  ;;  %v3591_v29 = vadd.s32 1, %v6944_v57  ;;  %v1765_v30 = vand.u32 2147483647, %v6906_v33 }
 0x2ff   : > { %vm1776_vm0 = vcmp.gt.s32.totalorder %v1775_v2, 0  ;;  %vm3313_vm1 = vweird.f32 %v6657_v48  ;;  %v1956_v42 = vsel %vm1871_vm14, %v1955_v38, %v6903_v63  ;;  %vm3317_vm3 = vcmp.eq.s32.totalorder %v6911_v12, 0 }
 0x300   : > { %v1944_v21 = vor.u32 %v1943_v23, %v1942_v11  ;;  %v1947_v1 = vshll.u32 %v1946_v52, 23  ;;  %v1777_v62 = vsel %vm1776_vm0, %v1775_v2, 0  ;;  %v3588_v58 = vmul.u32 %v3581_v0, %v3572_v4 }
 0x301   : > { %vm3590_vm2 = vc.u32 %v6952_v8, %v6943_v37  ;;  %v1779_v40 = vand.u32 31, %v1777_v62  ;;  %vm3320_vm4 = vcmp.eq.s32.totalorder %v6911_v12, 2  ;;  %v680_v17 = vmul.f32 %v6893_v50, %v6909_v43 }
 0x302   : > { %v1948_v51 = vor.u32 4788187, %v1947_v1  ;;  %v3592_v56 = vsel %vm3590_vm2, %v3591_v29, %v6944_v57  ;;  %v1958_v63 = vsel %vm6937_vm12, 0, %v1956_v42  ;;  %v1772_v27 = vand.u32 8388607, %v1765_v30 }
 0x303   : > { %v3593_v6 = vadd.s32 %v3592_v56, %v3588_v58  ;;  %v1780_v14 = vsub.s32 32, %v1779_v40  ;;  %v1951_v32 = vcvt.s32.f32 %v1944_v21  ;;  %v6974_v19 = vshrl.u32 %v1777_v62, 5  ;;  %v7006_v21 = vld [vmem:[%s5083_s12] ss:$0 sm:$0xff] }
 0x304   : > { %v4744_v60 = vpop.eup %4743  ;;  %v1949_v34 = vand.u32 2147483647, %v1948_v51  ;;  %v1782_v45 = vshll.u32 %v4888_v18, %v1779_v40  ;;  %v1785_v5 = vshll.u32 %v4889_v22, %v1779_v40  ;;  %v1788_v46 = vshll.u32 %v4890_v24, %v1779_v40 }
 0x305   : > { %v4746_v0 = vpop.eup %4745  ;;  %v3321_v44 = vxor.u32 2147483648, %v4744_v60  ;;  %v3594_v41 = vadd.s32 536870912, %v3593_v6  ;;  %v1783_v43 = vshrl.u32 %v4889_v22, %v1780_v14  ;;  %v1786_v20 = vshrl.u32 %v4890_v24, %v1780_v14 }
 0x306   : > { %v3318_v59 = vxor.u32 2147483648, %v4746_v0  ;;  %v1952_v47 = vmul.f32 %v1951_v32, %v1949_v34  ;;  %v1789_v25 = vshrl.u32 %v4891_v26, %v1780_v14  ;;  %v1792_v10 = vshrl.u32 %v4892_v28, %v1780_v14  ;;  %v7032_v34 = vld [vmem:[%s7792_s2] ss:$0 sm:$0xff] }
 0x307   : > { %v3322_v16 = vsel %vm3320_vm4, %v3321_v44, %v4746_v0  ;;  %v6984_v39 = vshrl.u32 %v3594_v41, 30  ;;  %v1791_v15 = vshll.u32 %v4891_v26, %v1779_v40  ;;  %v1784_v3 = vor.u32 %v1783_v43, %v1782_v45 }
 0x308   : > { %v3319_v36 = vsel %vm3317_vm3, %v4744_v60, %v3318_v59  ;;  %v1953_v31 = vxor.u32 2147483648, %v1952_v47  ;;  %v1787_v9 = vor.u32 %v1786_v20, %v1785_v5  ;;  %v1794_v12 = vshll.u32 %v4892_v28, %v1779_v40  ;;  %v4440_v40 = vpop.f32.mrf.mxu0 }
 0x309   : > { %v3323_v49 = vsel %vm3316_vm15, %v3319_v36, %v3322_v16  ;;  %v3596_v55 = vshll.u32 %v6984_v39, 30  ;;  %v1793_v61 = vor.u32 %v1792_v10, %v1791_v15  ;;  %v1795_v2 = vshrl.u32 %v4893_v35, %v1780_v14 }
 0x30a   : > { %v3324_v57 = vsel %vm3313_vm1, nan, %v3323_v49  ;;  %v1954_v38 = vsel %vm1871_vm14, %v1953_v31, %v1952_v47  ;;  %v1962_v48 = vadd.s32 3, %v1958_v63  ;;  %v1790_v52 = vor.u32 %v1789_v25, %v1788_v46 }
 0x30b   : > { %4077 = vst [vmem:[%s5408_s15 + $0xc0] sm:$0xff] %v3324_v57  ;;  %v1957_v11 = vsel %vm6937_vm12, %v6699_v54, %v1954_v38  ;;  %v7003_v23 = vsub.s32 %v3593_v6, %v3596_v55  ;;  %v1773_v4 = vor.u32 8388608, %v1772_v27  ;;  %v1796_v29 = vor.u32 %v1795_v2, %v1794_v12 }
 0x30c   : > { %4747 = vcosq.f32 %v1957_v11  ;;  %v7009_v1 = vadd.f32 %v7006_v21, %v680_v17  ;;  %vm1797_vm5 = vcmp.lt.s32.totalorder %v6974_v19, 1  ;;  %vm1800_vm6 = vcmp.lt.s32.totalorder %v6974_v19, 4 }
 0x30d   : > { %4749 = vsinq.f32 %v1957_v11  ;;  %v3599_v42 = vsub.s32 0, %v7003_v23  ;;  %vm3535_vm7 = vcmp.lt.s32.totalorder %v6801_v53, 0  ;;  %v1781_v13 = vshrl.u32 %v4888_v18, %v1780_v14 }
 0x30e   : > { %vm1799_vm8 = vcmp.lt.s32.totalorder %v6974_v19, 3  ;;  %v1805_v62 = vsel %vm1797_vm5, %v1784_v3, %v1787_v9  ;;  %v1806_v58 = vsel %vm1800_vm6, %v1793_v61, 920167782  ;;  %vm1798_vm9 = vcmp.lt.s32.totalorder %v6974_v19, 2 }
 0x30f   : > { %v4350_v51 = vmin.u32 %v3599_v42, %v7003_v23  ;;  %v1802_v56 = vsel %vm1800_vm6, %v1790_v52, 2102212464  ;;  %v1807_v17 = vsel %vm1799_vm8, %v1790_v52, %v1806_v58  ;;  %v1809_v63 = vsel %vm1797_vm5, %v1787_v9, %v1790_v52 }
 0x310   : > { %v1808_v60 = vsel %vm1798_vm9, %v1805_v62, %v1807_v17  ;;  %v1810_v6 = vsel %vm1800_vm6, %v1796_v29, 1326507024  ;;  %v1813_v27 = vshll.u32 %v1773_v4, 8  ;;  %v1963_v14 = vand.u32 3, %v1962_v48 }
 0x311   : > { %v3601_v0 = vclz %v4350_v51  ;;  %v1801_v44 = vsel %vm1797_vm5, %v1781_v13, %v1784_v3  ;;  %v554_v32 = vadd.f32 %v7032_v34, %v4440_v40  ;;  %v1803_v59 = vsel %vm1799_vm8, %v1787_v9, %v1802_v56 }
 0x312   : > { %v1811_v41 = vsel %vm1799_vm8, %v1793_v61, %v1810_v6  ;;  %v7039_v45 = vmul.u32.u64.low %v1813_v27, %v1808_v60  ;;  %v7040_v43 = vmul.u32.u64.high %v1813_v27, %v1808_v60, %v7039_v45  ;;  %v3619_v47 = vsub.s32 4, %v6984_v39 }
 0x313   : > { %v4351_v16 = vadd.s32 4294967294, %v3601_v0  ;;  %v1812_v5 = vsel %vm1798_vm9, %v1809_v63, %v1811_v41  ;;  %v3432_v20 = vand.u32 2139095040, %v7009_v1  ;;  %vm7048_vm10 = vcmp.le.f32.partialorder %v3533_v7, 0.7853982 }
 0x314   : > { %v7052_v25 = vmul.u32.u64.low %v1813_v27, %v1812_v5  ;;  %v7053_v10 = vmul.u32.u64.high %v1813_v27, %v1812_v5, %v7052_v25  ;;  %v3429_v49 = vand.u32 2147483647, %v7009_v1  ;;  %vm1964_vm11 = vcmp.lt.s32.totalorder %v1963_v14, 2 }
 0x315   : > { %vm4352_vm12 = vcmp.lt.s32.totalorder %v4351_v16, 0  ;;  %v1804_v31 = vsel %vm1798_vm9, %v1801_v44, %v1803_v59  ;;  %v3433_v46 = vshrl.u32 %v3432_v20, 23  ;;  %v3589_v15 = vadd.s32 %v6943_v37, %v6952_v8 }
 0x316   : > { %v3604_v57 = vsel %vm4352_vm12, 0, %v4351_v16  ;;  %v1823_v7 = vadd.s32 1, %v7040_v43  ;;  %v667_v55 = vmul.f32 %v6893_v50, %v554_v32  ;;  %v3620_v38 = vsel %vm3535_vm7, %v3619_v47, %v6984_v39 }
 0x317   : > { %v3605_v3 = vsub.s32 32, %v3604_v57  ;;  %v3609_v9 = vsub.s32 4294967266, %v3604_v57  ;;  %v4345_v61 = vadd.s32 4294967169, %v3433_v46  ;;  %v3606_v12 = vshll.u32 %v7003_v23, %v3604_v57 }
 0x318   : > { %v1820_v19 = vmul.u32 %v1813_v27, %v1804_v31  ;;  %vm1822_vm13 = vc.u32 %v7053_v10, %v7039_v45  ;;  %v3436_v37 = vand.u32 8388607, %v3429_v49  ;;  %vm1965_vm14 = vcmp.eq.s32.totalorder %v1963_v14, 0 }
 0x319   : > { %v4748_v8 = vpop.eup %4747  ;;  %v3607_v2 = vshrl.u32 %v3589_v15, %v3605_v3  ;;  %v3610_v11 = vadd.s32 127, %v3609_v9  ;;  %v1824_v48 = vsel %vm1822_vm13, %v1823_v7, %v7040_v43  ;;  %v3439_v52 = vadd.s32 1, %v4345_v61 }
 0x31a   : > { %v4750_v4 = vpop.eup %4749  ;;  %vm1968_vm15 = vcmp.eq.s32.totalorder %v1963_v14, 2  ;;  %v1969_v29 = vxor.u32 2147483648, %v4748_v8  ;;  %v1825_v39 = vadd.s32 %v1824_v48, %v1820_v19  ;;  %v3622_v58 = vsel %vm7048_vm10, 0, %v3620_v38 }
 0x31b   : > { %v1966_v42 = vxor.u32 2147483648, %v4750_v4  ;;  %v3608_v13 = vor.u32 %v3607_v2, %v3606_v12  ;;  %v3611_v23 = vshll.u32 %v3610_v11, 23  ;;  %vm3440_vm0 = vcmp.gt.s32.totalorder %v3439_v52, 0 }
 0x31c   : > { %v1970_v62 = vsel %vm1968_vm15, %v1969_v29, %v4750_v4  ;;  %v1826_v40 = vadd.s32 536870912, %v1825_v39  ;;  %v3441_v51 = vsel %vm3440_vm0, %v3439_v52, 0  ;;  %v3437_v60 = vor.u32 8388608, %v3436_v37 }
 0x31d   : > { %v1967_v56 = vsel %vm1965_vm14, %v4748_v8, %v1966_v42  ;;  %v3612_v17 = vor.u32 4788187, %v3611_v23  ;;  %v7073_v63 = vadd.f32 %v7006_v21, %v667_v55  ;;  %vm1961_vm1 = vweird.f32 %v6699_v54 }
 0x31e   : > { %v1971_v6 = vsel %vm1964_vm11, %v1967_v56, %v1970_v62  ;;  %v7077_v27 = vshrl.u32 %v1826_v40, 30  ;;  %v3443_v0 = vand.u32 31, %v3441_v51  ;;  %v3615_v59 = vcvt.s32.f32 %v3608_v13 }
 0x31f   : > { %v1972_v44 = vsel %vm1961_vm1, nan, %v1971_v6  ;;  %v3613_v32 = vand.u32 2147483647, %v3612_v17  ;;  %v3626_v41 = vadd.s32 3, %v3622_v58  ;;  %v1821_v5 = vadd.s32 %v7039_v45, %v7053_v10 }
 0x320   : > { %4064 = vst [vmem:[%s5408_s15 + $0x58] sm:$0xff] %v1972_v44  ;;  %v1828_v43 = vshll.u32 %v7077_v27, 30  ;;  %v3444_v16 = vsub.s32 32, %v3443_v0  ;;  %v7082_v20 = vshll.u32 %v3437_v60, 8  ;;  %v2080_v54 = vand.u32 2139095040, %v7073_v63 }
 0x321   : > { %v3616_v47 = vmul.f32 %v3615_v59, %v3613_v32  ;;  %v3442_v25 = vshrl.u32 %v3441_v51, 5  ;;  %v3446_v31 = vshll.u32 %v4888_v18, %v3443_v0  ;;  %v3452_v7 = vshll.u32 %v4890_v24, %v3443_v0 }
 0x322   : > { %v7085_v14 = vsub.s32 %v1825_v39, %v1828_v43  ;;  %v3447_v46 = vshrl.u32 %v4889_v22, %v3444_v16  ;;  %v3450_v57 = vshrl.u32 %v4890_v24, %v3444_v16  ;;  %v3453_v55 = vshrl.u32 %v4891_v26, %v3444_v16 }
 0x323   : > { %v3617_v15 = vxor.u32 2147483648, %v3616_v47  ;;  %v3449_v10 = vshll.u32 %v4889_v22, %v3443_v0  ;;  %v3455_v3 = vshll.u32 %v4891_v26, %v3443_v0  ;;  %v3456_v9 = vshrl.u32 %v4892_v28, %v3444_v16 }
 0x324   : > { %v1831_v45 = vsub.s32 0, %v7085_v14  ;;  %vm1767_vm3 = vcmp.lt.s32.totalorder %v6906_v33, 0  ;;  %v3448_v61 = vor.u32 %v3447_v46, %v3446_v31  ;;  %v3454_v12 = vor.u32 %v3453_v55, %v3452_v7  ;;  %v4464_v7 = vpop.f32.mrf.mxu1 }
 0x325   : > { %v3618_v38 = vsel %vm3535_vm7, %v3617_v15, %v3616_v47  ;;  %v2081_v19 = vshrl.u32 %v2080_v54, 23  ;;  %v3451_v2 = vor.u32 %v3450_v57, %v3449_v10  ;;  %v3457_v11 = vor.u32 %v3456_v9, %v3455_v3 }
 0x326   : > { %v3621_v37 = vsel %vm7048_vm10, %v6801_v53, %v3618_v38  ;;  %v4282_v8 = vmin.u32 %v1831_v45, %v7085_v14  ;;  %v3458_v48 = vshll.u32 %v4892_v28, %v3443_v0  ;;  %v3459_v52 = vshrl.u32 %v4893_v35, %v3444_v16 }
 0x327   : > { %4751 = vcosq.f32 %v3621_v37  ;;  %vm3461_vm2 = vcmp.lt.s32.totalorder %v3442_v25, 1  ;;  %vm7107_vm4 = vcmp.le.f32.partialorder %v1765_v30, 0.7853982  ;;  %vm3462_vm5 = vcmp.lt.s32.totalorder %v3442_v25, 2 }
 0x328   : > { %4753 = vsinq.f32 %v3621_v37  ;;  %v1833_v29 = vclz %v4282_v8  ;;  %vm3464_vm6 = vcmp.lt.s32.totalorder %v3442_v25, 4  ;;  %v1851_v36 = vsub.s32 4, %v7077_v27 }
 0x329   : > { %v3445_v39 = vshrl.u32 %v4888_v18, %v3444_v16  ;;  %v3460_v42 = vor.u32 %v3459_v52, %v3458_v48  ;;  %v3466_v13 = vsel %vm3464_vm6, %v3454_v12, 2102212464  ;;  %vm3463_vm7 = vcmp.lt.s32.totalorder %v3442_v25, 3 }
 0x32a   : > { %v4283_v23 = vadd.s32 4294967294, %v1833_v29  ;;  %v3469_v62 = vsel %vm3461_vm2, %v3448_v61, %v3451_v2  ;;  %v3470_v58 = vsel %vm3464_vm6, %v3457_v11, 920167782  ;;  %v3473_v51 = vsel %vm3461_vm2, %v3451_v2, %v3454_v12 }
 0x32b   : > { %v3465_v40 = vsel %vm3461_vm2, %v3445_v39, %v3448_v61  ;;  %v3471_v30 = vsel %vm3463_vm7, %v3454_v12, %v3470_v58  ;;  %v3474_v56 = vsel %vm3464_vm6, %v3460_v42, 1326507024  ;;  %v3467_v17 = vsel %vm3463_vm7, %v3451_v2, %v3466_v13 }
 0x32c   : > { %vm4284_vm8 = vcmp.lt.s32.totalorder %v4283_v23, 0  ;;  %v3472_v60 = vsel %vm3462_vm5, %v3469_v62, %v3471_v30  ;;  %v3475_v6 = vsel %vm3463_vm7, %v3457_v11, %v3474_v56  ;;  %v1852_v47 = vsel %vm1767_vm3, %v1851_v36, %v7077_v27 }
 0x32d   : > { %v1836_v0 = vsel %vm4284_vm8, 0, %v4283_v23  ;;  %v3476_v44 = vsel %vm3462_vm5, %v3473_v51, %v3475_v6  ;;  %v7119_v32 = vmul.u32.u64.low %v7082_v20, %v3472_v60  ;;  %v7120_v59 = vmul.u32.u64.high %v7082_v20, %v3472_v60, %v7119_v32 }
 0x32e   : > { %v1837_v43 = vsub.s32 32, %v1836_v0  ;;  %v1841_v16 = vsub.s32 4294967266, %v1836_v0  ;;  %v4293_v54 = vadd.s32 4294967169, %v2081_v19  ;;  %v3627_v31 = vand.u32 3, %v3626_v41 }
 0x32f   : > { %v3468_v46 = vsel %vm3462_vm5, %v3465_v40, %v3467_v17  ;;  %v7128_v15 = vmul.u32.u64.low %v7082_v20, %v3476_v44  ;;  %v7129_v57 = vmul.u32.u64.high %v7082_v20, %v3476_v44, %v7128_v15  ;;  %v1838_v55 = vshll.u32 %v7085_v14, %v1836_v0 }
 0x330   : > { %v1839_v45 = vshrl.u32 %v1821_v5, %v1837_v43  ;;  %v1842_v10 = vadd.s32 127, %v1841_v16  ;;  %v2087_v3 = vadd.s32 1, %v4293_v54  ;;  %vm3625_vm9 = vweird.f32 %v6801_v53 }
 0x331   : > { %v1854_v9 = vsel %vm7107_vm4, 0, %v1852_v47  ;;  %v3487_v27 = vadd.s32 1, %v7120_v59  ;;  %v634_v38 = vadd.f32 %v7032_v34, %v4464_v7  ;;  %vm3628_vm11 = vcmp.lt.s32.totalorder %v3627_v31, 2 }
 0x332   : > { %v1840_v41 = vor.u32 %v1839_v45, %v1838_v55  ;;  %v1843_v25 = vshll.u32 %v1842_v10, 23  ;;  %vm2088_vm10 = vcmp.gt.s32.totalorder %v2087_v3, 0  ;;  %v3484_v61 = vmul.u32 %v7082_v20, %v3468_v46 }
 0x333   : > { %vm3486_vm12 = vc.u32 %v7129_v57, %v7119_v32  ;;  %v2089_v5 = vsel %vm2088_vm10, %v2087_v3, 0  ;;  %v1858_v19 = vadd.s32 3, %v1854_v9  ;;  %v2077_v8 = vand.u32 2147483647, %v7073_v63 }
 0x334   : > { %v4752_v14 = vpop.eup %4751  ;;  %v1844_v12 = vor.u32 4788187, %v1843_v25  ;;  %v3488_v37 = vsel %vm3486_vm12, %v3487_v27, %v7120_v59  ;;  %vm3629_vm13 = vcmp.eq.s32.totalorder %v3627_v31, 0  ;;  %v2091_v52 = vand.u32 31, %v2089_v5 }
 0x335   : > { %v4754_v2 = vpop.eup %4753  ;;  %v3633_v11 = vxor.u32 2147483648, %v4752_v14  ;;  %v3489_v48 = vadd.s32 %v3488_v37, %v3484_v61  ;;  %vm3632_vm14 = vcmp.eq.s32.totalorder %v3627_v31, 2  ;;  %v1847_v20 = vcvt.s32.f32 %v1840_v41 }
 0x336   : > { %v3630_v29 = vxor.u32 2147483648, %v4754_v2  ;;  %v1845_v36 = vand.u32 2147483647, %v1844_v12  ;;  %v2092_v13 = vsub.s32 32, %v2091_v52  ;;  %v683_v23 = vmul.f32 %v6893_v50, %v634_v38 }
 0x337   : > { %v3634_v39 = vsel %vm3632_vm14, %v3633_v11, %v4754_v2  ;;  %v3490_v42 = vadd.s32 536870912, %v3489_v48  ;;  %v7143_v40 = vand.u32 3, %v1858_v19  ;;  %v2084_v30 = vand.u32 8388607, %v2077_v8 }
 0x338   : > { %v3631_v62 = vsel %vm3629_vm13, %v4752_v14, %v3630_v29  ;;  %v1848_v58 = vmul.f32 %v1847_v20, %v1845_v36  ;;  %v2094_v17 = vshll.u32 %v4888_v18, %v2091_v52  ;;  %v2095_v60 = vshrl.u32 %v4889_v22, %v2092_v13  ;;  %v548_v36 = vpop.f32.mrf.mxu0 }
 0x339   : > { %v3635_v51 = vsel %vm3628_vm11, %v3631_v62, %v3634_v39  ;;  %v3491_v56 = vshrl.u32 %v3490_v42, 30  ;;  %v2098_v44 = vshrl.u32 %v4890_v24, %v2092_v13  ;;  %v2101_v59 = vshrl.u32 %v4891_v26, %v2092_v13 }
 0x33a   : > { %v3636_v6 = vsel %vm3625_vm9, nan, %v3635_v51  ;;  %v1849_v0 = vxor.u32 2147483648, %v1848_v58  ;;  %v2090_v16 = vshrl.u32 %v2089_v5, 5  ;;  %v2097_v47 = vshll.u32 %v4889_v22, %v2091_v52 }
 0x33b   : > { %4080 = vst [vmem:[%s5408_s15 + $0xd8] sm:$0xff] %v3636_v6  ;;  %v3492_v43 = vshll.u32 %v3491_v56, 30  ;;  %v2100_v54 = vshll.u32 %v4890_v24, %v2091_v52  ;;  %v2096_v46 = vor.u32 %v2095_v60, %v2094_v17  ;;  %v2103_v15 = vshll.u32 %v4891_v26, %v2091_v52 }
 0x33c   : > { %v1850_v31 = vsel %vm1767_vm3, %v1849_v0, %v1848_v58  ;;  %v2104_v53 = vshrl.u32 %v4892_v28, %v2092_v13  ;;  %v2099_v45 = vor.u32 %v2098_v44, %v2097_v47  ;;  %vm3431_vm15 = vcmp.lt.s32.totalorder %v7009_v1, 0 }
 0x33d   : > { %v1853_v7 = vsel %vm7107_vm4, %v6906_v33, %v1850_v31  ;;  %v7164_v55 = vsub.s32 %v3489_v48, %v3492_v43  ;;  %v2102_v10 = vor.u32 %v2101_v59, %v2100_v54  ;;  %v2106_v9 = vshll.u32 %v4892_v28, %v2091_v52 }
 0x33e   : > { %4755 = vcosq.f32 %v1853_v7  ;;  %v2105_v3 = vor.u32 %v2104_v53, %v2103_v15  ;;  %v2107_v27 = vshrl.u32 %v4893_v35, %v2092_v13  ;;  %v2085_v25 = vor.u32 8388608, %v2084_v30 }
 0x33f   : > { %4757 = vsinq.f32 %v1853_v7  ;;  %v3495_v41 = vsub.s32 0, %v7164_v55  ;;  %v7171_v38 = vadd.f32 %v7006_v21, %v683_v23  ;;  %vm2109_vm0 = vcmp.lt.s32.totalorder %v2090_v16, 1 }
 0x340   : > { %v2108_v4 = vor.u32 %v2107_v27, %v2106_v9  ;;  %vm2111_vm1 = vcmp.lt.s32.totalorder %v2090_v16, 3  ;;  %vm2112_vm3 = vcmp.lt.s32.totalorder %v2090_v16, 4  ;;  %vm7175_vm2 = vcmp.le.f32.partialorder %v3429_v49, 0.7853982 }
 0x341   : > { %v4346_v5 = vmin.u32 %v3495_v41, %v7164_v55  ;;  %v2114_v14 = vsel %vm2112_vm3, %v2102_v10, 2102212464  ;;  %v2117_v12 = vsel %vm2109_vm0, %v2096_v46, %v2099_v45  ;;  %v2118_v19 = vsel %vm2112_vm3, %v2105_v3, 920167782 }
 0x342   : > { %v2093_v37 = vshrl.u32 %v4888_v18, %v2092_v13  ;;  %v2119_v2 = vsel %vm2111_vm1, %v2102_v10, %v2118_v19  ;;  %v2121_v11 = vsel %vm2109_vm0, %v2099_v45, %v2102_v10  ;;  %v2122_v48 = vsel %vm2112_vm3, %v2108_v4, 1326507024 }
 0x343   : > { %v3497_v52 = vclz %v4346_v5  ;;  %v3515_v29 = vsub.s32 4, %v3491_v56  ;;  %vm2110_vm4 = vcmp.lt.s32.totalorder %v2090_v16, 2  ;;  %v2125_v49 = vshll.u32 %v2085_v25, 8 }
 0x344   : > { %v2113_v20 = vsel %vm2109_vm0, %v2093_v37, %v2096_v46  ;;  %v2115_v39 = vsel %vm2111_vm1, %v2099_v45, %v2114_v14  ;;  %v2120_v42 = vsel %vm2110_vm4, %v2117_v12, %v2119_v2  ;;  %v2123_v23 = vsel %vm2111_vm1, %v2105_v3, %v2122_v48 }
 0x345   : > { %v4347_v62 = vadd.s32 4294967294, %v3497_v52  ;;  %v2124_v13 = vsel %vm2110_vm4, %v2121_v11, %v2123_v23  ;;  %v7189_v58 = vmul.u32.u64.low %v2125_v49, %v2120_v42  ;;  %v7190_v30 = vmul.u32.u64.high %v2125_v49, %v2120_v42, %v7189_v58 }
 0x346   : > { %v7192_v51 = vmul.u32.u64.low %v2125_v49, %v2124_v13  ;;  %v7193_v17 = vmul.u32.u64.high %v2125_v49, %v2124_v13, %v7192_v51  ;;  %v3744_v60 = vand.u32 2139095040, %v7171_v38  ;;  %v549_v6 = vadd.f32 %v7032_v34, %v548_v36 }
 0x347   : > { %vm1860_vm5 = vcmp.lt.s32.totalorder %v7143_v40, 2  ;;  %vm4348_vm6 = vcmp.lt.s32.totalorder %v4347_v62, 0  ;;  %v3516_v0 = vsel %vm3431_vm15, %v3515_v29, %v3491_v56  ;;  %v2116_v44 = vsel %vm2110_vm4, %v2113_v20, %v2115_v39  ;;  %v628_v20 = vpop.f32.mrf.mxu1 }
 0x348   : > { %vm1857_vm7 = vweird.f32 %v6906_v33  ;;  %vm1861_vm8 = vcmp.eq.s32.totalorder %v7143_v40, 0  ;;  %v3500_v59 = vsel %vm4348_vm6, 0, %v4347_v62  ;;  %v3741_v43 = vand.u32 2147483647, %v7171_v38 }
 0x349   : > { %v3745_v47 = vshrl.u32 %v3744_v60, 23  ;;  %v3485_v54 = vadd.s32 %v7119_v32, %v7129_v57  ;;  %v3501_v31 = vsub.s32 32, %v3500_v59  ;;  %v3505_v46 = vsub.s32 4294967266, %v3500_v59 }
 0x34a   : > { %v2135_v15 = vadd.s32 1, %v7190_v30  ;;  %v3518_v56 = vsel %vm7175_vm2, 0, %v3516_v0  ;;  %v2132_v16 = vmul.u32 %v2125_v49, %v2116_v44  ;;  %vm2134_vm9 = vc.u32 %v7193_v17, %v7189_v58 }
 0x34b   : > { %v4357_v53 = vadd.s32 4294967169, %v3745_v47  ;;  %v4756_v7 = vpop.eup %4755  ;;  %v3502_v45 = vshll.u32 %v7164_v55, %v3500_v59  ;;  %v3503_v10 = vshrl.u32 %v3485_v54, %v3501_v31  ;;  %v3506_v3 = vadd.s32 127, %v3505_v46 }
 0x34c   : > { %v2136_v9 = vsel %vm2134_vm9, %v2135_v15, %v7190_v30  ;;  %v4758_v27 = vpop.eup %4757  ;;  %v1865_v32 = vxor.u32 2147483648, %v4756_v7  ;;  %v666_v25 = vmul.f32 %v6893_v50, %v549_v6  ;;  %vm1864_vm10 = vcmp.eq.s32.totalorder %v7143_v40, 2 }
 0x34d   : > { %v2137_v57 = vadd.s32 %v2136_v9, %v2132_v16  ;;  %v3751_v41 = vadd.s32 1, %v4357_v53  ;;  %v1862_v4 = vxor.u32 2147483648, %v4758_v27  ;;  %v3504_v5 = vor.u32 %v3503_v10, %v3502_v45 }
 0x34e   : > { %v3507_v14 = vshll.u32 %v3506_v3, 23  ;;  %v1866_v12 = vsel %vm1864_vm10, %v1865_v32, %v4758_v27  ;;  %v3522_v19 = vadd.s32 3, %v3518_v56  ;;  %v3748_v11 = vand.u32 8388607, %v3741_v43 }
 0x34f   : > { %v2138_v37 = vadd.s32 536870912, %v2137_v57  ;;  %vm3752_vm11 = vcmp.gt.s32.totalorder %v3751_v41, 0  ;;  %v1863_v55 = vsel %vm1861_vm8, %v4756_v7, %v1862_v4  ;;  %v7223_v36 = vadd.f32 %v7006_v21, %v666_v25 }
 0x350   : > { %v3508_v2 = vor.u32 4788187, %v3507_v14  ;;  %v3753_v48 = vsel %vm3752_vm11, %v3751_v41, 0  ;;  %v1867_v52 = vsel %vm1860_vm5, %v1863_v55, %v1866_v12  ;;  %v3511_v23 = vcvt.s32.f32 %v3504_v5 }
 0x351   : > { %v7220_v29 = vshrl.u32 %v2138_v37, 30  ;;  %v3755_v49 = vand.u32 31, %v3753_v48  ;;  %v1868_v39 = vsel %vm1857_vm7, nan, %v1867_v52  ;;  %v7229_v51 = vand.u32 3, %v3522_v19 }
 0x352   : > { %v3509_v42 = vand.u32 2147483647, %v3508_v2  ;;  %4063 = vst [vmem:[%s5408_s15 + $0x50] sm:$0xff] %v1868_v39  ;;  %v2133_v40 = vadd.s32 %v7189_v58, %v7193_v17  ;;  %v7233_v60 = vadd.f32 %v7032_v34, %v628_v20  ;;  %v3749_v0 = vor.u32 8388608, %v3748_v11 }
 0x353   : > { %v2140_v62 = vshll.u32 %v7220_v29, 30  ;;  %v3756_v13 = vsub.s32 32, %v3755_v49  ;;  %v1973_v44 = vand.u32 2147483647, %v7223_v36  ;;  %v3758_v47 = vshll.u32 %v4888_v18, %v3755_v49 }
 0x354   : > { %v3512_v30 = vmul.f32 %v3511_v23, %v3509_v42  ;;  %v3761_v58 = vshll.u32 %v4889_v22, %v3755_v49  ;;  %v3764_v17 = vshll.u32 %v4890_v24, %v3755_v49  ;;  %v3754_v16 = vshrl.u32 %v3753_v48, 5 }
 0x355   : > { %v7235_v6 = vsub.s32 %v2137_v57, %v2140_v62  ;;  %v3759_v33 = vshrl.u32 %v4889_v22, %v3756_v13  ;;  %v3762_v54 = vshrl.u32 %v4890_v24, %v3756_v13  ;;  %v3765_v31 = vshrl.u32 %v4891_v26, %v3756_v13 }
 0x356   : > { %v3513_v59 = vxor.u32 2147483648, %v3512_v30  ;;  %v3768_v15 = vshrl.u32 %v4892_v28, %v3756_v13  ;;  %v3767_v7 = vshll.u32 %v4891_v26, %v3755_v49  ;;  %v3770_v32 = vshll.u32 %v4892_v28, %v3755_v49 }
 0x357   : > { %v2143_v46 = vsub.s32 0, %v7235_v6  ;;  %v3760_v53 = vor.u32 %v3759_v33, %v3758_v47  ;;  %v3763_v3 = vor.u32 %v3762_v54, %v3761_v58  ;;  %v3766_v9 = vor.u32 %v3765_v31, %v3764_v17 }
 0x358   : > { %v3514_v56 = vsel %vm3431_vm15, %v3513_v59, %v3512_v30  ;;  %v3769_v27 = vor.u32 %v3768_v15, %v3767_v7  ;;  %v3771_v57 = vshrl.u32 %v4893_v35, %v3756_v13  ;;  %v3789_v25 = vshll.u32 %v3749_v0, 8 }
 0x359   : > { %v3517_v45 = vsel %vm7175_vm2, %v7009_v1, %v3514_v56  ;;  %v4294_v10 = vmin.u32 %v2143_v46, %v7235_v6  ;;  %v1976_v4 = vand.u32 2139095040, %v7223_v36  ;;  %v2163_v5 = vsub.s32 4, %v7220_v29 }
 0x35a   : > { %4759 = vcosq.f32 %v3517_v45  ;;  %v3757_v61 = vshrl.u32 %v4888_v18, %v3756_v13  ;;  %v3772_v14 = vor.u32 %v3771_v57, %v3770_v32  ;;  %vm3773_vm12 = vcmp.lt.s32.totalorder %v3754_v16, 1 }
 0x35b   : > { %4761 = vsinq.f32 %v3517_v45  ;;  %v2145_v41 = vclz %v4294_v10  ;;  %vm3775_vm13 = vcmp.lt.s32.totalorder %v3754_v16, 3  ;;  %vm3776_vm14 = vcmp.lt.s32.totalorder %v3754_v16, 4 }
 0x35c   : > { %v3781_v19 = vsel %vm3773_vm12, %v3760_v53, %v3763_v3  ;;  %v3778_v37 = vsel %vm3776_vm14, %v3766_v9, 2102212464  ;;  %v3782_v55 = vsel %vm3776_vm14, %v3769_v27, 920167782  ;;  %v3785_v2 = vsel %vm3773_vm12, %v3763_v3, %v3766_v9 }
 0x35d   : > { %v4295_v12 = vadd.s32 4294967294, %v2145_v41  ;;  %v3786_v11 = vsel %vm3776_vm14, %v3772_v14, 1326507024  ;;  %vm3774_vm0 = vcmp.lt.s32.totalorder %v3754_v16, 2  ;;  %v3783_v48 = vsel %vm3775_vm13, %v3766_v9, %v3782_v55 }
 0x35e   : > { %v3787_v52 = vsel %vm3775_vm13, %v3769_v27, %v3786_v11  ;;  %v3777_v20 = vsel %vm3773_vm12, %v3757_v61, %v3760_v53  ;;  %v3784_v39 = vsel %vm3774_vm0, %v3781_v19, %v3783_v48  ;;  %v3779_v13 = vsel %vm3775_vm13, %v3763_v3, %v3778_v37 }
 0x35f   : > { %vm4296_vm15 = vcmp.lt.s32.totalorder %v4295_v12, 0  ;;  %v3788_v42 = vsel %vm3774_vm0, %v3785_v2, %v3787_v52  ;;  %v1977_v30 = vshrl.u32 %v1976_v4, 23  ;;  %vm7273_vm1 = vcmp.le.f32.partialorder %v2077_v8, 0.7853982 }
 0x360   : > { %v2148_v49 = vsel %vm4296_vm15, 0, %v4295_v12  ;;  %v7263_v0 = vmul.u32.u64.low %v3789_v25, %v3788_v42  ;;  %v7264_v33 = vmul.u32.u64.high %v3789_v25, %v3788_v42, %v7263_v0  ;;  %vm2079_vm3 = vcmp.lt.s32.totalorder %v7073_v63, 0 }
 0x361   : > { %v2149_v23 = vsub.s32 32, %v2148_v49  ;;  %v2153_v62 = vsub.s32 4294967266, %v2148_v49  ;;  %v7266_v59 = vmul.u32.u64.low %v3789_v25, %v3784_v39  ;;  %v7267_v47 = vmul.u32.u64.high %v3789_v25, %v3784_v39, %v7266_v59 }
 0x362   : > { %v2150_v54 = vshll.u32 %v7235_v6, %v2148_v49  ;;  %v4289_v58 = vadd.s32 4294967169, %v1977_v30  ;;  %v3780_v15 = vsel %vm3774_vm0, %v3777_v20, %v3779_v13  ;;  %v2164_v7 = vsel %vm2079_vm3, %v2163_v5, %v7220_v29 }
 0x363   : > { %v2151_v31 = vshrl.u32 %v2133_v40, %v2149_v23  ;;  %v2154_v46 = vadd.s32 127, %v2153_v62  ;;  %vm3528_vm2 = vcmp.eq.s32.totalorder %v7229_v51, 2  ;;  %vm3798_vm4 = vc.u32 %v7264_v33, %v7266_v59 }
 0x364   : > { %v1983_v6 = vadd.s32 1, %v4289_v58  ;;  %v3799_v8 = vadd.s32 1, %v7267_v47  ;;  %v682_v40 = vmul.f32 %v6893_v50, %v7233_v60  ;;  %v3796_v10 = vmul.u32 %v3789_v25, %v3780_v15 }
 0x365   : > { %v2152_v56 = vor.u32 %v2151_v31, %v2150_v54  ;;  %v2155_v53 = vshll.u32 %v2154_v46, 23  ;;  %v1980_v3 = vand.u32 8388607, %v1973_v44  ;;  %v2166_v27 = vsel %vm7273_vm1, 0, %v2164_v7 }
 0x366   : > { %vm1984_vm5 = vcmp.gt.s32.totalorder %v1983_v6, 0  ;;  %v3800_v32 = vsel %vm3798_vm4, %v3799_v8, %v7267_v47  ;;  %vm3521_vm6 = vweird.f32 %v7009_v1  ;;  %vm3525_vm7 = vcmp.eq.s32.totalorder %v7229_v51, 0 }
 0x367   : > { %v4760_v45 = vpop.eup %4759  ;;  %v2156_v16 = vor.u32 4788187, %v2155_v53  ;;  %v1985_v57 = vsel %vm1984_vm5, %v1983_v6, 0  ;;  %v2159_v5 = vcvt.s32.f32 %v2152_v56  ;;  %v3801_v61 = vadd.s32 %v3800_v32, %v3796_v10 }
 0x368   : > { %v4762_v9 = vpop.eup %4761  ;;  %v3529_v29 = vxor.u32 2147483648, %v4760_v45  ;;  %v1987_v60 = vand.u32 31, %v1985_v57  ;;  %vm3524_vm8 = vcmp.lt.s32.totalorder %v7229_v51, 2  ;;  %v2170_v37 = vadd.s32 3, %v2166_v27 }
 0x369   : > { %v3526_v41 = vxor.u32 2147483648, %v4762_v9  ;;  %v2157_v4 = vand.u32 2147483647, %v2156_v16  ;;  %v3802_v12 = vadd.s32 536870912, %v3801_v61  ;;  %v1981_v55 = vor.u32 8388608, %v1980_v3 }
 0x36a   : > { %v3530_v50 = vsel %vm3528_vm2, %v3529_v29, %v4762_v9  ;;  %v1988_v2 = vsub.s32 32, %v1987_v60  ;;  %v7301_v1 = vadd.f32 %v7006_v21, %v682_v40  ;;  %v1990_v49 = vshll.u32 %v4888_v18, %v1987_v60 }
 0x36b   : > { %v3527_v25 = vsel %vm3525_vm7, %v4760_v45, %v3526_v41  ;;  %v2160_v14 = vmul.f32 %v2159_v5, %v2157_v4  ;;  %v7298_v52 = vshrl.u32 %v3802_v12, 30  ;;  %v1986_v62 = vshrl.u32 %v1985_v57, 5 }
 0x36c   : > { %v3531_v19 = vsel %vm3524_vm8, %v3527_v25, %v3530_v50  ;;  %v1991_v20 = vshrl.u32 %v4889_v22, %v1988_v2  ;;  %v1994_v51 = vshrl.u32 %v4890_v24, %v1988_v2  ;;  %v1997_v39 = vshrl.u32 %v4891_v26, %v1988_v2  ;;  %v4443_v50 = vpop.f32.mrf.mxu0 }
 0x36d   : > { %v3532_v11 = vsel %vm3521_vm6, nan, %v3531_v19  ;;  %v2161_v48 = vxor.u32 2147483648, %v2160_v14  ;;  %v3804_v23 = vshll.u32 %v7298_v52, 30  ;;  %v1996_v13 = vshll.u32 %v4890_v24, %v1987_v60 }
 0x36e   : > { %4079 = vst [vmem:[%s5408_s15 + $0xd0] sm:$0xff] %v3532_v11  ;;  %v1992_v30 = vor.u32 %v1991_v20, %v1990_v49  ;;  %v1993_v0 = vshll.u32 %v4889_v22, %v1987_v60  ;;  %v1999_v47 = vshll.u32 %v4891_v26, %v1987_v60  ;;  %v2000_v46 = vshrl.u32 %v4892_v28, %v1988_v2 }
 0x36f   : > { %v2162_v42 = vsel %vm2079_vm3, %v2161_v48, %v2160_v14  ;;  %v7317_v54 = vsub.s32 %v3801_v61, %v3804_v23  ;;  %v1998_v31 = vor.u32 %v1997_v39, %v1996_v13  ;;  %v2002_v15 = vshll.u32 %v4892_v28, %v1987_v60 }
 0x370   : > { %v2165_v21 = vsel %vm7273_vm1, %v7073_v63, %v2162_v42  ;;  %v1995_v58 = vor.u32 %v1994_v51, %v1993_v0  ;;  %v2003_v56 = vshrl.u32 %v4893_v35, %v1988_v2  ;;  %v7322_v53 = vand.u32 3, %v2170_v37 }
 0x371   : > { %4763 = vcosq.f32 %v2165_v21  ;;  %v3807_v17 = vsub.s32 0, %v7317_v54  ;;  %v2001_v7 = vor.u32 %v2000_v46, %v1999_v47  ;;  %vm3743_vm9 = vcmp.lt.s32.totalorder %v7171_v38, 0 }
 0x372   : > { %4765 = vsinq.f32 %v2165_v21  ;;  %v2004_v6 = vor.u32 %v2003_v56, %v2002_v15  ;;  %vm2008_vm10 = vcmp.lt.s32.totalorder %v1986_v62, 4  ;;  %v2021_v8 = vshll.u32 %v1981_v55, 8 }
 0x373   : > { %v3640_v40 = vand.u32 2139095040, %v7301_v1  ;;  %v4358_v45 = vmin.u32 %v3807_v17, %v7317_v54  ;;  %v1989_v16 = vshrl.u32 %v4888_v18, %v1988_v2  ;;  %vm2005_vm11 = vcmp.lt.s32.totalorder %v1986_v62, 1 }
 0x374   : > { %v2010_v10 = vsel %vm2008_vm10, %v1998_v31, 2102212464  ;;  %v2013_v3 = vsel %vm2005_vm11, %v1992_v30, %v1995_v58  ;;  %v2014_v9 = vsel %vm2008_vm10, %v2001_v7, 920167782  ;;  %v2017_v29 = vsel %vm2005_vm11, %v1995_v58, %v1998_v31 }
 0x375   : > { %v2018_v27 = vsel %vm2008_vm10, %v2004_v6, 1326507024  ;;  %v3809_v32 = vclz %v4358_v45  ;;  %vm2006_vm12 = vcmp.lt.s32.totalorder %v1986_v62, 2  ;;  %vm2007_vm13 = vcmp.lt.s32.totalorder %v1986_v62, 3  ;;  %v4467_v6 = vpop.f32.mrf.mxu1 }
 0x376   : > { %v2009_v57 = vsel %vm2005_vm11, %v1989_v16, %v1992_v30  ;;  %v2011_v41 = vsel %vm2007_vm13, %v1995_v58, %v2010_v10  ;;  %v2015_v4 = vsel %vm2007_vm13, %v1998_v31, %v2014_v9  ;;  %v2019_v5 = vsel %vm2007_vm13, %v2001_v7, %v2018_v27  ;;  %v7369_v9 = vld [vmem:[%s5072_s7] ss:$0 sm:$0xff] }
 0x377   : > { %v3641_v61 = vshrl.u32 %v3640_v40, 23  ;;  %vm7331_vm14 = vcmp.le.f32.partialorder %v3741_v43, 0.7853982  ;;  %v4359_v25 = vadd.s32 4294967294, %v3809_v32  ;;  %v3827_v14 = vsub.s32 4, %v7298_v52 }
 0x378   : > { %v2016_v12 = vsel %vm2006_vm12, %v2013_v3, %v2015_v4  ;;  %v2020_v19 = vsel %vm2006_vm12, %v2017_v29, %v2019_v5  ;;  %vm2169_vm15 = vweird.f32 %v7073_v63  ;;  %v2012_v43 = vsel %vm2006_vm12, %v2009_v57, %v2011_v41 }
 0x379   : > { %v7338_v37 = vmul.u32.u64.low %v2021_v8, %v2020_v19  ;;  %v7339_v55 = vmul.u32.u64.high %v2021_v8, %v2020_v19, %v7338_v37  ;;  %v7341_v2 = vmul.u32.u64.low %v2021_v8, %v2016_v12  ;;  %v7342_v11 = vmul.u32.u64.high %v2021_v8, %v2016_v12, %v7341_v2 }
 0x37a   : > { %vm4360_vm0 = vcmp.lt.s32.totalorder %v4359_v25, 0  ;;  %v4353_v48 = vadd.s32 4294967169, %v3641_v61  ;;  %v564_v49 = vadd.f32 %v7032_v34, %v4443_v50  ;;  %vm2173_vm1 = vcmp.eq.s32.totalorder %v7322_v53, 0 }
 0x37b   : > { %vm2176_vm3 = vcmp.eq.s32.totalorder %v7322_v53, 2  ;;  %v3797_v20 = vadd.s32 %v7266_v59, %v7264_v33  ;;  %v3812_v51 = vsel %vm4360_vm0, 0, %v4359_v25  ;;  %v3828_v23 = vsel %vm3743_vm9, %v3827_v14, %v7298_v52 }
 0x37c   : > { %v3813_v39 = vsub.s32 32, %v3812_v51  ;;  %v3817_v42 = vsub.s32 4294967266, %v3812_v51  ;;  %v3647_v13 = vadd.s32 1, %v4353_v48  ;;  %v3814_v21 = vshll.u32 %v7317_v54, %v3812_v51 }
 0x37d   : > { %v2028_v30 = vmul.u32 %v2021_v8, %v2012_v43  ;;  %vm2030_vm2 = vc.u32 %v7339_v55, %v7341_v2  ;;  %v2031_v0 = vadd.s32 1, %v7342_v11  ;;  %v3637_v52 = vand.u32 2147483647, %v7301_v1 }
 0x37e   : > { %v4764_v62 = vpop.eup %4763  ;;  %v3815_v33 = vshrl.u32 %v3797_v20, %v3813_v39  ;;  %v3818_v59 = vadd.s32 127, %v3817_v42  ;;  %vm3648_vm4 = vcmp.gt.s32.totalorder %v3647_v13, 0  ;;  %vm2172_vm5 = vcmp.lt.s32.totalorder %v7322_v53, 2 }
 0x37f   : > { %v4766_v47 = vpop.eup %4765  ;;  %v2177_v31 = vxor.u32 2147483648, %v4764_v62  ;;  %v2032_v58 = vsel %vm2030_vm2, %v2031_v0, %v7342_v11  ;;  %v3649_v15 = vsel %vm3648_vm4, %v3647_v13, 0  ;;  %v3830_v40 = vsel %vm7331_vm14, 0, %v3828_v23 }
 0x380   : > { %v2174_v46 = vxor.u32 2147483648, %v4766_v47  ;;  %v3816_v56 = vor.u32 %v3815_v33, %v3814_v21  ;;  %v3819_v17 = vshll.u32 %v3818_v59, 23  ;;  %v2033_v7 = vadd.s32 %v2032_v58, %v2028_v30 }
 0x381   : > { %v2178_v54 = vsel %vm2176_vm3, %v2177_v31, %v4766_v47  ;;  %v3651_v45 = vand.u32 31, %v3649_v15  ;;  %v669_v29 = vmul.f32 %v7369_v9, %v564_v49  ;;  %v3644_v32 = vand.u32 8388607, %v3637_v52  ;;  %v7398_v31 = vld [vmem:[%s5083_s12] ss:$0 sm:$0xff]  ;;  %s4101_s12 = sshll.u32 %s5408_s15, 4  ;;  %s7739_s12 = int_to_ptr.vmem [resolvable:$true] %s4101_s12 }
 0x382   : > { %v2175_v8 = vsel %vm2173_vm1, %v4764_v62, %v2174_v46  ;;  %v3820_v10 = vor.u32 4788187, %v3819_v17  ;;  %v2034_v3 = vadd.s32 536870912, %v2033_v7  ;;  %v7377_v53 = vadd.f32 %v7032_v34, %v4467_v6  ;;  %s4810_s24 = scalar_lea.vmem %s7739_s12, 4096  ;;  %p4817_p1 = scmp.lt.s32.totalorder %s7739_s12, %s4815_s27 }
 0x383   : > { %v2179_v16 = vsel %vm2172_vm5, %v2175_v8, %v2178_v54  ;;  %v3652_v57 = vsub.s32 32, %v3651_v45  ;;  %v3823_v4 = vcvt.s32.f32 %v3816_v56  ;;  %v3834_v5 = vadd.s32 3, %v3830_v40  ;;  %p4811_p12 = scmp.ne.s32.totalorder %s7739_s12, %s4810_s24  ;;  %p4818_p2 = scmp.lt.s32.totalorder %s4816_s29, %s4810_s24 }
 0x384   : > { %v2180_v27 = vsel %vm2169_vm15, nan, %v2179_v16  ;;  %v3821_v41 = vand.u32 2147483647, %v3820_v10  ;;  %v2035_v61 = vshrl.u32 %v2034_v3, 30  ;;  %v3654_v50 = vshll.u32 %v4888_v18, %v3651_v45 }
 0x385   : > { %4066 = vst [vmem:[%s5408_s15 + $0x68] sm:$0xff] %v2180_v27  ;;  %v3655_v25 = vshrl.u32 %v4889_v22, %v3652_v57  ;;  %v3658_v14 = vshrl.u32 %v4890_v24, %v3652_v57  ;;  %v3661_v63 = vshrl.u32 %v4891_v26, %v3652_v57  ;;  %v3660_v37 = vshll.u32 %v4890_v24, %v3651_v45  ;;  %p4812_p13 = pnand %p4811_p12, %p4967_p4  ;;  %p4819_p3 = por %p4818_p2, %p4817_p1 }
 0x386   : > { %v3824_v12 = vmul.f32 %v3823_v4, %v3821_v41  ;;  %v2036_v19 = vshll.u32 %v2035_v61, 30  ;;  %v3664_v34 = vshrl.u32 %v4892_v28, %v3652_v57  ;;  %vm1975_vm6 = vcmp.lt.s32.totalorder %v7223_v36, 0 }
 0x387   : > { %v3645_v11 = vor.u32 8388608, %v3644_v32  ;;  %v3650_v43 = vshrl.u32 %v3649_v15, 5  ;;  %v3657_v48 = vshll.u32 %v4889_v22, %v3651_v45  ;;  %v3663_v49 = vshll.u32 %v4891_v26, %v3651_v45  ;;  %p4813_p0 = pneg %p4812_p13 }
 0x388   : > { %v3825_v20 = vxor.u32 2147483648, %v3824_v12  ;;  %v7389_v51 = vsub.s32 %v2033_v7, %v2036_v19  ;;  %v3656_v39 = vor.u32 %v3655_v25, %v3654_v50  ;;  %v3662_v42 = vor.u32 %v3661_v63, %v3660_v37 }
 0x389   : > { %v3659_v23 = vor.u32 %v3658_v14, %v3657_v48  ;;  %v3665_v13 = vor.u32 %v3664_v34, %v3663_v49  ;;  %v3666_v62 = vshll.u32 %v4892_v28, %v3651_v45  ;;  %v3667_v21 = vshrl.u32 %v4893_v35, %v3652_v57  ;;  %p4820_p5 = pnand %p4819_p3, %p4813_p0 }
 0x38a   : > { %v3826_v30 = vsel %vm3743_vm9, %v3825_v20, %v3824_v12  ;;  %v2039_v0 = vsub.s32 0, %v7389_v51  ;;  %v3653_v47 = vshrl.u32 %v4888_v18, %v3652_v57  ;;  %v7401_v33 = vadd.f32 %v7398_v31, %v669_v29 }
 0x38b   : > { %v3829_v59 = vsel %vm7331_vm14, %v7171_v38, %v3826_v30  ;;  %v2059_v46 = vsub.s32 4, %v2035_v61  ;;  %v3668_v58 = vor.u32 %v3667_v21, %v3666_v62  ;;  %vm3672_vm7 = vcmp.lt.s32.totalorder %v3650_v43, 4 }
 0x38c   : > { %4767 = vcosq.f32 %v3829_v59  ;;  %v4290_v15 = vmin.u32 %v2039_v0, %v7389_v51  ;;  %vm3669_vm8 = vcmp.lt.s32.totalorder %v3650_v43, 1  ;;  %v3674_v54 = vsel %vm3672_vm7, %v3662_v42, 2102212464 }
 0x38d   : > { %4769 = vsinq.f32 %v3829_v59  ;;  %vm3671_vm9 = vcmp.lt.s32.totalorder %v3650_v43, 3  ;;  %v3677_v56 = vsel %vm3669_vm8, %v3656_v39, %v3659_v23  ;;  %v3678_v17 = vsel %vm3672_vm7, %v3665_v13, 920167782 }
 0x38e   : > { %v2041_v7 = vclz %v4290_v15  ;;  %v3673_v6 = vsel %vm3669_vm8, %v3653_v47, %v3656_v39  ;;  %v3675_v8 = vsel %vm3671_vm9, %v3659_v23, %v3674_v54  ;;  %v3685_v40 = vshll.u32 %v3645_v11, 8 }
 0x38f   : > { %vm3670_vm10 = vcmp.lt.s32.totalorder %v3650_v43, 2  ;;  %v3679_v60 = vsel %vm3671_vm9, %v3662_v42, %v3678_v17  ;;  %v3681_v45 = vsel %vm3669_vm8, %v3659_v23, %v3662_v42  ;;  %v3682_v16 = vsel %vm3672_vm7, %v3668_v58, 1326507024 }
 0x390   : > { %v4291_v10 = vadd.s32 4294967294, %v2041_v7  ;;  %v2060_v3 = vsel %vm1975_vm6, %v2059_v46, %v2035_v61  ;;  %v3680_v29 = vsel %vm3670_vm10, %v3677_v56, %v3679_v60  ;;  %v3683_v27 = vsel %vm3671_vm9, %v3665_v13, %v3682_v16 }
 0x391   : > { %v3676_v32 = vsel %vm3670_vm10, %v3673_v6, %v3675_v8  ;;  %v3684_v57 = vsel %vm3670_vm10, %v3681_v45, %v3683_v27  ;;  %v7412_v41 = vmul.u32.u64.low %v3685_v40, %v3680_v29  ;;  %v7413_v4 = vmul.u32.u64.high %v3685_v40, %v3680_v29, %v7412_v41 }
 0x392   : > { %vm4292_vm11 = vcmp.lt.s32.totalorder %v4291_v10, 0  ;;  %v7416_v50 = vmul.u32.u64.low %v3685_v40, %v3684_v57  ;;  %v7417_v25 = vmul.u32.u64.high %v3685_v40, %v3684_v57, %v7416_v50  ;;  %v2288_v14 = vand.u32 2139095040, %v7401_v33 }
 0x393   : > { %v3835_v63 = vand.u32 3, %v3834_v5  ;;  %vm7422_vm12 = vcmp.le.f32.partialorder %v1973_v44, 0.7853982  ;;  %v2044_v61 = vsel %vm4292_vm11, 0, %v4291_v10  ;;  %v685_v19 = vmul.f32 %v7369_v9, %v7377_v53 }
 0x394   : > { %v2029_v37 = vadd.s32 %v7341_v2, %v7339_v55  ;;  %v2045_v34 = vsub.s32 32, %v2044_v61  ;;  %v2049_v11 = vsub.s32 4294967266, %v2044_v61  ;;  %v2289_v43 = vshrl.u32 %v2288_v14, 23 }
 0x395   : > { %v2062_v48 = vsel %vm7422_vm12, 0, %v2060_v3  ;;  %v3692_v5 = vmul.u32 %v3685_v40, %v3676_v32  ;;  %v3695_v49 = vadd.s32 1, %v7413_v4  ;;  %v2285_v44 = vand.u32 2147483647, %v7401_v33 }
 0x396   : > { %v2046_v20 = vshll.u32 %v7389_v51, %v2044_v61  ;;  %v2047_v39 = vshrl.u32 %v2029_v37, %v2045_v34  ;;  %v2050_v42 = vadd.s32 127, %v2049_v11  ;;  %vm3694_vm13 = vc.u32 %v7417_v25, %v7412_v41 }
 0x397   : > { %v3696_v55 = vsel %vm3694_vm13, %v3695_v49, %v7413_v4  ;;  %v4301_v2 = vadd.s32 4294967169, %v2289_v43  ;;  %v7439_v53 = vadd.f32 %v7398_v31, %v685_v19  ;;  %vm3837_vm14 = vcmp.eq.s32.totalorder %v3835_v63, 0 }
 0x398   : > { %v2048_v23 = vor.u32 %v2047_v39, %v2046_v20  ;;  %v2051_v13 = vshll.u32 %v2050_v42, 23  ;;  %v3697_v62 = vadd.s32 %v3696_v55, %v3692_v5  ;;  %vm3840_vm15 = vcmp.eq.s32.totalorder %v3835_v63, 2 }
 0x399   : > { %v4768_v21 = vpop.eup %4767  ;;  %v2066_v30 = vadd.s32 3, %v2062_v48  ;;  %v2295_v0 = vadd.s32 1, %v4301_v2  ;;  %v2292_v58 = vand.u32 8388607, %v2285_v44  ;;  %v3952_v56 = vand.u32 2139095040, %v7439_v53 }
 0x39a   : > { %v4770_v51 = vpop.eup %4769  ;;  %v3841_v47 = vxor.u32 2147483648, %v4768_v21  ;;  %v2052_v59 = vor.u32 4788187, %v2051_v13  ;;  %v3698_v46 = vadd.s32 536870912, %v3697_v62  ;;  %v2055_v54 = vcvt.s32.f32 %v2048_v23 }
 0x39b   : > { %v3838_v15 = vxor.u32 2147483648, %v4770_v51  ;;  %vm2296_vm0 = vcmp.gt.s32.totalorder %v2295_v0, 0  ;;  %vm3836_vm1 = vcmp.lt.s32.totalorder %v3835_v63, 2  ;;  %vm3833_vm3 = vweird.f32 %v7171_v38 }
 0x39c   : > { %v3842_v17 = vsel %vm3840_vm15, %v3841_v47, %v4770_v51  ;;  %v2053_v7 = vand.u32 2147483647, %v2052_v59  ;;  %v7444_v6 = vshrl.u32 %v3698_v46, 30  ;;  %v2297_v8 = vsel %vm2296_vm0, %v2295_v0, 0 }
 0x39d   : > { %v3839_v40 = vsel %vm3837_vm14, %v4768_v21, %v3838_v15  ;;  %v2299_v60 = vand.u32 31, %v2297_v8  ;;  %v7449_v29 = vand.u32 3, %v2066_v30  ;;  %v2293_v4 = vor.u32 8388608, %v2292_v58 }
 0x39e   : > { %v3843_v45 = vsel %vm3836_vm1, %v3839_v40, %v3842_v17  ;;  %v2056_v16 = vmul.f32 %v2055_v54, %v2053_v7  ;;  %v3700_v10 = vshll.u32 %v7444_v6, 30  ;;  %v3953_v50 = vshrl.u32 %v3952_v56, 23 }
 0x39f   : > { %v3844_v3 = vsel %vm3833_vm3, nan, %v3843_v45  ;;  %v2300_v27 = vsub.s32 32, %v2299_v60  ;;  %v2302_v14 = vshll.u32 %v4888_v18, %v2299_v60  ;;  %v2305_v38 = vshll.u32 %v4889_v22, %v2299_v60 }
 0x3a0   : > { %4082 = vst [vmem:[%s5408_s15 + $0xe8] sm:$0xff] %v3844_v3  ;;  %v2057_v32 = vxor.u32 2147483648, %v2056_v16  ;;  %v7452_v57 = vsub.s32 %v3697_v62, %v3700_v10  ;;  %v2308_v34 = vshll.u32 %v4890_v24, %v2299_v60  ;;  %v2298_v48 = vshrl.u32 %v2297_v8, 5  ;;  %v558_v10 = vpop.f32.mrf.mxu0 }
 0x3a1   : > { %v2303_v63 = vshrl.u32 %v4889_v22, %v2300_v27  ;;  %v2306_v61 = vshrl.u32 %v4890_v24, %v2300_v27  ;;  %v2309_v11 = vshrl.u32 %v4891_v26, %v2300_v27  ;;  %v2311_v42 = vshll.u32 %v4891_v26, %v2299_v60 }
 0x3a2   : > { %v2058_v19 = vsel %vm1975_vm6, %v2057_v32, %v2056_v16  ;;  %v3703_v37 = vsub.s32 0, %v7452_v57  ;;  %v2312_v55 = vshrl.u32 %v4892_v28, %v2300_v27  ;;  %v2314_v2 = vshll.u32 %v4892_v28, %v2299_v60 }
 0x3a3   : > { %v2061_v43 = vsel %vm7422_vm12, %v7223_v36, %v2058_v19  ;;  %v2304_v5 = vor.u32 %v2303_v63, %v2302_v14  ;;  %v2307_v49 = vor.u32 %v2306_v61, %v2305_v38  ;;  %v2310_v39 = vor.u32 %v2309_v11, %v2308_v34  ;;  %v7506_v19 = vld [vmem:[%s7792_s2] ss:$0 sm:$0xff] }
 0x3a4   : > { %4771 = vcosq.f32 %v2061_v43  ;;  %v4354_v20 = vmin.u32 %v3703_v37, %v7452_v57  ;;  %v2315_v23 = vshrl.u32 %v4893_v35, %v2300_v27  ;;  %v3693_v12 = vadd.s32 %v7412_v41, %v7417_v25 }
 0x3a5   : > { %4773 = vsinq.f32 %v2061_v43  ;;  %v7473_v62 = vshll.u32 %v2293_v4, 8  ;;  %v4365_v21 = vadd.s32 4294967169, %v3953_v50  ;;  %vm3639_vm2 = vcmp.lt.s32.totalorder %v7301_v1, 0 }
 0x3a6   : > { %v3705_v13 = vclz %v4354_v20  ;;  %v3723_v30 = vsub.s32 4, %v7444_v6  ;;  %v2301_v0 = vshrl.u32 %v4888_v18, %v2300_v27  ;;  %v2313_v51 = vor.u32 %v2312_v55, %v2311_v42 }
 0x3a7   : > { %v2316_v47 = vor.u32 %v2315_v23, %v2314_v2  ;;  %vm2317_vm4 = vcmp.lt.s32.totalorder %v2298_v48, 1  ;;  %vm2319_vm5 = vcmp.lt.s32.totalorder %v2298_v48, 3  ;;  %vm2320_vm6 = vcmp.lt.s32.totalorder %v2298_v48, 4 }
 0x3a8   : > { %v4355_v59 = vadd.s32 4294967294, %v3705_v13  ;;  %v2322_v46 = vsel %vm2320_vm6, %v2310_v39, 2102212464  ;;  %v2325_v58 = vsel %vm2317_vm4, %v2304_v5, %v2307_v49  ;;  %v2326_v15 = vsel %vm2320_vm6, %v2313_v51, 920167782 }
 0x3a9   : > { %v2329_v41 = vsel %vm2317_vm4, %v2307_v49, %v2310_v39  ;;  %vm7480_vm7 = vcmp.le.f32.partialorder %v3637_v52, 0.7853982  ;;  %vm2318_vm9 = vcmp.lt.s32.totalorder %v2298_v48, 2  ;;  %v2327_v54 = vsel %vm2319_vm5, %v2310_v39, %v2326_v15 }
 0x3aa   : > { %vm4356_vm8 = vcmp.lt.s32.totalorder %v4355_v59, 0  ;;  %v2330_v56 = vsel %vm2320_vm6, %v2316_v47, 1326507024  ;;  %v2321_v7 = vsel %vm2317_vm4, %v2301_v0, %v2304_v5  ;;  %v2328_v8 = vsel %vm2318_vm9, %v2325_v58, %v2327_v54 }
 0x3ab   : > { %v3708_v17 = vsel %vm4356_vm8, 0, %v4355_v59  ;;  %v2331_v40 = vsel %vm2319_vm5, %v2313_v51, %v2330_v56  ;;  %v2323_v16 = vsel %vm2319_vm5, %v2307_v49, %v2322_v46  ;;  %vm2065_vm10 = vweird.f32 %v7223_v36 }
 0x3ac   : > { %v3709_v60 = vsub.s32 32, %v3708_v17  ;;  %v3713_v45 = vsub.s32 4294967266, %v3708_v17  ;;  %v2332_v52 = vsel %vm2318_vm9, %v2329_v41, %v2331_v40  ;;  %v3710_v50 = vshll.u32 %v7452_v57, %v3708_v17 }
 0x3ad   : > { %v7490_v3 = vmul.u32.u64.low %v7473_v62, %v2332_v52  ;;  %v7491_v27 = vmul.u32.u64.high %v7473_v62, %v2332_v52, %v7490_v3  ;;  %v7494_v32 = vmul.u32.u64.low %v7473_v62, %v2328_v8  ;;  %v7495_v4 = vmul.u32.u64.high %v7473_v62, %v2328_v8, %v7494_v32 }
 0x3ae   : > { %v3711_v14 = vshrl.u32 %v3693_v12, %v3709_v60  ;;  %v3714_v63 = vadd.s32 127, %v3713_v45  ;;  %v3959_v38 = vadd.s32 1, %v4365_v21  ;;  %vm2068_vm11 = vcmp.lt.s32.totalorder %v7449_v29, 2 }
 0x3af   : > { %vm2069_vm12 = vcmp.eq.s32.totalorder %v7449_v29, 0  ;;  %v2324_v61 = vsel %vm2318_vm9, %v2321_v7, %v2323_v16  ;;  %v559_v37 = vadd.f32 %v7506_v19, %v558_v10  ;;  %v3724_v57 = vsel %vm3639_vm2, %v3723_v30, %v7444_v6 }
 0x3b0   : > { %v3712_v34 = vor.u32 %v3711_v14, %v3710_v50  ;;  %v3715_v11 = vshll.u32 %v3714_v63, 23  ;;  %vm3960_vm13 = vcmp.gt.s32.totalorder %v3959_v38, 0  ;;  %vm2342_vm14 = vc.u32 %v7491_v27, %v7494_v32 }
 0x3b1   : > { %v4772_v43 = vpop.eup %4771  ;;  %v2343_v48 = vadd.s32 1, %v7495_v4  ;;  %v3949_v5 = vand.u32 2147483647, %v7439_v53  ;;  %v3961_v49 = vsel %vm3960_vm13, %v3959_v38, 0  ;;  %vm2072_vm15 = vcmp.eq.s32.totalorder %v7449_v29, 2 }
 0x3b2   : > { %v4774_v20 = vpop.eup %4773  ;;  %v2073_v39 = vxor.u32 2147483648, %v4772_v43  ;;  %v3716_v42 = vor.u32 4788187, %v3715_v11  ;;  %v2340_v55 = vmul.u32 %v7473_v62, %v2324_v61  ;;  %v3726_v6 = vsel %vm7480_vm7, 0, %v3724_v57 }
 0x3b3   : > { %v2070_v2 = vxor.u32 2147483648, %v4774_v20  ;;  %v2344_v23 = vsel %vm2342_vm14, %v2343_v48, %v7495_v4  ;;  %v3963_v12 = vand.u32 31, %v3961_v49  ;;  %v3719_v30 = vcvt.s32.f32 %v3712_v34 }
 0x3b4   : > { %v2074_v13 = vsel %vm2072_vm15, %v2073_v39, %v4774_v20  ;;  %v3717_v21 = vand.u32 2147483647, %v3716_v42  ;;  %v2345_v0 = vadd.s32 %v2344_v23, %v2340_v55  ;;  %v3956_v47 = vand.u32 8388607, %v3949_v5 }
 0x3b5   : > { %v2071_v51 = vsel %vm2069_vm12, %v4772_v43, %v2070_v2  ;;  %v3964_v59 = vsub.s32 32, %v3963_v12  ;;  %v668_v62 = vmul.f32 %v7369_v9, %v559_v37  ;;  %v3730_v15 = vadd.s32 3, %v3726_v6 }
 0x3b6   : > { %v2075_v46 = vsel %vm2068_vm11, %v2071_v51, %v2074_v13  ;;  %v3720_v58 = vmul.f32 %v3719_v30, %v3717_v21  ;;  %v2346_v41 = vadd.s32 536870912, %v2345_v0  ;;  %v3966_v56 = vshll.u32 %v4888_v18, %v3963_v12 }
 0x3b7   : > { %v2076_v54 = vsel %vm2065_vm10, nan, %v2075_v46  ;;  %v3967_v17 = vshrl.u32 %v4889_v22, %v3964_v59  ;;  %v3970_v7 = vshrl.u32 %v4890_v24, %v3964_v59  ;;  %v3969_v60 = vshll.u32 %v4889_v22, %v3963_v12 }
 0x3b8   : > { %4065 = vst [vmem:[%s5408_s15 + $0x60] sm:$0xff] %v2076_v54  ;;  %v3721_v8 = vxor.u32 2147483648, %v3720_v58  ;;  %v2347_v40 = vshrl.u32 %v2346_v41, 30  ;;  %v3973_v29 = vshrl.u32 %v4891_v26, %v3964_v59  ;;  %v3962_v45 = vshrl.u32 %v3961_v49, 5  ;;  %v638_v41 = vpop.f32.mrf.mxu1 }
 0x3b9   : > { %v3972_v16 = vshll.u32 %v4890_v24, %v3963_v12  ;;  %v3975_v52 = vshll.u32 %v4891_v26, %v3963_v12  ;;  %v3976_v36 = vshrl.u32 %v4892_v28, %v3964_v59  ;;  %v3968_v4 = vor.u32 %v3967_v17, %v3966_v56 }
 0x3ba   : > { %v3722_v10 = vsel %vm3639_vm2, %v3721_v8, %v3720_v58  ;;  %v2348_v3 = vshll.u32 %v2347_v40, 30  ;;  %v3971_v50 = vor.u32 %v3970_v7, %v3969_v60  ;;  %v3978_v38 = vshll.u32 %v4892_v28, %v3963_v12 }
 0x3bb   : > { %v3725_v14 = vsel %vm7480_vm7, %v7301_v1, %v3722_v10  ;;  %v3977_v63 = vor.u32 %v3976_v36, %v3975_v52  ;;  %v3979_v61 = vshrl.u32 %v4893_v35, %v3964_v59  ;;  %v3974_v34 = vor.u32 %v3973_v29, %v3972_v16 }
 0x3bc   : > { %4775 = vcosq.f32 %v3725_v14  ;;  %v7546_v37 = vsub.s32 %v2345_v0, %v2348_v3  ;;  %v7548_v11 = vand.u32 3, %v3730_v15  ;;  %v3957_v57 = vor.u32 8388608, %v3956_v47 }
 0x3bd   : > { %4777 = vsinq.f32 %v3725_v14  ;;  %v3980_v43 = vor.u32 %v3979_v61, %v3978_v38  ;;  %vm3981_vm0 = vcmp.lt.s32.totalorder %v3962_v45, 1  ;;  %vm3984_vm1 = vcmp.lt.s32.totalorder %v3962_v45, 4 }
 0x3be   : > { %v2351_v48 = vsub.s32 0, %v7546_v37  ;;  %v7552_v25 = vadd.f32 %v7398_v31, %v668_v62  ;;  %v3965_v49 = vshrl.u32 %v4888_v18, %v3964_v59  ;;  %vm3983_vm3 = vcmp.lt.s32.totalorder %v3962_v45, 3 }
 0x3bf   : > { %v3989_v20 = vsel %vm3981_vm0, %v3968_v4, %v3971_v50  ;;  %v3990_v39 = vsel %vm3984_vm1, %v3977_v63, 920167782  ;;  %vm3982_vm2 = vcmp.lt.s32.totalorder %v3962_v45, 2  ;;  %v3986_v55 = vsel %vm3984_vm1, %v3974_v34, 2102212464 }
 0x3c0   : > { %v4302_v42 = vmin.u32 %v2351_v48, %v7546_v37  ;;  %v3991_v2 = vsel %vm3983_vm3, %v3974_v34, %v3990_v39  ;;  %v3993_v23 = vsel %vm3981_vm0, %v3971_v50, %v3974_v34  ;;  %v3994_v12 = vsel %vm3984_vm1, %v3980_v43, 1326507024 }
 0x3c1   : > { %v3992_v6 = vsel %vm3982_vm2, %v3989_v20, %v3991_v2  ;;  %v3997_v13 = vshll.u32 %v3957_v57, 8  ;;  %vm7562_vm4 = vcmp.le.f32.partialorder %v2285_v44, 0.7853982  ;;  %v2371_v0 = vsub.s32 4, %v2347_v40 }
 0x3c2   : > { %v2353_v30 = vclz %v4302_v42  ;;  %v3985_v51 = vsel %vm3981_vm0, %v3965_v49, %v3968_v4  ;;  %v3987_v47 = vsel %vm3983_vm3, %v3971_v50, %v3986_v55  ;;  %v3995_v59 = vsel %vm3983_vm3, %v3977_v63, %v3994_v12 }
 0x3c3   : > { %v7569_v62 = vmul.u32.u64.low %v3997_v13, %v3992_v6  ;;  %v7570_v46 = vmul.u32.u64.high %v3997_v13, %v3992_v6, %v7569_v62  ;;  %vm2287_vm5 = vcmp.lt.s32.totalorder %v7401_v33, 0  ;;  %v3996_v44 = vsel %vm3982_vm2, %v3993_v23, %v3995_v59 }
 0x3c4   : > { %v4303_v58 = vadd.s32 4294967294, %v2353_v30  ;;  %v2184_v15 = vand.u32 2139095040, %v7552_v25  ;;  %vm3732_vm6 = vcmp.lt.s32.totalorder %v7548_v11, 2  ;;  %vm3736_vm7 = vcmp.eq.s32.totalorder %v7548_v11, 2 }
 0x3c5   : > { %v7578_v54 = vmul.u32.u64.low %v3997_v13, %v3996_v44  ;;  %v7579_v56 = vmul.u32.u64.high %v3997_v13, %v3996_v44, %v7578_v54  ;;  %vm3729_vm8 = vweird.f32 %v7301_v1  ;;  %v2372_v17 = vsel %vm2287_vm5, %v2371_v0, %v2347_v40 }
 0x3c6   : > { %vm4304_vm9 = vcmp.lt.s32.totalorder %v4303_v58, 0  ;;  %v3988_v7 = vsel %vm3982_vm2, %v3985_v51, %v3987_v47  ;;  %v2185_v8 = vshrl.u32 %v2184_v15, 23  ;;  %v2341_v60 = vadd.s32 %v7494_v32, %v7491_v27 }
 0x3c7   : > { %v2356_v29 = vsel %vm4304_vm9, 0, %v4303_v58  ;;  %v4007_v16 = vadd.s32 1, %v7570_v46  ;;  %v639_v52 = vadd.f32 %v7506_v19, %v638_v41  ;;  %v2181_v3 = vand.u32 2147483647, %v7552_v25 }
 0x3c8   : > { %v2357_v36 = vsub.s32 32, %v2356_v29  ;;  %v2361_v10 = vsub.s32 4294967266, %v2356_v29  ;;  %v4297_v4 = vadd.s32 4294967169, %v2185_v8  ;;  %v2358_v14 = vshll.u32 %v7546_v37, %v2356_v29 }
 0x3c9   : > { %v4776_v50 = vpop.eup %4775  ;;  %v2374_v40 = vsel %vm7562_vm4, 0, %v2372_v17  ;;  %v4004_v45 = vmul.u32 %v3997_v13, %v3988_v7  ;;  %vm4006_vm10 = vc.u32 %v7579_v56, %v7569_v62  ;;  %v684_v43 = vmul.f32 %v7369_v9, %v639_v52 }
 0x3ca   : > { %v4778_v27 = vpop.eup %4777  ;;  %v3737_v32 = vxor.u32 2147483648, %v4776_v50  ;;  %v2359_v63 = vshrl.u32 %v2341_v60, %v2357_v36  ;;  %v2362_v38 = vadd.s32 127, %v2361_v10  ;;  %v4008_v19 = vsel %vm4006_vm10, %v4007_v16, %v7570_v46 }
 0x3cb   : > { %v3734_v61 = vxor.u32 2147483648, %v4778_v27  ;;  %v4009_v34 = vadd.s32 %v4008_v19, %v4004_v45  ;;  %v2191_v57 = vadd.s32 1, %v4297_v4  ;;  %vm3733_vm11 = vcmp.eq.s32.totalorder %v7548_v11, 0 }
 0x3cc   : > { %v3738_v37 = vsel %vm3736_vm7, %v3737_v32, %v4778_v27  ;;  %v2360_v48 = vor.u32 %v2359_v63, %v2358_v14  ;;  %v2363_v49 = vshll.u32 %v2362_v38, 23  ;;  %v2378_v39 = vadd.s32 3, %v2374_v40 }
 0x3cd   : > { %v3735_v20 = vsel %vm3733_vm11, %v4776_v50, %v3734_v61  ;;  %v4010_v42 = vadd.s32 536870912, %v4009_v34  ;;  %vm2192_vm12 = vcmp.gt.s32.totalorder %v2191_v57, 0  ;;  %v2188_v6 = vand.u32 8388607, %v2181_v3 }
 0x3ce   : > { %v3739_v55 = vsel %vm3732_vm6, %v3735_v20, %v3738_v37  ;;  %v2364_v2 = vor.u32 4788187, %v2363_v49  ;;  %v2193_v9 = vsel %vm2192_vm12, %v2191_v57, 0  ;;  %v7609_v30 = vadd.f32 %v7398_v31, %v684_v43 }
 0x3cf   : > { %v3740_v23 = vsel %vm3729_vm8, nan, %v3739_v55  ;;  %v7606_v12 = vshrl.u32 %v4010_v42, 30  ;;  %v2195_v13 = vand.u32 31, %v2193_v9  ;;  %v2367_v51 = vcvt.s32.f32 %v2360_v48 }
 0x3d0   : > { %4081 = vst [vmem:[%s5408_s15 + $0xe0] sm:$0xff] %v3740_v23  ;;  %v2365_v0 = vand.u32 2147483647, %v2364_v2  ;;  %v7613_v46 = vand.u32 3, %v2378_v39  ;;  %v2189_v44 = vor.u32 8388608, %v2188_v6  ;;  %v3848_v15 = vand.u32 2139095040, %v7609_v30 }
 0x3d1   : > { %v4012_v11 = vshll.u32 %v7606_v12, 30  ;;  %v2196_v47 = vsub.s32 32, %v2195_v13  ;;  %v2198_v31 = vshll.u32 %v4888_v18, %v2195_v13  ;;  %v2201_v8 = vshll.u32 %v4889_v22, %v2195_v13 }
 0x3d2   : > { %v2368_v59 = vmul.f32 %v2367_v51, %v2365_v0  ;;  %v2204_v60 = vshll.u32 %v4890_v24, %v2195_v13  ;;  %v2194_v52 = vshrl.u32 %v2193_v9, 5  ;;  %v2207_v10 = vshll.u32 %v4891_v26, %v2195_v13 }
 0x3d3   : > { %v7615_v58 = vsub.s32 %v4009_v34, %v4012_v11  ;;  %v2199_v1 = vshrl.u32 %v4889_v22, %v2196_v47  ;;  %v2202_v54 = vshrl.u32 %v4890_v24, %v2196_v47  ;;  %v2205_v17 = vshrl.u32 %v4891_v26, %v2196_v47 }
 0x3d4   : > { %v2369_v41 = vxor.u32 2147483648, %v2368_v59  ;;  %v2208_v29 = vshrl.u32 %v4892_v28, %v2196_v47  ;;  %v2210_v27 = vshll.u32 %v4892_v28, %v2195_v13  ;;  %v2211_v32 = vshrl.u32 %v4893_v35, %v2196_v47 }
 0x3d5   : > { %v4015_v7 = vsub.s32 0, %v7615_v58  ;;  %v2200_v36 = vor.u32 %v2199_v1, %v2198_v31  ;;  %v2203_v14 = vor.u32 %v2202_v54, %v2201_v8  ;;  %v2206_v40 = vor.u32 %v2205_v17, %v2204_v60 }
 0x3d6   : > { %v2370_v16 = vsel %vm2287_vm5, %v2369_v41, %v2368_v59  ;;  %v2209_v45 = vor.u32 %v2208_v29, %v2207_v10  ;;  %v4005_v63 = vadd.s32 %v7569_v62, %v7579_v56  ;;  %v2229_v19 = vshll.u32 %v2189_v44, 8 }
 0x3d7   : > { %v2373_v4 = vsel %vm7562_vm4, %v7401_v33, %v2370_v16  ;;  %v4366_v50 = vmin.u32 %v4015_v7, %v7615_v58  ;;  %v2197_v61 = vshrl.u32 %v4888_v18, %v2196_v47  ;;  %v2212_v21 = vor.u32 %v2211_v32, %v2210_v27 }
 0x3d8   : > { %4779 = vcosq.f32 %v2373_v4  ;;  %vm2213_vm13 = vcmp.lt.s32.totalorder %v2194_v52, 1  ;;  %v3849_v34 = vshrl.u32 %v3848_v15, 23  ;;  %vm2215_vm14 = vcmp.lt.s32.totalorder %v2194_v52, 3 }
 0x3d9   : > { %4781 = vsinq.f32 %v2373_v4  ;;  %v4017_v38 = vclz %v4366_v50  ;;  %vm2216_vm15 = vcmp.lt.s32.totalorder %v2194_v52, 4  ;;  %v2221_v43 = vsel %vm2213_vm13, %v2200_v36, %v2203_v14 }
 0x3da   : > { %v2218_v37 = vsel %vm2216_vm15, %v2206_v40, 2102212464  ;;  %v2222_v48 = vsel %vm2216_vm15, %v2209_v45, 920167782  ;;  %v2225_v49 = vsel %vm2213_vm13, %v2203_v14, %v2206_v40  ;;  %v2226_v20 = vsel %vm2216_vm15, %v2212_v21, 1326507024 }
 0x3db   : > { %v4367_v57 = vadd.s32 4294967294, %v4017_v38  ;;  %vm2214_vm1 = vcmp.lt.s32.totalorder %v2194_v52, 2  ;;  %v2223_v39 = vsel %vm2215_vm14, %v2206_v40, %v2222_v48  ;;  %v2227_v62 = vsel %vm2215_vm14, %v2209_v45, %v2226_v20 }
 0x3dc   : > { %v2217_v42 = vsel %vm2213_vm13, %v2197_v61, %v2200_v36  ;;  %v2224_v55 = vsel %vm2214_vm1, %v2221_v43, %v2223_v39  ;;  %v2228_v2 = vsel %vm2214_vm1, %v2225_v49, %v2227_v62  ;;  %v2219_v23 = vsel %vm2215_vm14, %v2203_v14, %v2218_v37 }
 0x3dd   : > { %vm4368_vm0 = vcmp.lt.s32.totalorder %v4367_v57, 0  ;;  %v4361_v13 = vadd.s32 4294967169, %v3849_v34  ;;  %v7643_v0 = vmul.u32.u64.low %v2229_v19, %v2228_v2  ;;  %v7644_v51 = vmul.u32.u64.high %v2229_v19, %v2228_v2, %v7643_v0 }
 0x3de   : > { %v4020_v56 = vsel %vm4368_vm0, 0, %v4367_v57  ;;  %v7646_v11 = vmul.u32.u64.low %v2229_v19, %v2224_v55  ;;  %v7647_v47 = vmul.u32.u64.high %v2229_v19, %v2224_v55, %v7646_v11  ;;  %vm2377_vm3 = vweird.f32 %v7401_v33 }
 0x3df   : > { %v4021_v6 = vsub.s32 32, %v4020_v56  ;;  %v4025_v9 = vsub.s32 4294967266, %v4020_v56  ;;  %v4022_v59 = vshll.u32 %v7615_v58, %v4020_v56  ;;  %v3855_v15 = vadd.s32 1, %v4361_v13 }
 0x3e0   : > { %vm3951_vm2 = vcmp.lt.s32.totalorder %v7439_v53, 0  ;;  %v2220_v41 = vsel %vm2214_vm1, %v2217_v42, %v2219_v23  ;;  %v3845_v17 = vand.u32 2147483647, %v7609_v30  ;;  %v4035_v7 = vsub.s32 4, %v7606_v12 }
 0x3e1   : > { %v4023_v44 = vshrl.u32 %v4005_v63, %v4021_v6  ;;  %v4026_v1 = vadd.s32 127, %v4025_v9  ;;  %vm3856_vm4 = vcmp.gt.s32.totalorder %v3855_v15, 0  ;;  %vm2238_vm5 = vc.u32 %v7644_v51, %v7646_v11 }
 0x3e2   : > { %v2239_v58 = vadd.s32 1, %v7647_v47  ;;  %v3857_v8 = vsel %vm3856_vm4, %v3855_v15, 0  ;;  %vm2380_vm6 = vcmp.lt.s32.totalorder %v7613_v46, 2  ;;  %vm7662_vm7 = vcmp.le.f32.partialorder %v3949_v5, 0.7853982 }
 0x3e3   : > { %v4024_v31 = vor.u32 %v4023_v44, %v4022_v59  ;;  %v4027_v54 = vshll.u32 %v4026_v1, 23  ;;  %v2236_v52 = vmul.u32 %v2229_v19, %v2220_v41  ;;  %v3859_v36 = vand.u32 31, %v3857_v8 }
 0x3e4   : > { %vm2384_vm8 = vcmp.eq.s32.totalorder %v7613_v46, 2  ;;  %v2240_v14 = vsel %vm2238_vm5, %v2239_v58, %v7647_v47  ;;  %vm2381_vm9 = vcmp.eq.s32.totalorder %v7613_v46, 0  ;;  %v4036_v63 = vsel %vm3951_vm2, %v4035_v7, %v7606_v12 }
 0x3e5   : > { %v4780_v60 = vpop.eup %4779  ;;  %v4028_v16 = vor.u32 4788187, %v4027_v54  ;;  %v4031_v50 = vcvt.s32.f32 %v4024_v31  ;;  %v2241_v27 = vadd.s32 %v2240_v14, %v2236_v52  ;;  %v3860_v32 = vsub.s32 32, %v3859_v36 }
 0x3e6   : > { %v4782_v10 = vpop.eup %4781  ;;  %v2385_v4 = vxor.u32 2147483648, %v4780_v60  ;;  %v3852_v38 = vand.u32 8388607, %v3845_v17  ;;  %v3862_v34 = vshll.u32 %v4888_v18, %v3859_v36  ;;  %v3865_v37 = vshll.u32 %v4889_v22, %v3859_v36 }
 0x3e7   : > { %v2382_v40 = vxor.u32 2147483648, %v4782_v10  ;;  %v4029_v45 = vand.u32 2147483647, %v4028_v16  ;;  %v2242_v21 = vadd.s32 536870912, %v2241_v27  ;;  %v3863_v43 = vshrl.u32 %v4889_v22, %v3860_v32 }
 0x3e8   : > { %v2386_v5 = vsel %vm2384_vm8, %v2385_v4, %v4782_v10  ;;  %v3866_v48 = vshrl.u32 %v4890_v24, %v3860_v32  ;;  %v3869_v39 = vshrl.u32 %v4891_v26, %v3860_v32  ;;  %v3858_v62 = vshrl.u32 %v3857_v8, 5 }
 0x3e9   : > { %v2383_v19 = vsel %vm2381_vm9, %v4780_v60, %v2382_v40  ;;  %v4032_v61 = vmul.f32 %v4031_v50, %v4029_v45  ;;  %v7682_v20 = vshrl.u32 %v2242_v21, 30  ;;  %v3868_v56 = vshll.u32 %v4890_v24, %v3859_v36 }
 0x3ea   : > { %v2387_v57 = vsel %vm2380_vm6, %v2383_v19, %v2386_v5  ;;  %v3871_v46 = vshll.u32 %v4891_v26, %v3859_v36  ;;  %v3872_v42 = vshrl.u32 %v4892_v28, %v3860_v32  ;;  %v3864_v33 = vor.u32 %v3863_v43, %v3862_v34 }
 0x3eb   : > { %v2388_v12 = vsel %vm2377_vm3, nan, %v2387_v57  ;;  %v4033_v49 = vxor.u32 2147483648, %v4032_v61  ;;  %v2244_v55 = vshll.u32 %v7682_v20, 30  ;;  %v3867_v2 = vor.u32 %v3866_v48, %v3865_v37 }
 0x3ec   : > { %4068 = vst [vmem:[%s5408_s15 + $0x78] sm:$0xff] %v2388_v12  ;;  %v3873_v9 = vor.u32 %v3872_v42, %v3871_v46  ;;  %v3874_v23 = vshll.u32 %v4892_v28, %v3859_v36  ;;  %v3875_v24 = vshrl.u32 %v4893_v35, %v3860_v32  ;;  %v3870_v13 = vor.u32 %v3869_v39, %v3868_v56 }
 0x3ed   : > { %v4034_v22 = vsel %vm3951_vm2, %v4033_v49, %v4032_v61  ;;  %v2245_v26 = vsub.s32 %v2241_v27, %v2244_v55  ;;  %v3853_v0 = vor.u32 8388608, %v3852_v38  ;;  %v4038_v59 = vsel %vm7662_vm7, 0, %v4036_v63 }
 0x3ee   : > { %v4037_v6 = vsel %vm7662_vm7, %v7439_v53, %v4034_v22  ;;  %v3876_v47 = vor.u32 %v3875_v24, %v3874_v23  ;;  %vm3877_vm10 = vcmp.lt.s32.totalorder %v3858_v62, 1  ;;  %vm3880_vm11 = vcmp.lt.s32.totalorder %v3858_v62, 4 }
 0x3ef   : > { %4783 = vcosq.f32 %v4037_v6  ;;  %v2247_v44 = vsub.s32 0, %v2245_v26  ;;  %v3861_v1 = vshrl.u32 %v4888_v18, %v3860_v32  ;;  %vm3879_vm12 = vcmp.lt.s32.totalorder %v3858_v62, 3 }
 0x3f0   : > { %4785 = vsinq.f32 %v4037_v6  ;;  %v3885_v15 = vsel %vm3877_vm10, %v3864_v33, %v3867_v2  ;;  %v3886_v28 = vsel %vm3880_vm11, %v3873_v9, 920167782  ;;  %vm3878_vm13 = vcmp.lt.s32.totalorder %v3858_v62, 2 }
 0x3f1   : > { %v4298_v41 = vmin.u32 %v2247_v44, %v2245_v26  ;;  %v3882_v35 = vsel %vm3880_vm11, %v3870_v13, 2102212464  ;;  %v3887_v31 = vsel %vm3879_vm12, %v3870_v13, %v3886_v28  ;;  %v3889_v7 = vsel %vm3877_vm10, %v3867_v2, %v3870_v13 }
 0x3f2   : > { %v3888_v54 = vsel %vm3878_vm13, %v3885_v15, %v3887_v31  ;;  %v3890_v58 = vsel %vm3880_vm11, %v3876_v47, 1326507024  ;;  %v3893_v8 = vshll.u32 %v3853_v0, 8  ;;  %v4042_v60 = vadd.s32 3, %v4038_v59 }
 0x3f3   : > { %v2249_v29 = vclz %v4298_v41  ;;  %v3881_v16 = vsel %vm3877_vm10, %v3861_v1, %v3864_v33  ;;  %v3883_v52 = vsel %vm3879_vm12, %v3867_v2, %v3882_v35  ;;  %v3891_v18 = vsel %vm3879_vm12, %v3873_v9, %v3890_v58 }
 0x3f4   : > { %v7704_v36 = vmul.u32.u64.low %v3893_v8, %v3888_v54  ;;  %v7705_v10 = vmul.u32.u64.high %v3893_v8, %v3888_v54, %v7704_v36  ;;  %v3892_v50 = vsel %vm3878_vm13, %v3889_v7, %v3891_v18  ;;  %v3884_v45 = vsel %vm3878_vm13, %v3881_v16, %v3883_v52 }
 0x3f5   : > { %v4299_v4 = vadd.s32 4294967294, %v2249_v29  ;;  %v7708_v14 = vmul.u32.u64.low %v3893_v8, %v3892_v50  ;;  %v7709_v40 = vmul.u32.u64.high %v3893_v8, %v3892_v50, %v7708_v14  ;;  %v4043_v27 = vand.u32 3, %v4042_v60 }
 0x3f6   : > { %v3903_v5 = vadd.s32 1, %v7705_v10  ;;  %v2237_v63 = vadd.s32 %v7646_v11, %v7644_v51  ;;  %v3900_v34 = vmul.u32 %v3893_v8, %v3884_v45  ;;  %vm4041_vm2 = vweird.f32 %v7439_v53 }
 0x3f7   : > { %vm4300_vm14 = vcmp.lt.s32.totalorder %v4299_v4, 0  ;;  %vm3902_vm15 = vc.u32 %v7709_v40, %v7704_v36  ;;  %vm4048_vm0 = vcmp.eq.s32.totalorder %v4043_v27, 2  ;;  %vm4045_vm1 = vcmp.eq.s32.totalorder %v4043_v27, 0 }
 0x3f8   : > { %v2252_v32 = vsel %vm4300_vm14, 0, %v4299_v4  ;;  %v3904_v12 = vsel %vm3902_vm15, %v3903_v5, %v7705_v10  ;;  %vm4044_vm3 = vcmp.lt.s32.totalorder %v4043_v27, 2  ;;  %vm2183_vm4 = vcmp.lt.s32.totalorder %v7552_v25, 0 }
 0x3f9   : > { %v2253_v38 = vsub.s32 32, %v2252_v32  ;;  %v2257_v19 = vsub.s32 4294967266, %v2252_v32  ;;  %v2254_v21 = vshll.u32 %v2245_v26, %v2252_v32  ;;  %v3905_v39 = vadd.s32 %v3904_v12, %v3900_v34 }
 0x3fa   : > { %v2267_v13 = vsub.s32 4, %v7682_v20  ;;  %vm2182_vm5 = vcmp.le.f32.partialorder %v2181_v3, 0.7853982  ;;  %v3901_v31 = vadd.s32 %v7704_v36, %v7709_v40  ;;  %vm2273_vm10 = vweird.f32 %v7552_v25 }
 0x3fb   : > { %v2255_v37 = vshrl.u32 %v2237_v63, %v2253_v38  ;;  %v2258_v48 = vadd.s32 127, %v2257_v19  ;;  %v3906_v46 = vadd.s32 536870912, %v3905_v39  ;;  %vm3847_vm11 = vcmp.lt.s32.totalorder %v7609_v30, 0 }
 0x3fc   : > { %v4784_v61 = vpop.eup %4783  ;;  %v2268_v44 = vsel %vm2183_vm4, %v2267_v13, %v7682_v20  ;;  %vm3846_vm12 = vcmp.le.f32.partialorder %v3845_v17, 0.7853982 }
 0x3fd   : > { %v4786_v57 = vpop.eup %4785  ;;  %v4049_v43 = vxor.u32 2147483648, %v4784_v61  ;;  %v2256_v51 = vor.u32 %v2255_v37, %v2254_v21  ;;  %v2259_v11 = vshll.u32 %v2258_v48, 23  ;;  %v3907_v33 = vshrl.u32 %v3906_v46, 30 }
 0x3fe   : > { %v4046_v49 = vxor.u32 2147483648, %v4786_v57  ;;  %v2270_v28 = vsel %vm2182_vm5, 0, %v2268_v44 }
 0x3ff   : > { %v4050_v62 = vsel %vm4048_vm0, %v4049_v43, %v4786_v57  ;;  %v2260_v22 = vor.u32 4788187, %v2259_v11  ;;  %v2263_v6 = vcvt.s32.f32 %v2256_v51  ;;  %v3908_v9 = vshll.u32 %v3907_v33, 30 }
 0x400   : > { %v4047_v56 = vsel %vm4045_vm1, %v4784_v61, %v4046_v49  ;;  %v2274_v35 = vadd.s32 3, %v2270_v28  ;;  %v3931_v63 = vsub.s32 4, %v3907_v33  ;;  %vm3937_vm0 = vweird.f32 %v7609_v30 }
 0x401   : > { %v4051_v42 = vsel %vm4044_vm3, %v4047_v56, %v4050_v62  ;;  %v2261_v2 = vand.u32 2147483647, %v2260_v22  ;;  %v3909_v24 = vsub.s32 %v3905_v39, %v3908_v9 }
 0x402   : > { %v4052_v55 = vsel %vm4041_vm2, nan, %v4051_v42  ;;  %v2275_v60 = vand.u32 3, %v2274_v35  ;;  %v3932_v61 = vsel %vm3847_vm11, %v3931_v63, %v3907_v33 }
 0x403   : > { %4084 = vst [vmem:[%s5408_s15 + $0xf8] sm:$0xff] %v4052_v55  ;;  %v2264_v23 = vmul.f32 %v2263_v6, %v2261_v2  ;;  %v3911_v0 = vsub.s32 0, %v3909_v24  ;;  %v3934_v21 = vsel %vm3846_vm12, 0, %v3932_v61 }
 0x404   : > { %vm2280_vm7 = vcmp.eq.s32.totalorder %v2275_v60, 2  ;;  %vm2277_vm8 = vcmp.eq.s32.totalorder %v2275_v60, 0  ;;  %vm2276_vm9 = vcmp.lt.s32.totalorder %v2275_v60, 2 }
 0x405   : > { %v2265_v26 = vxor.u32 2147483648, %v2264_v23  ;;  %v4362_v59 = vmin.u32 %v3911_v0, %v3909_v24 }
 0x407   : > { %v2266_v53 = vsel %vm2183_vm4, %v2265_v26, %v2264_v23  ;;  %v3913_v1 = vclz %v4362_v59 }
 0x408   : > { %v2269_v47 = vsel %vm2182_vm5, %v7552_v25, %v2266_v53  ;;  %v3938_v25 = vadd.s32 3, %v3934_v21 }
 0x409   : > { %4787 = vcosq.f32 %v2269_v47  ;;  %v4363_v15 = vadd.s32 4294967294, %v3913_v1 }
 0x40a   : > { %4789 = vsinq.f32 %v2269_v47  ;;  %v3939_v34 = vand.u32 3, %v3938_v25 }
 0x40b   : > { %vm4364_vm6 = vcmp.lt.s32.totalorder %v4363_v15, 0 }
 0x40c   : > { %v3916_v41 = vsel %vm4364_vm6, 0, %v4363_v15  ;;  %vm3944_vm13 = vcmp.eq.s32.totalorder %v3939_v34, 2  ;;  %vm3941_vm14 = vcmp.eq.s32.totalorder %v3939_v34, 0  ;;  %vm3940_vm15 = vcmp.lt.s32.totalorder %v3939_v34, 2 }
 0x40d   : > { %v3917_v54 = vsub.s32 32, %v3916_v41  ;;  %v3921_v7 = vsub.s32 4294967266, %v3916_v41  ;;  %v3918_v58 = vshll.u32 %v3909_v24, %v3916_v41 }
 0x40f   : > { %v3919_v3 = vshrl.u32 %v3901_v31, %v3917_v54  ;;  %v3922_v8 = vadd.s32 127, %v3921_v7 }
 0x411   : > { %v3920_v29 = vor.u32 %v3919_v3, %v3918_v58  ;;  %v3923_v16 = vshll.u32 %v3922_v8, 23 }
 0x413   : > { %v3924_v18 = vor.u32 4788187, %v3923_v16  ;;  %v3927_v14 = vcvt.s32.f32 %v3920_v29 }
 0x415   : > { %v3925_v50 = vand.u32 2147483647, %v3924_v18 }
 0x416   : > { %v4788_v52 = vpop.eup %4787 }
 0x417   : > { %v4790_v20 = vpop.eup %4789  ;;  %v2281_v10 = vxor.u32 2147483648, %v4788_v52  ;;  %v3928_v40 = vmul.f32 %v3927_v14, %v3925_v50 }
 0x418   : > { %v2278_v4 = vxor.u32 2147483648, %v4790_v20 }
 0x419   : > { %v2282_v45 = vsel %vm2280_vm7, %v2281_v10, %v4790_v20  ;;  %v3929_v5 = vxor.u32 2147483648, %v3928_v40 }
 0x41a   : > { %v2279_v36 = vsel %vm2277_vm8, %v4788_v52, %v2278_v4 }
 0x41b   : > { %v2283_v27 = vsel %vm2276_vm9, %v2279_v36, %v2282_v45  ;;  %v3930_v38 = vsel %vm3847_vm11, %v3929_v5, %v3928_v40 }
 0x41c   : > { %v2284_v32 = vsel %vm2273_vm10, nan, %v2283_v27  ;;  %v3933_v19 = vsel %vm3846_vm12, %v7609_v30, %v3930_v38 }
 0x41d   : > { %4067 = vst [vmem:[%s5408_s15 + $0x70] sm:$0xff] %v2284_v32  ;;  %4791 = vcosq.f32 %v3933_v19 }
 0x41e   : > { %4793 = vsinq.f32 %v3933_v19 }
 0x42a   : > { %v4792_v57 = vpop.eup %4791 }
 0x42b   : > { %v4794_v43 = vpop.eup %4793  ;;  %v3945_v37 = vxor.u32 2147483648, %v4792_v57 }
 0x42c   : > { %v3942_v48 = vxor.u32 2147483648, %v4794_v43 }
 0x42d   : > { %v3946_v17 = vsel %vm3944_vm13, %v3945_v37, %v4794_v43 }
 0x42e   : > { %v3943_v12 = vsel %vm3941_vm14, %v4792_v57, %v3942_v48 }
 0x42f   : > { %v3947_v49 = vsel %vm3940_vm15, %v3943_v12, %v3946_v17 }
 0x430   : > { %v3948_v39 = vsel %vm3937_vm0, nan, %v3947_v49 }
 0x431   : > { %4083 = vst [vmem:[%s5408_s15 + $0xf0] sm:$0xff] %v3948_v39 }
 0x432   : > { %4823 = shalt.err (!%p4820_p5)
}
 0x433   : > { %s4824_s13 = scalar_lea.hbm %s7737_s17, 4096  ;;  %s4828_s9 = scalar_lea.hbm %s7795_s5, 8192 }
 0x434   : > { %p4825_p6 = scmp.ne.s32.totalorder %s7737_s17, %s4824_s13  ;;  %p4829_p10 = scmp.lt.s32.totalorder %s7737_s17, %s7795_s5 }
 0x435   : > { %p4830_p11 = scmp.lt.s32.totalorder %s4828_s9, %s4824_s13 }
 0x436   : > { %p4826_p7 = pnand %p4825_p6, %p4967_p4 }
 0x437   : > { %p4831_p12 = por %p4830_p11, %p4829_p10 }
 0x438   : > { %p4827_p9 = pneg %p4826_p7 }
 0x43a   : > { %p4832_p13 = pnand %p4831_p12, %p4827_p9 }
 0x43c   : > { %4835 = shalt.err (!%p4832_p13)
}
 0x43d   : > { %s4895_s11 = smov 128   ;;  %s4896_s14 = smov 8  }
 0x43e   : > { %4604 = dma.vmem_to_hbm [thread:$0]  (%p4967_p4), %s7739_s12, 4096, %s7737_s17, %s7745_s21, %s4895_s11, %s4895_s11, %s4896_s14  }
 0x43f PF: > { %p4610_p0 = scmp.ge.s32.totalorder %s4886_s23, 2  ;;  %s4116_s16 = sand.u32 1, %s4866_s18  }
 0x440   : > { %s4117_s24 = scalar_lea.sflag [#allocation3], %s4116_s16 }
 0x441   : > { %p4607_p1 = pnand %p4610_p0, %p4974_p8 }
 0x443   : > { %p4608_p2 = pneg %p4607_p1 }
 0x445   : > { %4861 = dma.done.wait (%p4608_p2), %s4117_s24, 4096  }
 0x446   : > { %4863 = vsyncadd (%p4608_p2), %s4117_s24, 4294963200  ;;  %s18_s23 = sadd.s32 1, %s4886_s23   ;;  %s7858_s18 = smov %s4870_s19 }
 0x447   : > { %p15_p3 = scmp.ge.s32.totalorder %s18_s23, 4   ;;  %s7859_s19 = smov %s4874_s20 }
 0x448   : > { %s7860_s20 = smov %s4980_s6  ;;  %s7861_s21 = smov %s4882_s22 }
 0x449   : > { %s7862_s22 = smov %s7864_s26  ;;  %17 = sbr.rel (!%p15_p3) target bundleno = 4 (0x4), region = 81 }
 0x44e   :  { %4122 = vsyncpa [#allocation3], 1 }
 0x44f   :  { %4124 = vsyncpa [#allocation3 + $0x1], 1 }

</bundles_post_ra>
